<compile_context>
chip_gen: v6e
topology: v6e:2x2x1
jax: 0.10.0
libtpu: 0.0.40
codegen_flags: <defaults>
</compile_context>

<pallas_src>
import functools

import jax
import jax.numpy as jnp
from jax.experimental import pallas as pl


# ----------------------------------------------------------------------------
# Pallas kernels
# ----------------------------------------------------------------------------
def conv_relu_pool_kernel(p_ref, w_ref, b_ref, o_ref, *, bp, pool_avg):
    """Fused 3x3 conv (single matmul, K=9*Cin) + bias + ReLU + 2x2 pool.

    p_ref: (4*bp, 9*Cin) bf16  im2col rows, grouped by 2x2-window position
                               (block 0 = top-left of every window, ... block 3
                               = bottom-right), each block padded to bp rows.
    w_ref: (9*Cin, Cout) bf16
    b_ref: (1, Cout)     f32
    o_ref: (bp, Cout)    f32   pooled output rows in (n, hh, ww) order.
    """
    h = jnp.dot(p_ref[...], w_ref[...], preferred_element_type=jnp.float32)
    h = jnp.maximum(h + b_ref[...], 0.0)          # bias + ReLU in f32 (v5e-safe)
    # 2x2 pool = elementwise reduce over the 4 position blocks.  bp is a
    # multiple of 8, so these are tile-aligned sublane slices (no relayout).
    h00 = h[0 * bp:1 * bp]
    h01 = h[1 * bp:2 * bp]
    h10 = h[2 * bp:3 * bp]
    h11 = h[3 * bp:4 * bp]
    if pool_avg:
        o_ref[...] = (h00 + h01 + h10 + h11) * 0.25
    else:
        o_ref[...] = jnp.maximum(jnp.maximum(h00, h01), jnp.maximum(h10, h11))


def classifier_kernel(x_ref, w1_ref, b1_ref, w2_ref, b2_ref, w3_ref, b3_ref,
                      o_ref):
    """Fused Linear->ReLU->Linear->ReLU->Linear for BOTH heads in one call.

    Dropout is identity at inference.  Weights are bf16, accumulation f32,
    bias/ReLU epilogues f32.
    """
    h = jnp.dot(x_ref[...], w1_ref[...], preferred_element_type=jnp.float32)
    h = jnp.maximum(h + b1_ref[...], 0.0)
    h = jnp.dot(h.astype(jnp.bfloat16), w2_ref[...],
                preferred_element_type=jnp.float32)
    h = jnp.maximum(h + b2_ref[...], 0.0)
    y = jnp.dot(h.astype(jnp.bfloat16), w3_ref[...],
                preferred_element_type=jnp.float32)
    o_ref[...] = y + b3_ref[...]


# ----------------------------------------------------------------------------
# Wrappers (glue: im2col layout, weight packing, flatten)
# ----------------------------------------------------------------------------
def conv3x3_relu_pool2x2(x_nhwc, w, b, *, pool):
    """Fused 'same' 3x3 conv + bias + ReLU + 2x2/stride-2 pool ('max'|'avg').

    x_nhwc: (N, H, W, Cin) f32, w: (3, 3, Cin, Cout), b: (Cout,)
    returns (N, H//2, W//2, Cout) f32.
    """
    N, H, W, Cin = x_nhwc.shape
    Cout = w.shape[-1]
    assert H % 2 == 0 and W % 2 == 0
    Hh, Wh = H // 2, W // 2
    B = N * Hh * Wh                      # pooled rows (batch folded into M)
    Bp = -(-B // 8) * 8                  # pad each position block to sublanes
    K = 9 * Cin

    # TODO(synk): at real VGG sizes (512 ch) this wrapper-side im2col writes a
    # 9x-blown-up activation through HBM; the taps should be formed in-kernel
    # from the padded map instead.  At stand-in sizes it is noise.
    xp = jnp.pad(x_nhwc, ((0, 0), (1, 1), (1, 1), (0, 0)))
    cols = jnp.concatenate(
        [xp[:, dh:dh + H, dw:dw + W, :] for dh in range(3) for dw in range(3)],
        axis=-1)                                           # (N, H, W, 9*Cin)
    # Group rows by 2x2 pooling-window position -> kernel pools with aligned
    # sublane slices (no in-kernel reshape / no extra HBM pre-split).
    cols = cols.reshape(N, Hh, 2, Wh, 2, K).transpose(2, 4, 0, 1, 3, 5)
    cols = cols.reshape(4, B, K)
    if Bp != B:
        cols = jnp.pad(cols, ((0, 0), (0, Bp - B), (0, 0)))
    cols = cols.reshape(4 * Bp, K).astype(jnp.bfloat16)

    w2 = w.reshape(K, Cout).astype(jnp.bfloat16)   # (kh, kw, cin) row order
    b2 = b.reshape(1, Cout).astype(jnp.float32)

    flops = 2 * (4 * Bp) * K * Cout
    bytes_accessed = cols.size * 2 + w2.size * 2 + b2.size * 4 + Bp * Cout * 4

    out = pl.pallas_call(
        functools.partial(conv_relu_pool_kernel, bp=Bp,
                          pool_avg=(pool == "avg")),
        out_shape=jax.ShapeDtypeStruct((Bp, Cout), jnp.float32),
        cost_estimate=pl.CostEstimate(flops=flops, transcendentals=0,
                                      bytes_accessed=bytes_accessed),
    )(cols, w2, b2)
    return out[:B].reshape(N, Hh, Wh, Cout)


def _permute_fc1_rows(w, c, s):
    """fc1 weights are stored in torch-flatten order (c*S + s); our feature
    vector is channels-last order (s*C + c).  Permute rows once (exact)."""
    return w.reshape(c, s, w.shape[-1]).transpose(1, 0, 2).reshape(c * s,
                                                                   w.shape[-1])


def _block_diag(mats):
    if len(mats) == 1:
        return mats[0]
    a, b = mats
    z_ab = jnp.zeros((a.shape[0], b.shape[1]), a.dtype)
    z_ba = jnp.zeros((b.shape[0], a.shape[1]), a.dtype)
    return jnp.concatenate(
        [jnp.concatenate([a, z_ab], axis=1),
         jnp.concatenate([z_ba, b], axis=1)], axis=0)


def _stack_heads(heads, c2, s):
    """Pack one or two classifier heads into one weight set.

    fc1: concat along Dout (shared input x).  fc2/fc3: block-diagonal, so the
    two heads stay independent while running as one wide matmul each.
    """
    w1 = jnp.concatenate([_permute_fc1_rows(h["fc1_w"], c2, s) for h in heads],
                         axis=1)
    b1 = jnp.concatenate([h["fc1_b"] for h in heads])[None, :]
    w2 = _block_diag([h["fc2_w"] for h in heads])
    b2 = jnp.concatenate([h["fc2_b"] for h in heads])[None, :]
    w3 = _block_diag([h["fc3_w"] for h in heads])
    b3 = jnp.concatenate([h["fc3_b"] for h in heads])[None, :]
    return w1, b1, w2, b2, w3, b3


def classifier_call(x, w1, b1, w2, b2, w3, b3):
    """One pallas_call for the whole (possibly dual-head) classifier."""
    # TODO(synk): at real VGG sizes fc1_w (~196 MiB bf16) does not fit VMEM;
    # it needs a K-tiled grid (P1+P3 accumulator) with per-generation tile
    # budgets and a parallel grid axis so v7x's second TensorCore is used.
    N = x.shape[0]
    Dout = w3.shape[1]
    x_bf = x.astype(jnp.bfloat16)
    w1b = w1.astype(jnp.bfloat16)
    w2b = w2.astype(jnp.bfloat16)
    w3b = w3.astype(jnp.bfloat16)
    b1f = b1.astype(jnp.float32)
    b2f = b2.astype(jnp.float32)
    b3f = b3.astype(jnp.float32)

    flops = 2 * N * (w1.shape[0] * w1.shape[1] + w2.shape[0] * w2.shape[1] +
                     w3.shape[0] * w3.shape[1])
    bytes_accessed = ((x_bf.size + w1b.size + w2b.size + w3b.size) * 2 +
                      (b1.size + b2.size + b3.size + N * Dout) * 4)

    return pl.pallas_call(
        classifier_kernel,
        out_shape=jax.ShapeDtypeStruct((N, Dout), jnp.float32),
        cost_estimate=pl.CostEstimate(flops=flops, transcendentals=0,
                                      bytes_accessed=bytes_accessed),
    )(x_bf, w1b, b1f, w2b, b2f, w3b, b3f)


# ----------------------------------------------------------------------------
# Parameters (deterministic He-style init, synthetic — no checkpoint load)
# ----------------------------------------------------------------------------
C_IN, C1, C2 = 3, 16, 32          # stand-ins for 3 / ... / 512
HIDDEN, NUM_CLASSES = 256, 10     # stand-ins for 4096 / 1000
FLAT = C2 * 7 * 7                 # stand-in for 512*7*7


def _he_conv(key, kh, kw, cin, cout):
    std = (2.0 / (kh * kw * cin)) ** 0.5
    return jax.random.normal(key, (kh, kw, cin, cout), jnp.float32) * std


def _he_linear(key, din, dout):
    std = (2.0 / din) ** 0.5
    return jax.random.normal(key, (din, dout), jnp.float32) * std


def _head(keys):
    return {
        "fc1_w": _he_linear(keys[0], FLAT, HIDDEN),
        "fc1_b": jnp.zeros((HIDDEN,), jnp.float32),
        "fc2_w": _he_linear(keys[1], HIDDEN, HIDDEN),
        "fc2_b": jnp.zeros((HIDDEN,), jnp.float32),
        "fc3_w": _he_linear(keys[2], HIDDEN, NUM_CLASSES),
        "fc3_b": jnp.zeros((NUM_CLASSES,), jnp.float32),
    }


def init_params(key):
    ks = jax.random.split(key, 8)
    return {
        "conv1_w": _he_conv(ks[0], 3, 3, C_IN, C1),
        "conv1_b": jnp.zeros((C1,), jnp.float32),
        "conv2_w": _he_conv(ks[1], 3, 3, C1, C2),
        "conv2_b": jnp.zeros((C2,), jnp.float32),
        "classifier": _head(ks[2:5]),
        "classifier_2": _head(ks[5:8]),
    }


# ----------------------------------------------------------------------------
# Forward pass (mirrors VggCam.forward; dropout = identity at inference)
# ----------------------------------------------------------------------------
def vgg_cam_forward(params, x_nchw, model_structure="b2"):
    # x_nchw: (N, C, H, W) float32, PyTorch layout.
    x = jnp.transpose(x_nchw, (0, 2, 3, 1))                  # NCHW -> NHWC

    # features: conv3x3+ReLU -> maxpool2x2   (one fused Pallas kernel)
    x = conv3x3_relu_pool2x2(x, params["conv1_w"], params["conv1_b"],
                             pool="max")                     # (N,14,14,C1)
    # features: conv3x3+ReLU, then AdaptiveAvgPool2d((7,7)) on the 14x14 map
    # == 2x2/stride-2 average pool            (one fused Pallas kernel)
    # TODO(synk): general AdaptiveAvgPool2d for non-integer H/7 ratios is not
    # implemented; here the 14x14 map divides evenly.
    assert x.shape[1] == 14 and x.shape[2] == 14
    x = conv3x3_relu_pool2x2(x, params["conv2_w"], params["conv2_b"],
                             pool="avg")                     # (N,7,7,C2)

    # Flatten.  Channels-last order here; fc1 weight rows were permuted in
    # _stack_heads so this is numerically identical to torch.flatten on NCHW.
    n, hh, ww, c2 = x.shape
    feat = x.reshape(n, hh * ww * c2)                        # (N, 49*C2)

    heads = [params["classifier"]]
    if model_structure == "b2":
        heads.append(params["classifier_2"])
    w1, b1, w2, b2, w3, b3 = _stack_heads(heads, c2, hh * ww)

    # Both heads, all three Linear layers: one fused Pallas kernel.
    logits_all = classifier_call(feat, w1, b1, w2, b2, w3, b3)

    results = {"logits": logits_all[:, :NUM_CLASSES]}
    if model_structure == "b2":
        results["logits2"] = logits_all[:, NUM_CLASSES:2 * NUM_CLASSES]
    return results


# ----------------------------------------------------------------------------
if __name__ == "__main__":
    key = jax.random.PRNGKey(0)
    k_params, k_x = jax.random.split(key)
    params = init_params(k_params)
    x = jax.random.normal(k_x, (2, 3, 28, 28), jnp.float32)  # NCHW input

    fwd = jax.jit(vgg_cam_forward, static_argnames=("model_structure",))
    out = fwd(params, x, model_structure="b2")
    out = jax.block_until_ready(out)

    assert out["logits"].shape == (2, NUM_CLASSES)
    assert out["logits2"].shape == (2, NUM_CLASSES)
    assert bool(jnp.all(jnp.isfinite(out["logits"])))
    assert bool(jnp.all(jnp.isfinite(out["logits2"])))
    print("KERNEL_OK")
</pallas_src>

<mosaic_0001>
module attributes {stable_mosaic.version = 11 : i64} {
  func.func @conv_relu_pool_kernel(%arg0: memref<1568x27xbf16, #tpu.memory_space<vmem>>, %arg1: memref<27x16xbf16, #tpu.memory_space<vmem>>, %arg2: memref<1x16xf32, #tpu.memory_space<vmem>>, %arg3: memref<392x16xf32, #tpu.memory_space<vmem>>) attributes {dimension_semantics = [], scalar_prefetch = 0 : i64, scratch_operands = 0 : i64, tpu.core_type = #tpu.core_type<tc>} {
    %c0 = arith.constant 0 : index
    %c0_0 = arith.constant 0 : index
    %0 = vector.load %arg0[%c0, %c0_0] : memref<1568x27xbf16, #tpu.memory_space<vmem>>, vector<1568x27xbf16>
    %c0_1 = arith.constant 0 : index
    %c0_2 = arith.constant 0 : index
    %1 = vector.load %arg1[%c0_1, %c0_2] : memref<27x16xbf16, #tpu.memory_space<vmem>>, vector<27x16xbf16>
    %cst = arith.constant dense<0.000000e+00> : vector<1568x16xf32>
    %2 = tpu.matmul %0, %1, %cst {dimension_numbers = #tpu.dot_dimension_numbers<[1], [0], [0], [1], [0, 0, 1, 1], [], []>} : vector<1568x27xbf16>, vector<27x16xbf16>, vector<1568x16xf32> -> vector<1568x16xf32>
    %c0_3 = arith.constant 0 : index
    %c0_4 = arith.constant 0 : index
    %3 = vector.load %arg2[%c0_3, %c0_4] : memref<1x16xf32, #tpu.memory_space<vmem>>, vector<1x16xf32>
    %4 = vector.broadcast %3 : vector<1x16xf32> to vector<1568x16xf32>
    %5 = arith.addf %2, %4 : vector<1568x16xf32>
    %cst_5 = arith.constant 0.000000e+00 : f32
    %6 = vector.broadcast %cst_5 : f32 to vector<1568x16xf32>
    %7 = arith.maximumf %5, %6 : vector<1568x16xf32>
    %8 = vector.extract_strided_slice %7 {offsets = [0, 0], sizes = [392, 16], strides = [1, 1]} : vector<1568x16xf32> to vector<392x16xf32>
    %9 = vector.extract_strided_slice %7 {offsets = [392, 0], sizes = [392, 16], strides = [1, 1]} : vector<1568x16xf32> to vector<392x16xf32>
    %10 = vector.extract_strided_slice %7 {offsets = [784, 0], sizes = [392, 16], strides = [1, 1]} : vector<1568x16xf32> to vector<392x16xf32>
    %11 = vector.extract_strided_slice %7 {offsets = [1176, 0], sizes = [392, 16], strides = [1, 1]} : vector<1568x16xf32> to vector<392x16xf32>
    %12 = arith.maximumf %8, %9 : vector<392x16xf32>
    %13 = arith.maximumf %10, %11 : vector<392x16xf32>
    %14 = arith.maximumf %12, %13 : vector<392x16xf32>
    %c0_6 = arith.constant 0 : index
    %c0_7 = arith.constant 0 : index
    %15 = vector.load %arg3[%c0_6, %c0_7] : memref<392x16xf32, #tpu.memory_space<vmem>>, vector<392x16xf32>
    tpu.vector_store %arg3[%c0_6, %c0_7], %14 {strides = array<i32>} : memref<392x16xf32, #tpu.memory_space<vmem>>, vector<392x16xf32>,
    return
  }
}

module attributes {stable_mosaic.version = 11 : i64} {
  func.func @conv_relu_pool_kernel(%arg0: memref<416x144xbf16, #tpu.memory_space<vmem>>, %arg1: memref<144x32xbf16, #tpu.memory_space<vmem>>, %arg2: memref<1x32xf32, #tpu.memory_space<vmem>>, %arg3: memref<104x32xf32, #tpu.memory_space<vmem>>) attributes {dimension_semantics = [], scalar_prefetch = 0 : i64, scratch_operands = 0 : i64, tpu.core_type = #tpu.core_type<tc>} {
    %c0 = arith.constant 0 : index
    %c0_0 = arith.constant 0 : index
    %0 = vector.load %arg0[%c0, %c0_0] : memref<416x144xbf16, #tpu.memory_space<vmem>>, vector<416x144xbf16>
    %c0_1 = arith.constant 0 : index
    %c0_2 = arith.constant 0 : index
    %1 = vector.load %arg1[%c0_1, %c0_2] : memref<144x32xbf16, #tpu.memory_space<vmem>>, vector<144x32xbf16>
    %cst = arith.constant dense<0.000000e+00> : vector<416x32xf32>
    %2 = tpu.matmul %0, %1, %cst {dimension_numbers = #tpu.dot_dimension_numbers<[1], [0], [0], [1], [0, 0, 1, 1], [], []>} : vector<416x144xbf16>, vector<144x32xbf16>, vector<416x32xf32> -> vector<416x32xf32>
    %c0_3 = arith.constant 0 : index
    %c0_4 = arith.constant 0 : index
    %3 = vector.load %arg2[%c0_3, %c0_4] : memref<1x32xf32, #tpu.memory_space<vmem>>, vector<1x32xf32>
    %4 = vector.broadcast %3 : vector<1x32xf32> to vector<416x32xf32>
    %5 = arith.addf %2, %4 : vector<416x32xf32>
    %cst_5 = arith.constant 0.000000e+00 : f32
    %6 = vector.broadcast %cst_5 : f32 to vector<416x32xf32>
    %7 = arith.maximumf %5, %6 : vector<416x32xf32>
    %8 = vector.extract_strided_slice %7 {offsets = [0, 0], sizes = [104, 32], strides = [1, 1]} : vector<416x32xf32> to vector<104x32xf32>
    %9 = vector.extract_strided_slice %7 {offsets = [104, 0], sizes = [104, 32], strides = [1, 1]} : vector<416x32xf32> to vector<104x32xf32>
    %10 = vector.extract_strided_slice %7 {offsets = [208, 0], sizes = [104, 32], strides = [1, 1]} : vector<416x32xf32> to vector<104x32xf32>
    %11 = vector.extract_strided_slice %7 {offsets = [312, 0], sizes = [104, 32], strides = [1, 1]} : vector<416x32xf32> to vector<104x32xf32>
    %12 = arith.addf %8, %9 : vector<104x32xf32>
    %13 = arith.addf %12, %10 : vector<104x32xf32>
    %14 = arith.addf %13, %11 : vector<104x32xf32>
    %cst_6 = arith.constant 2.500000e-01 : f32
    %15 = vector.broadcast %cst_6 : f32 to vector<104x32xf32>
    %16 = arith.mulf %14, %15 : vector<104x32xf32>
    %c0_7 = arith.constant 0 : index
    %c0_8 = arith.constant 0 : index
    %17 = vector.load %arg3[%c0_7, %c0_8] : memref<104x32xf32, #tpu.memory_space<vmem>>, vector<104x32xf32>
    tpu.vector_store %arg3[%c0_7, %c0_8], %16 {strides = array<i32>} : memref<104x32xf32, #tpu.memory_space<vmem>>, vector<104x32xf32>,
    return
  }
}

module attributes {stable_mosaic.version = 11 : i64} {
  func.func @classifier_kernel(%arg0: memref<2x1568xbf16, #tpu.memory_space<vmem>>, %arg1: memref<1568x512xbf16, #tpu.memory_space<vmem>>, %arg2: memref<1x512xf32, #tpu.memory_space<vmem>>, %arg3: memref<512x512xbf16, #tpu.memory_space<vmem>>, %arg4: memref<1x512xf32, #tpu.memory_space<vmem>>, %arg5: memref<512x20xbf16, #tpu.memory_space<vmem>>, %arg6: memref<1x20xf32, #tpu.memory_space<vmem>>, %arg7: memref<2x20xf32, #tpu.memory_space<vmem>>) attributes {dimension_semantics = [], scalar_prefetch = 0 : i64, scratch_operands = 0 : i64, tpu.core_type = #tpu.core_type<tc>} {
    %c0 = arith.constant 0 : index
    %c0_0 = arith.constant 0 : index
    %0 = vector.load %arg0[%c0, %c0_0] : memref<2x1568xbf16, #tpu.memory_space<vmem>>, vector<2x1568xbf16>
    %c0_1 = arith.constant 0 : index
    %c0_2 = arith.constant 0 : index
    %1 = vector.load %arg1[%c0_1, %c0_2] : memref<1568x512xbf16, #tpu.memory_space<vmem>>, vector<1568x512xbf16>
    %cst = arith.constant dense<0.000000e+00> : vector<2x512xf32>
    %2 = tpu.matmul %0, %1, %cst {dimension_numbers = #tpu.dot_dimension_numbers<[1], [0], [0], [1], [0, 0, 1, 1], [], []>} : vector<2x1568xbf16>, vector<1568x512xbf16>, vector<2x512xf32> -> vector<2x512xf32>
    %c0_3 = arith.constant 0 : index
    %c0_4 = arith.constant 0 : index
    %3 = vector.load %arg2[%c0_3, %c0_4] : memref<1x512xf32, #tpu.memory_space<vmem>>, vector<1x512xf32>
    %4 = vector.broadcast %3 : vector<1x512xf32> to vector<2x512xf32>
    %5 = arith.addf %2, %4 : vector<2x512xf32>
    %cst_5 = arith.constant 0.000000e+00 : f32
    %6 = vector.broadcast %cst_5 : f32 to vector<2x512xf32>
    %7 = arith.maximumf %5, %6 : vector<2x512xf32>
    %8 = arith.truncf %7 : vector<2x512xf32> to vector<2x512xbf16>
    %c0_6 = arith.constant 0 : index
    %c0_7 = arith.constant 0 : index
    %9 = vector.load %arg3[%c0_6, %c0_7] : memref<512x512xbf16, #tpu.memory_space<vmem>>, vector<512x512xbf16>
    %cst_8 = arith.constant dense<0.000000e+00> : vector<2x512xf32>
    %10 = tpu.matmul %8, %9, %cst_8 {dimension_numbers = #tpu.dot_dimension_numbers<[1], [0], [0], [1], [0, 0, 1, 1], [], []>} : vector<2x512xbf16>, vector<512x512xbf16>, vector<2x512xf32> -> vector<2x512xf32>
    %c0_9 = arith.constant 0 : index
    %c0_10 = arith.constant 0 : index
    %11 = vector.load %arg4[%c0_9, %c0_10] : memref<1x512xf32, #tpu.memory_space<vmem>>, vector<1x512xf32>
    %12 = vector.broadcast %11 : vector<1x512xf32> to vector<2x512xf32>
    %13 = arith.addf %10, %12 : vector<2x512xf32>
    %cst_11 = arith.constant 0.000000e+00 : f32
    %14 = vector.broadcast %cst_11 : f32 to vector<2x512xf32>
    %15 = arith.maximumf %13, %14 : vector<2x512xf32>
    %16 = arith.truncf %15 : vector<2x512xf32> to vector<2x512xbf16>
    %c0_12 = arith.constant 0 : index
    %c0_13 = arith.constant 0 : index
    %17 = vector.load %arg5[%c0_12, %c0_13] : memref<512x20xbf16, #tpu.memory_space<vmem>>, vector<512x20xbf16>
    %cst_14 = arith.constant dense<0.000000e+00> : vector<2x20xf32>
    %18 = tpu.matmul %16, %17, %cst_14 {dimension_numbers = #tpu.dot_dimension_numbers<[1], [0], [0], [1], [0, 0, 1, 1], [], []>} : vector<2x512xbf16>, vector<512x20xbf16>, vector<2x20xf32> -> vector<2x20xf32>
    %c0_15 = arith.constant 0 : index
    %c0_16 = arith.constant 0 : index
    %19 = vector.load %arg6[%c0_15, %c0_16] : memref<1x20xf32, #tpu.memory_space<vmem>>, vector<1x20xf32>
    %20 = vector.broadcast %19 : vector<1x20xf32> to vector<2x20xf32>
    %21 = arith.addf %18, %20 : vector<2x20xf32>
    %c0_17 = arith.constant 0 : index
    %c0_18 = arith.constant 0 : index
    %22 = vector.load %arg7[%c0_17, %c0_18] : memref<2x20xf32, #tpu.memory_space<vmem>>, vector<2x20xf32>
    tpu.vector_store %arg7[%c0_17, %c0_18], %21 {strides = array<i32>} : memref<2x20xf32, #tpu.memory_space<vmem>>, vector<2x20xf32>,
    return
  }
}

</mosaic_0001>

<bundles_post_ra>
// kernel: vgg_cam_forward.3
= control target key start
LH: loop header
LB: loop body
LE: loop exit
PB: predicated region body
PF: predicated region fallthrough
CT: control target
= control target key end

     0   :  { %vm1018_vm0 = vcmask 1044480   ;;  %vm1019_vm1 = vcmask 1045504   ;;  %v2844_v1 = vmov 65535   ;;  %vm723_vm2 = vcmask 220160   ;;  %s4429_s1 = inlined_call_operand.vmem [shape: bf16[27,16], index: 1, kind: input, shape index: {}]   ;;  %s4430_s0 = inlined_call_operand.vmem [shape: bf16[1568,27], index: 0, kind: input, shape index: {}]   ;;  %s4431_s2 = inlined_call_operand.vmem [shape: f32[1,16], index: 2, kind: input, shape index: {}]   ;;  %s4432_s3 = inlined_call_operand.vmem [shape: f32[392,16], index: 3, kind: output, shape index: {}]  }
   0x1   :  { %v2743_v0 = vld [vmem:[%s4429_s1 + $0x8] sm:$0x3f]   ;;  %v1020_v2 = vsel %vm1018_vm0, 4294967295, %v2844_v1  ;;  %v2745_v4 = vld [vmem:[%s4430_s0] sm:$0xff]   ;;  %v2746_v7 = vld [vmem:[%s4430_s0 + $0x190] sm:$0xff]   ;;  %vm2185_vm3 = vcmask 130048  }
   0x2   :  { %v1021_v3 = vsel %vm1019_vm1, %v1020_v2, 0  ;;  %v2744_v6 = vld [vmem:[%s4429_s1] sm:$0xff]   ;;  %2542 = vmatprep.mubr.msk.bf16.mxu0 %vm723_vm2, %v2745_v4  ;;  %v2747_v8 = vld [vmem:[%s4430_s0 + $0x8] sm:$0xff]   ;;  %2642 = vmatprep.mubr.msk.bf16.mxu1 %vm723_vm2, %v2746_v7  ;;  %v2748_v9 = vld [vmem:[%s4430_s0 + $0x198] sm:$0xff]  }
   0x3   :  { %v1023_v5 = vand.u32 %v2743_v0, %v1021_v3  ;;  %v2749_v10 = vld [vmem:[%s4430_s0 + $0x10] sm:$0xff]   ;;  %v2750_v11 = vld [vmem:[%s4430_s0 + $0x1a0] sm:$0xff]   ;;  %v2751_v12 = vld [vmem:[%s4430_s0 + $0x18] sm:$0xff]  }
   0x4   :  { %v2752_v13 = vld [vmem:[%s4430_s0 + $0x1a8] sm:$0xff]   ;;  %v2753_v14 = vld [vmem:[%s4430_s0 + $0x20] sm:$0xff]   ;;  %v2754_v15 = vld [vmem:[%s4430_s0 + $0x1b0] sm:$0xff]  }
   0x5   :  { %2538 = vmatprep.subr.bf16.mxu0 %v1023_v5  ;;  %2738 = vmatprep.subr.bf16.mxu1 %v1023_v5  ;;  %v2755_v16 = vld [vmem:[%s4430_s0 + $0x28] sm:$0xff]   ;;  %v2756_v17 = vld [vmem:[%s4430_s0 + $0x1b8] sm:$0xff]   ;;  %v2757_v18 = vld [vmem:[%s4430_s0 + $0x30] sm:$0xff]  }
   0x6   :  { %2539 = vmatpush3.bf16.msra.mxu0 %v1023_v5  ;;  %2740 = vmatpush3.bf16.msra.mxu1 %v1023_v5  ;;  %v2758_v19 = vld [vmem:[%s4430_s0 + $0x1c0] sm:$0xff]   ;;  %v2759_v20 = vld [vmem:[%s4430_s0 + $0x38] sm:$0xff]   ;;  %v2760_v21 = vld [vmem:[%s4430_s0 + $0x1c8] sm:$0xff]  }
   0x7   :  { %2540 = vmatprep.subr.bf16.mxu0 %v2744_v6  ;;  %2739 = vmatprep.subr.bf16.mxu1 %v2744_v6  ;;  %v2761_v22 = vld [vmem:[%s4430_s0 + $0x40] sm:$0xff]   ;;  %v2762_v23 = vld [vmem:[%s4430_s0 + $0x1d0] sm:$0xff]   ;;  %v2763_v24 = vld [vmem:[%s4430_s0 + $0x48] sm:$0xff]  }
   0x8   :  { %v2764_v25 = vld [vmem:[%s4430_s0 + $0x1d8] sm:$0xff]   ;;  %v2765_v26 = vld [vmem:[%s4430_s0 + $0x50] sm:$0xff]   ;;  %v2766_v27 = vld [vmem:[%s4430_s0 + $0x1e0] sm:$0xff]  }
   0x9   :  { %v2767_v28 = vld [vmem:[%s4430_s0 + $0x58] sm:$0xff]   ;;  %v2768_v29 = vld [vmem:[%s4430_s0 + $0x1e8] sm:$0xff]   ;;  %v2769_v30 = vld [vmem:[%s4430_s0 + $0x60] sm:$0xff]  }
   0xa   :  { %2541 = vmatpush3.bf16.msra.mxu0 %v2744_v6  ;;  %2741 = vmatpush3.bf16.msra.mxu1 %v2744_v6  ;;  %v2770_v31 = vld [vmem:[%s4430_s0 + $0x1f0] sm:$0xff]   ;;  %v2771_v32 = vld [vmem:[%s4430_s0 + $0x68] sm:$0xff]   ;;  %v2772_v33 = vld [vmem:[%s4430_s0 + $0x1f8] sm:$0xff]  }
   0xb   :  { %v2773_v34 = vld [vmem:[%s4430_s0 + $0x70] sm:$0xff]   ;;  %v2774_v35 = vld [vmem:[%s4430_s0 + $0x200] sm:$0xff]   ;;  %v2775_v36 = vld [vmem:[%s4430_s0 + $0x78] sm:$0xff]  }
   0xc   :  { %v2776_v37 = vld [vmem:[%s4430_s0 + $0x208] sm:$0xff]   ;;  %v2777_v38 = vld [vmem:[%s4430_s0 + $0x80] sm:$0xff]   ;;  %v2778_v39 = vld [vmem:[%s4430_s0 + $0x210] sm:$0xff]  }
   0xd   :  { %2543 = vmatmul.mubr.msk.bf16.vlgmr.msra.gmra.mxu0 %vm723_vm2, %v2747_v8  ;;  %2643 = vmatmul.mubr.msk.bf16.vlgmr.msra.gmra.mxu1 %vm723_vm2, %v2748_v9  ;;  %v2779_v40 = vld [vmem:[%s4430_s0 + $0x88] sm:$0xff]   ;;  %v2780_v41 = vld [vmem:[%s4430_s0 + $0x218] sm:$0xff]   ;;  %v2781_v42 = vld [vmem:[%s4430_s0 + $0x90] sm:$0xff]  }
   0xe   :  { %2546 = vmatprep.mubr.msk.bf16.mxu0 %vm723_vm2, %v2749_v10  ;;  %2646 = vmatprep.mubr.msk.bf16.mxu1 %vm723_vm2, %v2750_v11  ;;  %v2782_v43 = vld [vmem:[%s4430_s0 + $0x220] sm:$0xff]   ;;  %v2783_v44 = vld [vmem:[%s4430_s0 + $0x98] sm:$0xff]   ;;  %v2784_v45 = vld [vmem:[%s4430_s0 + $0x228] sm:$0xff]  }
   0xf   :  { %v2785_v46 = vld [vmem:[%s4430_s0 + $0xa0] sm:$0xff]   ;;  %v2786_v47 = vld [vmem:[%s4430_s0 + $0x230] sm:$0xff]   ;;  %v2787_v48 = vld [vmem:[%s4430_s0 + $0xa8] sm:$0xff]  }
  0x10   :  { %v2788_v49 = vld [vmem:[%s4430_s0 + $0x238] sm:$0xff]   ;;  %v2789_v50 = vld [vmem:[%s4430_s0 + $0xb0] sm:$0xff]   ;;  %v2790_v51 = vld [vmem:[%s4430_s0 + $0x240] sm:$0xff]  }
  0x11   :  { %v2791_v52 = vld [vmem:[%s4430_s0 + $0xb8] sm:$0xff]   ;;  %v2792_v53 = vld [vmem:[%s4430_s0 + $0x248] sm:$0xff]   ;;  %v2793_v54 = vld [vmem:[%s4430_s0 + $0xc0] sm:$0xff]  }
  0x12   :  { %v2794_v55 = vld [vmem:[%s4430_s0 + $0x250] sm:$0xff]   ;;  %v2795_v56 = vld [vmem:[%s4430_s0 + $0xc8] sm:$0xff]   ;;  %v2796_v57 = vld [vmem:[%s4430_s0 + $0x258] sm:$0xff]  }
  0x13   :  { %v2797_v58 = vld [vmem:[%s4430_s0 + $0xd0] sm:$0xff]   ;;  %v2798_v59 = vld [vmem:[%s4430_s0 + $0x260] sm:$0xff]   ;;  %v2799_v60 = vld [vmem:[%s4430_s0 + $0xd8] sm:$0xff]  }
  0x14   :  { %v2800_v61 = vld [vmem:[%s4430_s0 + $0x268] sm:$0xff]   ;;  %v2801_v62 = vld [vmem:[%s4430_s0 + $0xe0] sm:$0xff]   ;;  %v2802_v63 = vld [vmem:[%s4430_s0 + $0x270] sm:$0xff]  }
  0x15   :  { %2547 = vmatmul.mubr.msk.bf16.gmra.mxu0 %vm723_vm2, %v2751_v12  ;;  %2647 = vmatmul.mubr.msk.bf16.gmra.mxu1 %vm723_vm2, %v2752_v13  ;;  %v2803_v0 = vld [vmem:[%s4430_s0 + $0xe8] sm:$0xff]   ;;  %v2804_v1 = vld [vmem:[%s4430_s0 + $0x278] sm:$0xff]   ;;  %v2805_v2 = vld [vmem:[%s4430_s0 + $0xf0] sm:$0xff]  }
  0x16   :  { %2550 = vmatprep.mubr.msk.bf16.mxu0 %vm723_vm2, %v2753_v14  ;;  %2650 = vmatprep.mubr.msk.bf16.mxu1 %vm723_vm2, %v2754_v15  ;;  %v2806_v3 = vld [vmem:[%s4430_s0 + $0x280] sm:$0xff]   ;;  %v2807_v4 = vld [vmem:[%s4430_s0 + $0xf8] sm:$0xff]   ;;  %v2808_v5 = vld [vmem:[%s4430_s0 + $0x288] sm:$0xff]  }
  0x17   :  { %v2809_v6 = vld [vmem:[%s4430_s0 + $0x100] sm:$0xff]   ;;  %v2810_v7 = vld [vmem:[%s4430_s0 + $0x290] sm:$0xff]   ;;  %v2811_v8 = vld [vmem:[%s4430_s0 + $0x108] sm:$0xff]  }
  0x18   :  { %v2812_v9 = vld [vmem:[%s4430_s0 + $0x298] sm:$0xff]   ;;  %v2813_v10 = vld [vmem:[%s4430_s0 + $0x110] sm:$0xff]   ;;  %v2814_v11 = vld [vmem:[%s4430_s0 + $0x2a0] sm:$0xff]  }
  0x19   :  { %v2815_v12 = vld [vmem:[%s4430_s0 + $0x118] sm:$0xff]   ;;  %v2816_v13 = vld [vmem:[%s4430_s0 + $0x2a8] sm:$0xff]   ;;  %v2817_v14 = vld [vmem:[%s4430_s0 + $0x120] sm:$0xff]  }
  0x1a   :  { %v2818_v15 = vld [vmem:[%s4430_s0 + $0x2b0] sm:$0xff]  }
  0x1d   :  { %2551 = vmatmul.mubr.msk.bf16.gmra.mxu0 %vm723_vm2, %v2755_v16  ;;  %2651 = vmatmul.mubr.msk.bf16.gmra.mxu1 %vm723_vm2, %v2756_v17  ;;  %v2819_v16 = vld [vmem:[%s4430_s0 + $0x128] sm:$0xff]   ;;  %v2820_v17 = vld [vmem:[%s4430_s0 + $0x2b8] sm:$0xff]  }
  0x1e   :  { %2554 = vmatprep.mubr.msk.bf16.mxu0 %vm723_vm2, %v2757_v18  ;;  %2654 = vmatprep.mubr.msk.bf16.mxu1 %vm723_vm2, %v2758_v19  ;;  %v2821_v18 = vld [vmem:[%s4430_s0 + $0x130] sm:$0xff]   ;;  %v2822_v19 = vld [vmem:[%s4430_s0 + $0x2c0] sm:$0xff]  }
  0x25   :  { %2555 = vmatmul.mubr.msk.bf16.gmra.mxu0 %vm723_vm2, %v2759_v20  ;;  %2655 = vmatmul.mubr.msk.bf16.gmra.mxu1 %vm723_vm2, %v2760_v21  ;;  %v2823_v20 = vld [vmem:[%s4430_s0 + $0x138] sm:$0xff]   ;;  %v2824_v21 = vld [vmem:[%s4430_s0 + $0x2c8] sm:$0xff]  }
  0x26   :  { %2558 = vmatprep.mubr.msk.bf16.mxu0 %vm723_vm2, %v2761_v22  ;;  %2658 = vmatprep.mubr.msk.bf16.mxu1 %vm723_vm2, %v2762_v23  ;;  %v2825_v22 = vld [vmem:[%s4430_s0 + $0x140] sm:$0xff]   ;;  %v2826_v23 = vld [vmem:[%s4430_s0 + $0x2d0] sm:$0xff]  }
  0x2d   :  { %2559 = vmatmul.mubr.msk.bf16.gmra.mxu0 %vm723_vm2, %v2763_v24  ;;  %2659 = vmatmul.mubr.msk.bf16.gmra.mxu1 %vm723_vm2, %v2764_v25  ;;  %v2827_v24 = vld [vmem:[%s4430_s0 + $0x148] sm:$0xff]   ;;  %v2828_v25 = vld [vmem:[%s4430_s0 + $0x2d8] sm:$0xff]  }
  0x2e   :  { %2562 = vmatprep.mubr.msk.bf16.mxu0 %vm723_vm2, %v2765_v26  ;;  %2662 = vmatprep.mubr.msk.bf16.mxu1 %vm723_vm2, %v2766_v27  ;;  %v2829_v26 = vld [vmem:[%s4430_s0 + $0x150] sm:$0xff]   ;;  %v2830_v27 = vld [vmem:[%s4430_s0 + $0x2e0] sm:$0xff]  }
  0x35   :  { %2563 = vmatmul.mubr.msk.bf16.gmra.mxu0 %vm723_vm2, %v2767_v28  ;;  %2663 = vmatmul.mubr.msk.bf16.gmra.mxu1 %vm723_vm2, %v2768_v29  ;;  %v2831_v28 = vld [vmem:[%s4430_s0 + $0x158] sm:$0xff]   ;;  %v2832_v29 = vld [vmem:[%s4430_s0 + $0x2e8] sm:$0xff]  }
  0x36   :  { %2566 = vmatprep.mubr.msk.bf16.mxu0 %vm723_vm2, %v2769_v30  ;;  %2666 = vmatprep.mubr.msk.bf16.mxu1 %vm723_vm2, %v2770_v31  ;;  %v2833_v30 = vld [vmem:[%s4430_s0 + $0x160] sm:$0xff]   ;;  %v2834_v31 = vld [vmem:[%s4430_s0 + $0x2f0] sm:$0xff]  }
  0x3d   :  { %2567 = vmatmul.mubr.msk.bf16.gmra.mxu0 %vm723_vm2, %v2771_v32  ;;  %2667 = vmatmul.mubr.msk.bf16.gmra.mxu1 %vm723_vm2, %v2772_v33  ;;  %v2835_v32 = vld [vmem:[%s4430_s0 + $0x168] sm:$0xff]   ;;  %v2836_v33 = vld [vmem:[%s4430_s0 + $0x2f8] sm:$0xff]  }
  0x3e   :  { %2570 = vmatprep.mubr.msk.bf16.mxu0 %vm723_vm2, %v2773_v34  ;;  %2670 = vmatprep.mubr.msk.bf16.mxu1 %vm723_vm2, %v2774_v35  ;;  %v2837_v34 = vld [vmem:[%s4430_s0 + $0x170] sm:$0xff]   ;;  %v2838_v35 = vld [vmem:[%s4430_s0 + $0x300] sm:$0xff]  }
  0x45   :  { %2571 = vmatmul.mubr.msk.bf16.gmra.mxu0 %vm723_vm2, %v2775_v36  ;;  %2671 = vmatmul.mubr.msk.bf16.gmra.mxu1 %vm723_vm2, %v2776_v37  ;;  %v2839_v36 = vld [vmem:[%s4430_s0 + $0x178] sm:$0xff]   ;;  %v2840_v37 = vld [vmem:[%s4430_s0 + $0x308] sm:$0xff]  }
  0x46   :  { %2574 = vmatprep.mubr.msk.bf16.mxu0 %vm723_vm2, %v2777_v38  ;;  %2674 = vmatprep.mubr.msk.bf16.mxu1 %vm723_vm2, %v2778_v39  ;;  %v2841_v38 = vld [vmem:[%s4430_s0 + $0x180] sm:$0xff]   ;;  %v2842_v39 = vld [vmem:[%s4430_s0 + $0x188] sm:$0xff]  }
  0x4d   :  { %2575 = vmatmul.mubr.msk.bf16.gmra.mxu0 %vm723_vm2, %v2779_v40  ;;  %2675 = vmatmul.mubr.msk.bf16.gmra.mxu1 %vm723_vm2, %v2780_v41 }
  0x4e   :  { %2578 = vmatprep.mubr.msk.bf16.mxu0 %vm723_vm2, %v2781_v42  ;;  %2678 = vmatprep.mubr.msk.bf16.mxu1 %vm723_vm2, %v2782_v43 }
  0x55   :  { %2579 = vmatmul.mubr.msk.bf16.gmra.mxu0 %vm723_vm2, %v2783_v44  ;;  %2679 = vmatmul.mubr.msk.bf16.gmra.mxu1 %vm723_vm2, %v2784_v45 }
  0x56   :  { %2582 = vmatprep.mubr.msk.bf16.mxu0 %vm723_vm2, %v2785_v46  ;;  %2682 = vmatprep.mubr.msk.bf16.mxu1 %vm723_vm2, %v2786_v47 }
  0x5d   :  { %2583 = vmatmul.mubr.msk.bf16.gmra.mxu0 %vm723_vm2, %v2787_v48  ;;  %2683 = vmatmul.mubr.msk.bf16.gmra.mxu1 %vm723_vm2, %v2788_v49 }
  0x5e   :  { %2586 = vmatprep.mubr.msk.bf16.mxu0 %vm723_vm2, %v2789_v50  ;;  %2686 = vmatprep.mubr.msk.bf16.mxu1 %vm723_vm2, %v2790_v51 }
  0x65   :  { %2587 = vmatmul.mubr.msk.bf16.gmra.mxu0 %vm723_vm2, %v2791_v52  ;;  %2687 = vmatmul.mubr.msk.bf16.gmra.mxu1 %vm723_vm2, %v2792_v53 }
  0x66   :  { %2590 = vmatprep.mubr.msk.bf16.mxu0 %vm723_vm2, %v2793_v54  ;;  %2690 = vmatprep.mubr.msk.bf16.mxu1 %vm723_vm2, %v2794_v55 }
  0x6d   :  { %2591 = vmatmul.mubr.msk.bf16.gmra.mxu0 %vm723_vm2, %v2795_v56  ;;  %2691 = vmatmul.mubr.msk.bf16.gmra.mxu1 %vm723_vm2, %v2796_v57 }
  0x6e   :  { %2594 = vmatprep.mubr.msk.bf16.mxu0 %vm723_vm2, %v2797_v58  ;;  %2694 = vmatprep.mubr.msk.bf16.mxu1 %vm723_vm2, %v2798_v59 }
  0x75   :  { %2595 = vmatmul.mubr.msk.bf16.gmra.mxu0 %vm723_vm2, %v2799_v60  ;;  %2695 = vmatmul.mubr.msk.bf16.gmra.mxu1 %vm723_vm2, %v2800_v61 }
  0x76   :  { %2598 = vmatprep.mubr.msk.bf16.mxu0 %vm723_vm2, %v2801_v62  ;;  %2698 = vmatprep.mubr.msk.bf16.mxu1 %vm723_vm2, %v2802_v63 }
  0x7d   :  { %2599 = vmatmul.mubr.msk.bf16.gmra.mxu0 %vm723_vm2, %v2803_v0  ;;  %2699 = vmatmul.mubr.msk.bf16.gmra.mxu1 %vm723_vm2, %v2804_v1 }
  0x7e   :  { %2602 = vmatprep.mubr.msk.bf16.mxu0 %vm723_vm2, %v2805_v2  ;;  %2702 = vmatprep.mubr.msk.bf16.mxu1 %vm723_vm2, %v2806_v3 }
  0x85   :  { %2603 = vmatmul.mubr.msk.bf16.gmra.mxu0 %vm723_vm2, %v2807_v4  ;;  %2703 = vmatmul.mubr.msk.bf16.gmra.mxu1 %vm723_vm2, %v2808_v5 }
  0x86   :  { %2606 = vmatprep.mubr.msk.bf16.mxu0 %vm723_vm2, %v2809_v6  ;;  %2706 = vmatprep.mubr.msk.bf16.mxu1 %vm723_vm2, %v2810_v7 }
  0x8d   :  { %2607 = vmatmul.mubr.msk.bf16.gmra.mxu0 %vm723_vm2, %v2811_v8  ;;  %2707 = vmatmul.mubr.msk.bf16.gmra.mxu1 %vm723_vm2, %v2812_v9 }
  0x8e   :  { %2610 = vmatprep.mubr.msk.bf16.mxu0 %vm723_vm2, %v2813_v10  ;;  %2710 = vmatprep.mubr.msk.bf16.mxu1 %vm723_vm2, %v2814_v11 }
  0x95   :  { %2611 = vmatmul.mubr.msk.bf16.gmra.mxu0 %vm723_vm2, %v2815_v12  ;;  %2711 = vmatmul.mubr.msk.bf16.gmra.mxu1 %vm723_vm2, %v2816_v13 }
  0x96   :  { %2614 = vmatprep.mubr.msk.bf16.mxu0 %vm723_vm2, %v2817_v14  ;;  %2714 = vmatprep.mubr.msk.bf16.mxu1 %vm723_vm2, %v2818_v15 }
  0x9d   :  { %2615 = vmatmul.mubr.msk.bf16.gmra.mxu0 %vm723_vm2, %v2819_v16  ;;  %2715 = vmatmul.mubr.msk.bf16.gmra.mxu1 %vm723_vm2, %v2820_v17 }
  0x9e   :  { %2618 = vmatprep.mubr.msk.bf16.mxu0 %vm723_vm2, %v2821_v18  ;;  %2718 = vmatprep.mubr.msk.bf16.mxu1 %vm723_vm2, %v2822_v19 }
  0xa5   :  { %2619 = vmatmul.mubr.msk.bf16.gmra.mxu0 %vm723_vm2, %v2823_v20  ;;  %2719 = vmatmul.mubr.msk.bf16.gmra.mxu1 %vm723_vm2, %v2824_v21 }
  0xa6   :  { %2622 = vmatprep.mubr.msk.bf16.mxu0 %vm723_vm2, %v2825_v22  ;;  %2722 = vmatprep.mubr.msk.bf16.mxu1 %vm723_vm2, %v2826_v23 }
  0xad   :  { %2623 = vmatmul.mubr.msk.bf16.gmra.mxu0 %vm723_vm2, %v2827_v24  ;;  %2723 = vmatmul.mubr.msk.bf16.gmra.mxu1 %vm723_vm2, %v2828_v25 }
  0xae   :  { %2626 = vmatprep.mubr.msk.bf16.mxu0 %vm723_vm2, %v2829_v26  ;;  %2726 = vmatprep.mubr.msk.bf16.mxu1 %vm723_vm2, %v2830_v27 }
  0xb5   :  { %2627 = vmatmul.mubr.msk.bf16.gmra.mxu0 %vm723_vm2, %v2831_v28  ;;  %2727 = vmatmul.mubr.msk.bf16.gmra.mxu1 %vm723_vm2, %v2832_v29 }
  0xb6   :  { %2630 = vmatprep.mubr.msk.bf16.mxu0 %vm723_vm2, %v2833_v30  ;;  %2730 = vmatprep.mubr.msk.bf16.mxu1 %vm723_vm2, %v2834_v31 }
  0xbd   :  { %2631 = vmatmul.mubr.msk.bf16.gmra.mxu0 %vm723_vm2, %v2835_v32  ;;  %2731 = vmatmul.mubr.msk.bf16.gmra.mxu1 %vm723_vm2, %v2836_v33 }
  0xbe   :  { %2634 = vmatprep.mubr.msk.bf16.mxu0 %vm723_vm2, %v2837_v34  ;;  %2734 = vmatprep.mubr.msk.bf16.mxu1 %vm723_vm2, %v2838_v35 }
  0xc5   :  { %2635 = vmatmul.mubr.msk.bf16.gmra.mxu0 %vm723_vm2, %v2839_v36  ;;  %2735 = vmatmul.mubr.msk.bf16.gmra.mxu1 %vm723_vm2, %v2840_v37 }
  0xc6   :  { %2638 = vmatprep.mubr.msk.bf16.mxu0 %vm723_vm2, %v2841_v38  ;;  %v3390_v38 = vld [vmem:[%s4431_s2] ss:$0 sm:$0xff] }
  0xcd   :  { %v3262_v40 = vpop.f32.mrf.mxu0  ;;  %2639 = vmatmul.mubr.msk.bf16.gmra.mxu0 %vm723_vm2, %v2842_v39  ;;  %v3265_v41 = vpop.f32.mrf.mxu1 }
  0xcf   :  { %v3267_v42 = vpop.f32.mrf.mxu0  ;;  %v3269_v43 = vpop.f32.mrf.mxu1 }
  0xd1   :  { %v3271_v44 = vpop.f32.mrf.mxu0  ;;  %v3273_v45 = vpop.f32.mrf.mxu1 }
  0xd3   :  { %v3275_v46 = vpop.f32.mrf.mxu0  ;;  %v3277_v47 = vpop.f32.mrf.mxu1 }
  0xd5   :  { %v3279_v48 = vpop.f32.mrf.mxu0  ;;  %v3281_v49 = vpop.f32.mrf.mxu1 }
  0xd7   :  { %v3283_v50 = vpop.f32.mrf.mxu0  ;;  %v3285_v51 = vpop.f32.mrf.mxu1 }
  0xd9   :  { %v3287_v52 = vpop.f32.mrf.mxu0  ;;  %v3289_v53 = vpop.f32.mrf.mxu1 }
  0xdb   :  { %v3291_v54 = vpop.f32.mrf.mxu0  ;;  %v3293_v55 = vpop.f32.mrf.mxu1 }
  0xdd   :  { %v3295_v56 = vpop.f32.mrf.mxu0  ;;  %v3297_v57 = vpop.f32.mrf.mxu1 }
  0xdf   :  { %v3299_v58 = vpop.f32.mrf.mxu0  ;;  %v3301_v59 = vpop.f32.mrf.mxu1 }
  0xe1   :  { %v3303_v60 = vpop.f32.mrf.mxu0  ;;  %v3305_v61 = vpop.f32.mrf.mxu1 }
  0xe3   :  { %v3307_v62 = vpop.f32.mrf.mxu0  ;;  %v3309_v63 = vpop.f32.mrf.mxu1 }
  0xe5   :  { %v3311_v0 = vpop.f32.mrf.mxu0  ;;  %v3313_v1 = vpop.f32.mrf.mxu1 }
  0xe7   :  { %v3315_v2 = vpop.f32.mrf.mxu0  ;;  %v3317_v3 = vpop.f32.mrf.mxu1 }
  0xe9   :  { %v3319_v4 = vpop.f32.mrf.mxu0  ;;  %v3321_v5 = vpop.f32.mrf.mxu1 }
  0xeb   :  { %v3323_v6 = vpop.f32.mrf.mxu0  ;;  %v3325_v7 = vpop.f32.mrf.mxu1 }
  0xed   :  { %v3327_v8 = vpop.f32.mrf.mxu0  ;;  %v3329_v9 = vpop.f32.mrf.mxu1 }
  0xef   :  { %v3331_v10 = vpop.f32.mrf.mxu0  ;;  %v3333_v11 = vpop.f32.mrf.mxu1 }
  0xf1   :  { %v3335_v12 = vpop.f32.mrf.mxu0  ;;  %v3337_v13 = vpop.f32.mrf.mxu1 }
  0xf3   :  { %v3339_v14 = vpop.f32.mrf.mxu0  ;;  %v3341_v15 = vpop.f32.mrf.mxu1 }
  0xf5   :  { %v3343_v16 = vpop.f32.mrf.mxu0  ;;  %v3345_v17 = vpop.f32.mrf.mxu1 }
  0xf7   :  { %v3347_v18 = vpop.f32.mrf.mxu0  ;;  %v3349_v19 = vpop.f32.mrf.mxu1 }
  0xf9   :  { %v3351_v20 = vpop.f32.mrf.mxu0  ;;  %v3353_v21 = vpop.f32.mrf.mxu1 }
  0xfb   :  { %v3355_v22 = vpop.f32.mrf.mxu0  ;;  %v3357_v23 = vpop.f32.mrf.mxu1 }
  0xfd   :  { %v3359_v24 = vpop.f32.mrf.mxu0  ;;  %v3361_v25 = vpop.f32.mrf.mxu1 }
  0xff   :  { %v3363_v26 = vpop.f32.mrf.mxu0  ;;  %v3365_v27 = vpop.f32.mrf.mxu1 }
 0x101   :  { %v3367_v28 = vpop.f32.mrf.mxu0  ;;  %v3369_v29 = vpop.f32.mrf.mxu1 }
 0x103   :  { %v3371_v30 = vpop.f32.mrf.mxu0  ;;  %v3373_v31 = vpop.f32.mrf.mxu1 }
 0x104   :  { %4476 = vst [vmem:[#allocation2_spill] sm:$0xff] %v3373_v31 }
 0x105   :  { %v3375_v32 = vpop.f32.mrf.mxu0  ;;  %v3377_v33 = vpop.f32.mrf.mxu1 }
 0x106   :  { %4477 = vst [vmem:[#allocation3_spill] sm:$0xff] %v3375_v32  ;;  %4478 = vst [vmem:[#allocation4_spill] sm:$0xff] %v3377_v33 }
 0x107   :  { %v3379_v34 = vpop.f32.mrf.mxu0  ;;  %v3381_v35 = vpop.f32.mrf.mxu1 }
 0x108   :  { %4479 = vst [vmem:[#allocation5_spill] sm:$0xff] %v3379_v34  ;;  %4480 = vst [vmem:[#allocation6_spill] sm:$0xff] %v3381_v35  ;;  %v3402_v35 = vadd.f32 %v3262_v40, %v3390_v38  ;;  %v3422_v40 = vadd.f32 %v3271_v44, %v3390_v38  ;;  %v3441_v44 = vadd.f32 %v3390_v38, %v3277_v47 }
 0x109   :  { %v3383_v36 = vpop.f32.mrf.mxu0  ;;  %v3385_v37 = vpop.f32.mrf.mxu1  ;;  %v3480_v47 = vadd.f32 %v3390_v38, %v3293_v55  ;;  %v3515_v55 = vadd.f32 %v3303_v60, %v3390_v38 }
 0x10a   :  { %4481 = vst [vmem:[#allocation7_spill] sm:$0xff] %v3383_v36  ;;  %4482 = vst [vmem:[#allocation8_spill] sm:$0xff] %v3385_v37  ;;  %v3406_v37 = vadd.f32 %v3265_v41, %v3390_v38  ;;  %v3410_v36 = vadd.f32 %v3390_v38, %v3267_v42  ;;  %v3426_v41 = vadd.f32 %v3273_v45, %v3390_v38 }
 0x10b   :  { %v3392_v39 = vpop.f32.mrf.mxu0  ;;  %v3394_v31 = vpop.f32.mrf.mxu1  ;;  %4487 = vst [vmem:[#allocation13_spill] sm:$0xff] %v3402_v35  ;;  %4493 = vst [vmem:[#allocation19_spill] sm:$0xff] %v3422_v40  ;;  %v3445_v45 = vadd.f32 %v3279_v48, %v3390_v38  ;;  %v3463_v48 = vadd.f32 %v3390_v38, %v3285_v51  ;;  %v3533_v40 = vadd.f32 %v3390_v38, %v3307_v62 }
 0x10c   :  { %4483 = vst [vmem:[#allocation9_spill] sm:$0xff] %v3392_v39  ;;  %4484 = vst [vmem:[#allocation10_spill] sm:$0xff] %v3394_v31 }
 0x10d   :  { %v3396_v32 = vpop.f32.mrf.mxu0  ;;  %v3398_v33 = vpop.f32.mrf.mxu1  ;;  %4488 = vst [vmem:[#allocation14_spill] sm:$0xff] %v3406_v37  ;;  %4489 = vst [vmem:[#allocation15_spill] sm:$0xff] %v3410_v36  ;;  %v3476_v36 = vadd.f32 %v3390_v38, %v3291_v54  ;;  %v3489_v37 = vadd.f32 %v3295_v56, %v3390_v38  ;;  %v3497_v54 = vadd.f32 %v3390_v38, %v3299_v58 }
 0x10e   :  { %4485 = vst [vmem:[#allocation11_spill] sm:$0xff] %v3396_v32  ;;  %4486 = vst [vmem:[#allocation12_spill] sm:$0xff] %v3398_v33  ;;  %v3418_v32 = vadd.f32 %v3390_v38, %v3269_v43  ;;  %v3437_v43 = vadd.f32 %v3390_v38, %v3275_v46  ;;  %v3511_v58 = vadd.f32 %v3390_v38, %v3301_v59 }
 0x10f   :  { %v3412_v34 = vpop.f32.mrf.mxu0  ;;  %v3414_v39 = vpop.f32.mrf.mxu1  ;;  %4494 = vst [vmem:[#allocation20_spill] sm:$0xff] %v3426_v41  ;;  %4499 = vst [vmem:[#allocation25_spill] sm:$0xff] %v3515_v55  ;;  %v3537_v41 = vadd.f32 %v3390_v38, %v3309_v63  ;;  %v3576_v63 = vadd.f32 %v3390_v38, %v3325_v7  ;;  %v3611_v7 = vadd.f32 %v3335_v12, %v3390_v38 }
 0x110   :  { %4490 = vst [vmem:[#allocation16_spill] sm:$0xff] %v3412_v34  ;;  %4491 = vst [vmem:[#allocation17_spill] sm:$0xff] %v3414_v39  ;;  %v3453_v39 = vadd.f32 %v3390_v38, %v3283_v50  ;;  %v3472_v50 = vadd.f32 %v3289_v53, %v3390_v38  ;;  %v3493_v53 = vadd.f32 %v3297_v57, %v3390_v38 }
 0x111   :  { %4492 = vst [vmem:[#allocation18_spill] sm:$0xff] %v3418_v32  ;;  %v3428_v33 = vpop.f32.mrf.mxu0  ;;  %v3430_v42 = vpop.f32.mrf.mxu1 }
 0x112   :  { %4495 = vst [vmem:[#allocation21_spill] sm:$0xff] %v3430_v42  ;;  %v3449_v42 = vadd.f32 %v3281_v49, %v3390_v38  ;;  %v3467_v49 = vadd.f32 %v3287_v52, %v3390_v38  ;;  %4498 = vst [vmem:[#allocation24_spill] sm:$0xff] %v3493_v53  ;;  %v3545_v52 = vadd.f32 %v3313_v1, %v3390_v38 }
 0x113   :  { %v3455_v31 = vpop.f32.mrf.mxu0  ;;  %v3457_v46 = vpop.f32.mrf.mxu1  ;;  %v3563_v1 = vadd.f32 %v3319_v4, %v3390_v38  ;;  %v3585_v53 = vadd.f32 %v3327_v8, %v3390_v38  ;;  %v3641_v4 = vadd.f32 %v3345_v17, %v3390_v38  ;;  %v3659_v17 = vadd.f32 %v3351_v20, %v3390_v38  ;;  %v4531_v20 = vld [vmem:[#allocation2_spill] sm:$0xff] }
 0x114   :  { %4496 = vst [vmem:[#allocation22_spill] sm:$0xff] %v3449_v42  ;;  %4497 = vst [vmem:[#allocation23_spill] sm:$0xff] %v3467_v49  ;;  %v3522_v42 = vadd.f32 %v3305_v61, %v3390_v38  ;;  %v3541_v61 = vadd.f32 %v3311_v0, %v3390_v38  ;;  %v3549_v49 = vadd.f32 %v3390_v38, %v3315_v2 }
 0x115   :  { %v3482_v51 = vpop.f32.mrf.mxu0  ;;  %v3484_v34 = vpop.f32.mrf.mxu1  ;;  %v3559_v0 = vadd.f32 %v3390_v38, %v3317_v3  ;;  %v3568_v2 = vadd.f32 %v3321_v5, %v3390_v38  ;;  %v3589_v5 = vadd.f32 %v3329_v9, %v3390_v38  ;;  %4510 = vst [vmem:[#allocation36_spill] sm:$0xff] %v3641_v4  ;;  %4515 = vst [vmem:[#allocation41_spill] sm:$0xff] %v3659_v17 }
 0x116   :  { %4500 = vst [vmem:[#allocation26_spill] sm:$0xff] %v3522_v42 }
 0x117   :  { %v3503_v32 = vpop.f32.mrf.mxu0  ;;  %v3505_v56 = vpop.f32.mrf.mxu1  ;;  %4504 = vst [vmem:[#allocation30_spill] sm:$0xff] %v3589_v5 }
 0x119   :  { %v3524_v35 = vpop.f32.mrf.mxu0  ;;  %v3526_v57 = vpop.f32.mrf.mxu1 }
 0x11b   :  { %v3551_v60 = vpop.f32.mrf.mxu0  ;;  %v3553_v62 = vpop.f32.mrf.mxu1 }
 0x11c   :  { %4501 = vst [vmem:[#allocation27_spill] sm:$0xff] %v3553_v62  ;;  %v3572_v62 = vadd.f32 %v3390_v38, %v3323_v6  ;;  %v3593_v6 = vadd.f32 %v3390_v38, %v3331_v10  ;;  %v3607_v10 = vadd.f32 %v3390_v38, %v3333_v11 }
 0x11d   :  { %v3578_v3 = vpop.f32.mrf.mxu0  ;;  %v3580_v59 = vpop.f32.mrf.mxu1 }
 0x11e   :  { %4502 = vst [vmem:[#allocation28_spill] sm:$0xff] %v3578_v3  ;;  %4503 = vst [vmem:[#allocation29_spill] sm:$0xff] %v3580_v59  ;;  %v3629_v59 = vadd.f32 %v3390_v38, %v3339_v14  ;;  %v3633_v3 = vadd.f32 %v3390_v38, %v3341_v15  ;;  %v3672_v15 = vadd.f32 %v3390_v38, %v3357_v23 }
 0x11f   :  { %v3599_v42 = vpop.f32.mrf.mxu0  ;;  %v3601_v8 = vpop.f32.mrf.mxu1  ;;  %v3707_v23 = vadd.f32 %v3367_v28, %v3390_v38 }
 0x120   :  { %4505 = vst [vmem:[#allocation31_spill] sm:$0xff] %v3599_v42  ;;  %4506 = vst [vmem:[#allocation32_spill] sm:$0xff] %v3601_v8  ;;  %v3618_v8 = vadd.f32 %v3337_v13, %v3390_v38  ;;  %v3637_v13 = vadd.f32 %v3343_v16, %v3390_v38  ;;  %v3645_v42 = vadd.f32 %v3390_v38, %v3347_v18 }
 0x121   :  { %v3620_v55 = vpop.f32.mrf.mxu0  ;;  %v3622_v9 = vpop.f32.mrf.mxu1  ;;  %v3655_v16 = vadd.f32 %v3390_v38, %v3349_v19  ;;  %v3664_v18 = vadd.f32 %v3353_v21, %v3390_v38  ;;  %4517 = vst [vmem:[#allocation43_spill] sm:$0xff] %v3672_v15  ;;  %v3685_v21 = vadd.f32 %v3361_v25, %v3390_v38  ;;  %4526 = vst [vmem:[#allocation52_spill] sm:$0xff] %v3707_v23 }
 0x122   :  { %4507 = vst [vmem:[#allocation33_spill] sm:$0xff] %v3620_v55  ;;  %4508 = vst [vmem:[#allocation34_spill] sm:$0xff] %v3622_v9  ;;  %v3681_v9 = vadd.f32 %v3359_v24, %v3390_v38 }
 0x123   :  { %4509 = vst [vmem:[#allocation35_spill] sm:$0xff] %v3637_v13  ;;  %4511 = vst [vmem:[#allocation37_spill] sm:$0xff] %v3645_v42  ;;  %v3647_v12 = vpop.f32.mrf.mxu0  ;;  %v3649_v14 = vpop.f32.mrf.mxu1  ;;  %v4557_v42 = vld [vmem:[#allocation17_spill] sm:$0xff] }
 0x124   :  { %4512 = vst [vmem:[#allocation38_spill] sm:$0xff] %v3647_v12  ;;  %4513 = vst [vmem:[#allocation39_spill] sm:$0xff] %v3649_v14  ;;  %v3668_v14 = vadd.f32 %v3390_v38, %v3355_v22  ;;  %v3689_v22 = vadd.f32 %v3390_v38, %v3363_v26  ;;  %v3703_v26 = vadd.f32 %v3390_v38, %v3365_v27  ;;  %v4536_v27 = vld [vmem:[#allocation5_spill] sm:$0xff] }
 0x125   :  { %4514 = vst [vmem:[#allocation40_spill] sm:$0xff] %v3655_v16  ;;  %4516 = vst [vmem:[#allocation42_spill] sm:$0xff] %v3664_v18  ;;  %v3674_v19 = vpop.f32.mrf.mxu0  ;;  %v3676_v11 = vpop.f32.mrf.mxu1  ;;  %v4551_v18 = vld [vmem:[#allocation12_spill] sm:$0xff] }
 0x126   :  { %4518 = vst [vmem:[#allocation44_spill] sm:$0xff] %v3674_v19  ;;  %4519 = vst [vmem:[#allocation45_spill] sm:$0xff] %v3676_v11  ;;  %v3725_v11 = vadd.f32 %v3390_v38, %v3371_v30  ;;  %v3729_v19 = vadd.f32 %v3390_v38, %v4531_v20 }
 0x127   :  { %4520 = vst [vmem:[#allocation46_spill] sm:$0xff] %v3681_v9  ;;  %4521 = vst [vmem:[#allocation47_spill] sm:$0xff] %v3685_v21  ;;  %v3695_v12 = vpop.f32.mrf.mxu0  ;;  %v3697_v24 = vpop.f32.mrf.mxu1  ;;  %v4542_v9 = vld [vmem:[#allocation7_spill] sm:$0xff]  ;;  %v4547_v21 = vld [vmem:[#allocation10_spill] sm:$0xff] }
 0x128   :  { %4522 = vst [vmem:[#allocation48_spill] sm:$0xff] %v3689_v22  ;;  %4523 = vst [vmem:[#allocation49_spill] sm:$0xff] %v3695_v12  ;;  %v3741_v12 = vadd.f32 %v3390_v38, %v4536_v27  ;;  %v4540_v22 = vld [vmem:[#allocation6_spill] sm:$0xff]  ;;  %v4544_v27 = vld [vmem:[#allocation8_spill] sm:$0xff]  ;;  %v3768_v20 = vadd.f32 %v3390_v38, %v4547_v21 }
 0x129   :  { %4524 = vst [vmem:[#allocation50_spill] sm:$0xff] %v3697_v24  ;;  %4525 = vst [vmem:[#allocation51_spill] sm:$0xff] %v3703_v26  ;;  %v3714_v24 = vadd.f32 %v3369_v29, %v3390_v38  ;;  %v3716_v55 = vpop.f32.mrf.mxu0  ;;  %v3718_v25 = vpop.f32.mrf.mxu1  ;;  %v4532_v29 = vld [vmem:[#allocation3_spill] sm:$0xff]  ;;  %v3760_v17 = vadd.f32 %v4544_v27, %v3390_v38  ;;  %v3777_v27 = vadd.f32 %v4551_v18, %v3390_v38  ;;  %v4555_v18 = vld [vmem:[#allocation16_spill] sm:$0xff] }
 0x12a   :  { %4528 = vst [vmem:[#allocation54_spill] sm:$0xff] %v3716_v55  ;;  %4529 = vst [vmem:[#allocation55_spill] sm:$0xff] %v3718_v25  ;;  %v3733_v4 = vadd.f32 %v4532_v29, %v3390_v38  ;;  %v4534_v25 = vld [vmem:[#allocation4_spill] sm:$0xff]  ;;  %v3751_v29 = vadd.f32 %v3390_v38, %v4540_v22  ;;  %v3792_v5 = vadd.f32 %v3390_v38, %v4555_v18  ;;  %v4560_v18 = vmax.f32 %v3437_v43, 0.0  ;;  %v4562_v21 = vld [vmem:[#allocation21_spill] sm:$0xff] }
 0x12b   :  { %4527 = vst [vmem:[#allocation53_spill] sm:$0xff] %v3714_v24  ;;  %4530 = vst [vmem:[#allocation56_spill] sm:$0xff] %v3725_v11  ;;  %v3737_v55 = vadd.f32 %v4534_v25, %v3390_v38  ;;  %v3743_v28 = vpop.f32.mrf.mxu0  ;;  %v3745_v30 = vpop.f32.mrf.mxu1  ;;  %v3755_v25 = vadd.f32 %v4542_v9, %v3390_v38  ;;  %v4549_v9 = vld [vmem:[#allocation11_spill] sm:$0xff]  ;;  %v3813_v16 = vadd.f32 %v4562_v21, %v3390_v38 }
 0x12c   :  { %4533 = vst [vmem:[#allocation2_spill] sm:$0xff] %v3733_v4  ;;  %4537 = vst [vmem:[#allocation4_spill] sm:$0xff] %v3741_v12  ;;  %v3773_v15 = vadd.f32 %v4549_v9, %v3390_v38  ;;  %v3821_v11 = vadd.f32 %v3390_v38, %v3457_v46  ;;  %v3834_v46 = vadd.f32 %v3484_v34, %v3390_v38 }
 0x12d   :  { %4535 = vst [vmem:[#allocation3_spill] sm:$0xff] %v3737_v55  ;;  %4538 = vst [vmem:[#allocation5_spill] sm:$0xff] %v3743_v28  ;;  %v4546_v28 = vld [vmem:[#allocation9_spill] sm:$0xff]  ;;  %v2592_v22 = vpop.f32.mrf.mxu0  ;;  %v2692_v23 = vpop.f32.mrf.mxu1 }
 0x12e   :  { %4539 = vst [vmem:[#allocation57_spill] sm:$0xff] %v3745_v30  ;;  %4541 = vst [vmem:[#allocation6_spill] sm:$0xff] %v3751_v29  ;;  %v3764_v30 = vadd.f32 %v3390_v38, %v4546_v28  ;;  %v1260_v24 = vadd.f32 %v2592_v22, %v3390_v38 }
 0x12f   :  { %4543 = vst [vmem:[#allocation7_spill] sm:$0xff] %v3755_v25  ;;  %4545 = vst [vmem:[#allocation8_spill] sm:$0xff] %v3760_v17  ;;  %v3784_v13 = vpop.f32.mrf.mxu0  ;;  %v3786_v26 = vpop.f32.mrf.mxu1 }
 0x130   :  { %4548 = vst [vmem:[#allocation9_spill] sm:$0xff] %v3768_v20  ;;  %4550 = vst [vmem:[#allocation10_spill] sm:$0xff] %v3773_v15  ;;  %v1892_v22 = vmax.f32 %v1260_v24, 0.0  ;;  %v3805_v24 = vadd.f32 %v3428_v33, %v3390_v38 }
 0x131   :  { %4552 = vst [vmem:[#allocation11_spill] sm:$0xff] %v3777_v27  ;;  %4553 = vst [vmem:[#allocation12_spill] sm:$0xff] %v3784_v13  ;;  %v3799_v13 = vadd.f32 %v3390_v38, %v4557_v42  ;;  %v2693_v55 = vpop.f32.mrf.mxu1  ;;  %v3817_v42 = vadd.f32 %v3390_v38, %v3455_v31 }
 0x132   :  { %4554 = vst [vmem:[#allocation58_spill] sm:$0xff] %v3786_v26  ;;  %4556 = vst [vmem:[#allocation16_spill] sm:$0xff] %v3792_v5  ;;  %v2593_v26 = vpop.f32.mrf.mxu0  ;;  %v3809_v28 = vmax.f32 %v4560_v18, %v1892_v22  ;;  %v3827_v22 = vadd.f32 %v3482_v51, %v3390_v38  ;;  %v1663_v43 = vadd.f32 %v2693_v55, %v3390_v38  ;;  %v4570_v55 = vld [vmem:[#allocation15_spill] sm:$0xff] }
 0x133   :  { %4558 = vst [vmem:[#allocation17_spill] sm:$0xff] %v3799_v13  ;;  %4559 = vst [vmem:[#allocation59_spill] sm:$0xff] %v3805_v24  ;;  %v1263_v9 = vadd.f32 %v2593_v26, %v3390_v38  ;;  %v1654_v27 = vpop.f32.mrf.mxu1  ;;  %v1660_v26 = vadd.f32 %v2692_v23, %v3390_v38 }
 0x134   :  { %4561 = vst [vmem:[#allocation60_spill] sm:$0xff] %v3809_v28  ;;  %4563 = vst [vmem:[#allocation21_spill] sm:$0xff] %v3813_v16  ;;  %v1254_v33 = vpop.f32.mrf.mxu0  ;;  %v1655_v18 = vadd.f32 %v3390_v38, %v1654_v27 }
 0x135   :  { %4564 = vst [vmem:[#allocation61_spill] sm:$0xff] %v3817_v42  ;;  %4565 = vst [vmem:[#allocation62_spill] sm:$0xff] %v3821_v11  ;;  %v1255_v21 = vadd.f32 %v3390_v38, %v1254_v33  ;;  %v1893_v28 = vmax.f32 %v1263_v9, 0.0  ;;  %v2696_v17 = vpop.f32.mrf.mxu1  ;;  %v4568_v9 = vld [vmem:[#allocation13_spill] sm:$0xff]  ;;  %v1992_v24 = vmax.f32 %v1660_v26, 0.0 }
 0x136   :  { %4566 = vst [vmem:[#allocation63_spill] sm:$0xff] %v3827_v22  ;;  %4567 = vst [vmem:[#allocation64_spill] sm:$0xff] %v3834_v46  ;;  %v2596_v15 = vpop.f32.mrf.mxu0  ;;  %v1991_v51 = vmax.f32 %v1655_v18, 0.0  ;;  %v4569_v29 = vmax.f32 %v4568_v9, 0.0  ;;  %v1993_v22 = vmax.f32 %v1663_v43, 0.0 }
 0x137   :  { %v1891_v5 = vmax.f32 %v1255_v21, 0.0  ;;  %v1276_v25 = vadd.f32 %v2596_v15, %v3390_v38  ;;  %v1667_v20 = vpop.f32.mrf.mxu1  ;;  %v4571_v21 = vmax.f32 %v4570_v55, 0.0  ;;  %v4573_v15 = vld [vmem:[#allocation18_spill] sm:$0xff]  ;;  %v4579_v55 = vld [vmem:[#allocation20_spill] sm:$0xff] }
 0x138   :  { %v1267_v13 = vpop.f32.mrf.mxu0  ;;  %v2040_v12 = vmax.f32 %v4569_v29, %v1893_v28  ;;  %v4574_v4 = vmax.f32 %v4573_v15, 0.0  ;;  %v1668_v34 = vadd.f32 %v3390_v38, %v1667_v20  ;;  %v3863_v20 = vadd.f32 %v3390_v38, %v3505_v56 }
 0x139   :  { %v3848_v18 = vmax.f32 %v4571_v21, %v1891_v5  ;;  %v1896_v27 = vmax.f32 %v1276_v25, 0.0  ;;  %v1268_v31 = vadd.f32 %v3390_v38, %v1267_v13  ;;  %v2697_v11 = vpop.f32.mrf.mxu1  ;;  %v3858_v5 = vadd.f32 %v3390_v38, %v3503_v32 }
 0x13a   :  { %v2089_v33 = vmax.f32 %v4574_v4, %v1991_v51  ;;  %v2597_v16 = vpop.f32.mrf.mxu0  ;;  %v1676_v4 = vadd.f32 %v2696_v17, %v3390_v38  ;;  %v1994_v25 = vmax.f32 %v1668_v34, 0.0  ;;  %v4575_v17 = vmax.f32 %v3441_v44, 0.0 }
 0x13b   :  { %4572 = vst [vmem:[#allocation13_spill] sm:$0xff] %v3848_v18  ;;  %v1279_v29 = vadd.f32 %v2597_v16, %v3390_v38  ;;  %v1894_v28 = vmax.f32 %v1268_v31, 0.0  ;;  %v1670_v13 = vpop.f32.mrf.mxu1  ;;  %v4576_v31 = vmax.f32 %v3476_v36, 0.0  ;;  %v4580_v21 = vmax.f32 %v4579_v55, 0.0 }
 0x13c   :  { %v2138_v9 = vmax.f32 %v2040_v12, %v2089_v33  ;;  %v1270_v26 = vpop.f32.mrf.mxu0  ;;  %v1671_v32 = vadd.f32 %v3390_v38, %v1670_v13  ;;  %v2090_v43 = vmax.f32 %v4575_v17, %v1992_v24  ;;  %v4577_v33 = vld [vmem:[#allocation19_spill] sm:$0xff]  ;;  %v1996_v44 = vmax.f32 %v1676_v4, 0.0 }
 0x13d   :  { %v1897_v12 = vmax.f32 %v1279_v29, 0.0  ;;  %v1271_v16 = vadd.f32 %v3390_v38, %v1270_v26  ;;  %v2043_v51 = vmax.f32 %v4576_v31, %v1896_v27  ;;  %v4578_v34 = vmax.f32 %v4577_v33, 0.0  ;;  %v2700_v18 = vpop.f32.mrf.mxu1 }
 0x13e   :  { %2188 = vst.msk [vmem:[%s4432_s3 + $0x10] sm:$0xff] %vm2185_vm3, %v2138_v9  ;;  %v2092_v15 = vmax.f32 %v4580_v21, %v1994_v25  ;;  %v2600_v23 = vpop.f32.mrf.mxu0  ;;  %v4581_v9 = vld [vmem:[#allocation14_spill] sm:$0xff]  ;;  %v1995_v42 = vmax.f32 %v1671_v32, 0.0  ;;  %v1679_v36 = vadd.f32 %v2697_v11, %v3390_v38  ;;  %v4584_v25 = vmax.f32 %v3453_v39, 0.0 }
 0x13f   :  { %v2041_v56 = vmax.f32 %v4578_v34, %v1894_v28  ;;  %v4582_v29 = vmax.f32 %v4581_v9, 0.0  ;;  %v1895_v26 = vmax.f32 %v1271_v16, 0.0  ;;  %v1292_v13 = vadd.f32 %v2600_v23, %v3390_v38  ;;  %v1683_v31 = vpop.f32.mrf.mxu1 }
 0x140   :  { %v2141_v17 = vmax.f32 %v2043_v51, %v2092_v15  ;;  %v1283_v27 = vpop.f32.mrf.mxu0  ;;  %v4583_v28 = vmax.f32 %v3445_v45, 0.0  ;;  %v4585_v55 = vmax.f32 %v3463_v48, 0.0  ;;  %v1878_v23 = vmax.f32 %v3858_v5, 0.0 }
 0x141   :  { %v2091_v46 = vmax.f32 %v4582_v29, %v1993_v22  ;;  %v2139_v24 = vmax.f32 %v2041_v56, %v2090_v43  ;;  %v2042_v34 = vmax.f32 %v4584_v25, %v1895_v26  ;;  %v1284_v16 = vadd.f32 %v3390_v38, %v1283_v27  ;;  %v2701_v11 = vpop.f32.mrf.mxu1 }
 0x142   :  { %v2044_v33 = vmax.f32 %v4583_v28, %v1897_v12  ;;  %v2093_v22 = vmax.f32 %v4585_v55, %v1995_v42  ;;  %v1978_v4 = vmax.f32 %v3863_v20, 0.0  ;;  %2191 = vst.msk [vmem:[%s4432_s3 + $0x28] sm:$0xff] %vm2185_vm3, %v2141_v17  ;;  %v1900_v39 = vmax.f32 %v1292_v13, 0.0  ;;  %v2601_v48 = vpop.f32.mrf.mxu0  ;;  %v4697_v20 = vld [vmem:[#allocation55_spill] sm:$0xff] }
 0x143   :  { %2189 = vst.msk [vmem:[%s4432_s3 + $0x18] sm:$0xff] %vm2185_vm3, %v2139_v24  ;;  %v1684_v45 = vadd.f32 %v3390_v38, %v1683_v31  ;;  %v3903_v42 = vadd.f32 %v3524_v35, %v3390_v38  ;;  %v2140_v12 = vmax.f32 %v2042_v34, %v2091_v46  ;;  %v1898_v43 = vmax.f32 %v1284_v16, 0.0  ;;  %v1686_v29 = vpop.f32.mrf.mxu1  ;;  %v4587_v35 = vld [vmem:[#allocation23_spill] sm:$0xff] }
 0x144   :  { %v2142_v32 = vmax.f32 %v2044_v33, %v2093_v22  ;;  %v1997_v51 = vmax.f32 %v1679_v36, 0.0  ;;  %v1692_v56 = vadd.f32 %v2700_v18, %v3390_v38  ;;  %v1295_v15 = vadd.f32 %v2601_v48, %v3390_v38  ;;  %v1286_v9 = vpop.f32.mrf.mxu0 }
 0x145   :  { %v1998_v21 = vmax.f32 %v1684_v45, 0.0  ;;  %v4586_v26 = vmax.f32 %v3480_v47, 0.0  ;;  %2190 = vst.msk [vmem:[%s4432_s3 + $0x20] sm:$0xff] %vm2185_vm3, %v2140_v12  ;;  %v4588_v46 = vmax.f32 %v4587_v35, 0.0  ;;  %v1287_v24 = vadd.f32 %v3390_v38, %v1286_v9  ;;  %v2704_v25 = vpop.f32.mrf.mxu1  ;;  %v4591_v45 = vld [vmem:[#allocation22_spill] sm:$0xff] }
 0x146   :  { %2192 = vst.msk [vmem:[%s4432_s3 + $0x30] sm:$0xff] %vm2185_vm3, %v2142_v32  ;;  %v1687_v17 = vadd.f32 %v3390_v38, %v1686_v29  ;;  %v3923_v47 = vadd.f32 %v3526_v57, %v3390_v38  ;;  %v4590_v27 = vmax.f32 %v3472_v50, 0.0  ;;  %v1901_v28 = vmax.f32 %v1295_v15, 0.0  ;;  %v2604_v33 = vpop.f32.mrf.mxu0 }
 0x147   :  { %v2094_v13 = vmax.f32 %v4586_v26, %v1996_v44  ;;  %v2045_v18 = vmax.f32 %v4588_v46, %v1898_v43  ;;  %v4589_v44 = vmax.f32 %v3533_v40, 0.0  ;;  %v1899_v55 = vmax.f32 %v1287_v24, 0.0 }
 0x148   :  { %v2096_v31 = vmax.f32 %v4590_v27, %v1998_v21  ;;  %v1999_v22 = vmax.f32 %v1687_v17, 0.0  ;;  %v1308_v16 = vadd.f32 %v2604_v33, %v3390_v38  ;;  %v4592_v48 = vmax.f32 %v4591_v45, 0.0  ;;  %v1299_v40 = vpop.f32.mrf.mxu0  ;;  %v4599_v45 = vld [vmem:[#allocation27_spill] sm:$0xff] }
 0x149   :  { %v2047_v36 = vmax.f32 %v4589_v44, %v1900_v39  ;;  %v2143_v34 = vmax.f32 %v2045_v18, %v2094_v13  ;;  %v2000_v32 = vmax.f32 %v1692_v56, 0.0  ;;  %v1695_v43 = vadd.f32 %v2701_v11, %v3390_v38  ;;  %v1699_v39 = vpop.f32.mrf.mxu1 }
 0x14a   :  { %v2095_v12 = vmax.f32 %v4592_v48, %v1997_v51  ;;  %v4593_v50 = vmax.f32 %v3489_v37, 0.0  ;;  %v4594_v15 = vmax.f32 %v3497_v54, 0.0  ;;  %v4595_v29 = vmax.f32 %v3511_v58, 0.0  ;;  %v2605_v35 = vpop.f32.mrf.mxu0 }
 0x14b   :  { %v2145_v57 = vmax.f32 %v2047_v36, %v2096_v31  ;;  %2193 = vst.msk [vmem:[%s4432_s3 + $0x38] sm:$0xff] %vm2185_vm3, %v2143_v34  ;;  %v1300_v56 = vadd.f32 %v3390_v38, %v1299_v40  ;;  %v1881_v11 = vmax.f32 %v3903_v42, 0.0  ;;  %v1981_v26 = vmax.f32 %v3923_v47, 0.0  ;;  %v2705_v54 = vpop.f32.mrf.mxu1 }
 0x14c   :  { %v2048_v21 = vmax.f32 %v4593_v50, %v1901_v28  ;;  %v2046_v9 = vmax.f32 %v4594_v15, %v1899_v55  ;;  %v2097_v51 = vmax.f32 %v4595_v29, %v1999_v22  ;;  %v1904_v13 = vmax.f32 %v1308_v16, 0.0  ;;  %v1302_v31 = vpop.f32.mrf.mxu0 }
 0x14d   :  { %2195 = vst.msk [vmem:[%s4432_s3 + $0x48] sm:$0xff] %vm2185_vm3, %v2145_v57  ;;  %v1700_v37 = vadd.f32 %v3390_v38, %v1699_v39  ;;  %v3953_v58 = vadd.f32 %v3390_v38, %v3551_v60  ;;  %v1902_v24 = vmax.f32 %v1300_v56, 0.0  ;;  %v2001_v17 = vmax.f32 %v1695_v43, 0.0  ;;  %v1702_v28 = vpop.f32.mrf.mxu1  ;;  %v4597_v60 = vld [vmem:[#allocation25_spill] sm:$0xff] }
 0x14e   :  { %v2144_v46 = vmax.f32 %v2046_v9, %v2095_v12  ;;  %v2146_v18 = vmax.f32 %v2048_v21, %v2097_v51  ;;  %v1708_v44 = vadd.f32 %v2704_v25, %v3390_v38  ;;  %v1311_v27 = vadd.f32 %v2605_v35, %v3390_v38  ;;  %v2608_v39 = vpop.f32.mrf.mxu0  ;;  %v4603_v51 = vld [vmem:[#allocation24_spill] sm:$0xff] }
 0x14f   :  { %v2002_v36 = vmax.f32 %v1700_v37, 0.0  ;;  %v4596_v33 = vmax.f32 %v3537_v41, 0.0  ;;  %v4598_v25 = vmax.f32 %v4597_v60, 0.0  ;;  %v1303_v22 = vadd.f32 %v3390_v38, %v1302_v31  ;;  %v2708_v50 = vpop.f32.mrf.mxu1 }
 0x150   :  { %2194 = vst.msk [vmem:[%s4432_s3 + $0x40] sm:$0xff] %vm2185_vm3, %v2144_v46  ;;  %2196 = vst.msk [vmem:[%s4432_s3 + $0x50] sm:$0xff] %vm2185_vm3, %v2146_v18  ;;  %v1703_v16 = vadd.f32 %v3390_v38, %v1702_v28  ;;  %v3973_v41 = vadd.f32 %v3390_v38, %v4599_v45  ;;  %v4600_v48 = vmax.f32 %v3572_v62, 0.0  ;;  %v1905_v40 = vmax.f32 %v1311_v27, 0.0  ;;  %v1315_v62 = vpop.f32.mrf.mxu0 }
 0x151   :  { %v2098_v34 = vmax.f32 %v4596_v33, %v2000_v32  ;;  %v2049_v55 = vmax.f32 %v4598_v25, %v1902_v24  ;;  %v4601_v32 = vld [vmem:[#allocation26_spill] sm:$0xff]  ;;  %v1903_v15 = vmax.f32 %v1303_v22, 0.0  ;;  %v1324_v29 = vadd.f32 %v2608_v39, %v3390_v38  ;;  %v4608_v25 = vld [vmem:[#allocation28_spill] sm:$0xff] }
 0x152   :  { %v2051_v12 = vmax.f32 %v4600_v48, %v1904_v13  ;;  %v4602_v57 = vmax.f32 %v4601_v32, 0.0  ;;  %v2003_v9 = vmax.f32 %v1703_v16, 0.0  ;;  %v4604_v56 = vmax.f32 %v4603_v51, 0.0  ;;  %v1715_v13 = vpop.f32.mrf.mxu1  ;;  %v2609_v60 = vpop.f32.mrf.mxu0 }
 0x153   :  { %v2147_v21 = vmax.f32 %v2049_v55, %v2098_v34  ;;  %v2004_v35 = vmax.f32 %v1708_v44, 0.0  ;;  %v1711_v18 = vadd.f32 %v2705_v54, %v3390_v38  ;;  %v4605_v24 = vmax.f32 %v3541_v61, 0.0 }
 0x154   :  { %v2100_v43 = vmax.f32 %v4602_v57, %v2002_v36  ;;  %v2099_v37 = vmax.f32 %v4604_v56, %v2001_v17  ;;  %v4606_v27 = vmax.f32 %v3549_v49, 0.0  ;;  %v4607_v28 = vmax.f32 %v3559_v0, 0.0  ;;  %v2709_v49 = vpop.f32.mrf.mxu1  ;;  %v1318_v57 = vpop.f32.mrf.mxu0 }
 0x155   :  { %2197 = vst.msk [vmem:[%s4432_s3 + $0x58] sm:$0xff] %vm2185_vm3, %v2147_v21  ;;  %v2052_v36 = vmax.f32 %v4605_v24, %v1905_v40  ;;  %v1316_v44 = vadd.f32 %v3390_v38, %v1315_v62  ;;  %v1879_v54 = vmax.f32 %v3953_v58, 0.0  ;;  %v1979_v33 = vmax.f32 %v3973_v41, 0.0 }
 0x156   :  { %v2149_v46 = vmax.f32 %v2051_v12, %v2100_v43  ;;  %v2050_v31 = vmax.f32 %v4606_v27, %v1903_v15  ;;  %v2101_v17 = vmax.f32 %v4607_v28, %v2003_v9  ;;  %v1908_v34 = vmax.f32 %v1324_v29, 0.0  ;;  %v1718_v43 = vpop.f32.mrf.mxu1 }
 0x157   :  { %v1716_v61 = vadd.f32 %v3390_v38, %v1715_v13  ;;  %v4003_v0 = vadd.f32 %v4608_v25, %v3390_v38  ;;  %v1906_v16 = vmax.f32 %v1316_v44, 0.0  ;;  %v2005_v45 = vmax.f32 %v1711_v18, 0.0  ;;  %v2612_v18 = vpop.f32.mrf.mxu0 }
 0x158   :  { %2199 = vst.msk [vmem:[%s4432_s3 + $0x68] sm:$0xff] %vm2185_vm3, %v2149_v46  ;;  %v2148_v55 = vmax.f32 %v2050_v31, %v2099_v37  ;;  %v2150_v22 = vmax.f32 %v2052_v36, %v2101_v17  ;;  %v1724_v48 = vadd.f32 %v2708_v50, %v3390_v38  ;;  %v1327_v32 = vadd.f32 %v2609_v60, %v3390_v38  ;;  %v2712_v62 = vpop.f32.mrf.mxu1 }
 0x159   :  { %v2006_v12 = vmax.f32 %v1716_v61, 0.0  ;;  %v4609_v40 = vmax.f32 %v3576_v63, 0.0  ;;  %v4610_v50 = vmax.f32 %v3563_v1, 0.0  ;;  %v1319_v15 = vadd.f32 %v3390_v38, %v1318_v57  ;;  %v4611_v63 = vld [vmem:[#allocation29_spill] sm:$0xff] }
 0x15a   :  { %2198 = vst.msk [vmem:[%s4432_s3 + $0x60] sm:$0xff] %vm2185_vm3, %v2148_v55  ;;  %2200 = vst.msk [vmem:[%s4432_s3 + $0x70] sm:$0xff] %vm2185_vm3, %v2150_v22  ;;  %v1719_v9 = vadd.f32 %v3390_v38, %v1718_v43  ;;  %v4023_v29 = vadd.f32 %v4611_v63, %v3390_v38  ;;  %v4612_v51 = vmax.f32 %v3629_v59, 0.0  ;;  %v4613_v37 = vmax.f32 %v3568_v2, 0.0  ;;  %v1331_v59 = vpop.f32.mrf.mxu0 }
 0x15b   :  { %v2102_v39 = vmax.f32 %v4609_v40, %v2004_v35  ;;  %v2053_v21 = vmax.f32 %v4610_v50, %v1906_v16  ;;  %v1909_v46 = vmax.f32 %v1327_v32, 0.0  ;;  %v1907_v1 = vmax.f32 %v1319_v15, 0.0 }
 0x15c   :  { %v2055_v56 = vmax.f32 %v4612_v51, %v1908_v34  ;;  %v2104_v35 = vmax.f32 %v4613_v37, %v2006_v12  ;;  %v2007_v24 = vmax.f32 %v1719_v9, 0.0  ;;  %v1340_v36 = vadd.f32 %v2612_v18, %v3390_v38  ;;  %v1731_v34 = vpop.f32.mrf.mxu1  ;;  %v4618_v12 = vld [vmem:[#allocation31_spill] sm:$0xff]  ;;  %v4621_v18 = vld [vmem:[#allocation32_spill] sm:$0xff] }
 0x15d   :  { %v2151_v13 = vmax.f32 %v2053_v21, %v2102_v39  ;;  %v4614_v27 = vmax.f32 %v3545_v52, 0.0  ;;  %v2008_v28 = vmax.f32 %v1724_v48, 0.0  ;;  %v1727_v44 = vadd.f32 %v2709_v49, %v3390_v38  ;;  %v2613_v48 = vpop.f32.mrf.mxu0 }
 0x15e   :  { %v2153_v17 = vmax.f32 %v2055_v56, %v2104_v35  ;;  %v4615_v2 = vmax.f32 %v3585_v53, 0.0  ;;  %v4616_v60 = vmax.f32 %v3593_v6, 0.0  ;;  %v4617_v52 = vmax.f32 %v3607_v10, 0.0  ;;  %v2713_v6 = vpop.f32.mrf.mxu1 }
 0x15f   :  { %v2103_v31 = vmax.f32 %v4614_v27, %v2005_v45  ;;  %2201 = vst.msk [vmem:[%s4432_s3 + $0x78] sm:$0xff] %vm2185_vm3, %v2151_v13  ;;  %v1332_v22 = vadd.f32 %v3390_v38, %v1331_v59  ;;  %v1884_v49 = vmax.f32 %v4003_v0, 0.0  ;;  %v1984_v16 = vmax.f32 %v4023_v29, 0.0  ;;  %v1334_v15 = vpop.f32.mrf.mxu0  ;;  %v4624_v59 = vld [vmem:[#allocation30_spill] sm:$0xff] }
 0x160   :  { %v2056_v61 = vmax.f32 %v4615_v2, %v1909_v46  ;;  %v2054_v25 = vmax.f32 %v4616_v60, %v1907_v1  ;;  %v2105_v55 = vmax.f32 %v4617_v52, %v2007_v24  ;;  %2203 = vst.msk [vmem:[%s4432_s3 + $0x88] sm:$0xff] %vm2185_vm3, %v2153_v17  ;;  %v1912_v45 = vmax.f32 %v1340_v36, 0.0  ;;  %v1734_v9 = vpop.f32.mrf.mxu1 }
 0x161   :  { %v1732_v53 = vadd.f32 %v3390_v38, %v1731_v34  ;;  %v4053_v10 = vadd.f32 %v3390_v38, %v4618_v12  ;;  %v1910_v43 = vmax.f32 %v1332_v22, 0.0  ;;  %v2009_v40 = vmax.f32 %v1727_v44, 0.0  ;;  %v2616_v27 = vpop.f32.mrf.mxu0  ;;  %v4630_v12 = vld [vmem:[#allocation40_spill] sm:$0xff] }
 0x162   :  { %v2152_v32 = vmax.f32 %v2054_v25, %v2103_v31  ;;  %v2154_v57 = vmax.f32 %v2056_v61, %v2105_v55  ;;  %v1740_v39 = vadd.f32 %v2712_v62, %v3390_v38  ;;  %v1343_v21 = vadd.f32 %v2613_v48, %v3390_v38  ;;  %v2716_v31 = vpop.f32.mrf.mxu1 }
 0x163   :  { %v2010_v50 = vmax.f32 %v1732_v53, 0.0  ;;  %v4619_v63 = vmax.f32 %v3633_v3, 0.0  ;;  %v4620_v56 = vmax.f32 %v3611_v7, 0.0  ;;  %v1335_v35 = vadd.f32 %v3390_v38, %v1334_v15 }
 0x164   :  { %2202 = vst.msk [vmem:[%s4432_s3 + $0x80] sm:$0xff] %vm2185_vm3, %v2152_v32  ;;  %2204 = vst.msk [vmem:[%s4432_s3 + $0x90] sm:$0xff] %vm2185_vm3, %v2154_v57  ;;  %v1735_v46 = vadd.f32 %v3390_v38, %v1734_v9  ;;  %v4073_v3 = vadd.f32 %v3390_v38, %v4621_v18  ;;  %v4622_v62 = vmax.f32 %v3668_v14, 0.0  ;;  %v4623_v1 = vmax.f32 %v3618_v8, 0.0  ;;  %v1347_v14 = vpop.f32.mrf.mxu0  ;;  %v1747_v52 = vpop.f32.mrf.mxu1  ;;  %v4626_v8 = vld [vmem:[#allocation35_spill] sm:$0xff]  ;;  %v4632_v9 = vld [vmem:[#allocation33_spill] sm:$0xff] }
 0x165   :  { %v2106_v51 = vmax.f32 %v4619_v63, %v2008_v28  ;;  %v2057_v37 = vmax.f32 %v4620_v56, %v1910_v43  ;;  %v1913_v36 = vmax.f32 %v1343_v21, 0.0  ;;  %v1911_v7 = vmax.f32 %v1335_v35, 0.0 }
 0x166   :  { %v2059_v13 = vmax.f32 %v4622_v62, %v1912_v45  ;;  %v2108_v24 = vmax.f32 %v4623_v1, %v2010_v50  ;;  %v2011_v17 = vmax.f32 %v1735_v46, 0.0  ;;  %v1356_v44 = vadd.f32 %v2616_v27, %v3390_v38  ;;  %v4628_v45 = vld [vmem:[#allocation37_spill] sm:$0xff]  ;;  %v2617_v21 = vpop.f32.mrf.mxu0  ;;  %v2717_v15 = vpop.f32.mrf.mxu1 }
 0x167   :  { %v2155_v28 = vmax.f32 %v2057_v37, %v2106_v51  ;;  %v4625_v34 = vmax.f32 %v4624_v59, 0.0  ;;  %v2012_v61 = vmax.f32 %v1740_v39, 0.0  ;;  %v1743_v25 = vadd.f32 %v2713_v6, %v3390_v38  ;;  %v4637_v59 = vld [vmem:[#allocation34_spill] sm:$0xff] }
 0x168   :  { %v2157_v60 = vmax.f32 %v2059_v13, %v2108_v24  ;;  %v4627_v55 = vmax.f32 %v4626_v8, 0.0  ;;  %v4629_v53 = vmax.f32 %v4628_v45, 0.0  ;;  %v4631_v32 = vmax.f32 %v4630_v12, 0.0  ;;  %v1350_v13 = vpop.f32.mrf.mxu0  ;;  %v1750_v1 = vpop.f32.mrf.mxu1  ;;  %v4633_v24 = vld [vmem:[#allocation43_spill] sm:$0xff] }
 0x169   :  { %v2107_v2 = vmax.f32 %v4625_v34, %v2009_v40  ;;  %2205 = vst.msk [vmem:[%s4432_s3 + $0x98] sm:$0xff] %vm2185_vm3, %v2155_v28  ;;  %v1348_v43 = vadd.f32 %v3390_v38, %v1347_v14  ;;  %v1882_v6 = vmax.f32 %v4053_v10, 0.0  ;;  %v1982_v40 = vmax.f32 %v4073_v3, 0.0  ;;  %v4635_v28 = vld [vmem:[#allocation41_spill] sm:$0xff] }
 0x16a   :  { %v2060_v22 = vmax.f32 %v4627_v55, %v1913_v36  ;;  %v2058_v48 = vmax.f32 %v4629_v53, %v1911_v7  ;;  %v2109_v57 = vmax.f32 %v4631_v32, %v2011_v17  ;;  %2207 = vst.msk [vmem:[%s4432_s3 + $0xa8] sm:$0xff] %vm2185_vm3, %v2157_v60  ;;  %v1916_v39 = vmax.f32 %v1356_v44, 0.0  ;;  %v2620_v55 = vpop.f32.mrf.mxu0  ;;  %v4642_v32 = vld [vmem:[#allocation36_spill] sm:$0xff]  ;;  %v4701_v10 = vld [vmem:[#allocation57_spill] sm:$0xff] }
 0x16b   :  { %v1748_v50 = vadd.f32 %v3390_v38, %v1747_v52  ;;  %v4103_v63 = vadd.f32 %v4632_v9, %v3390_v38  ;;  %v1914_v37 = vmax.f32 %v1348_v43, 0.0  ;;  %v2013_v35 = vmax.f32 %v1743_v25, 0.0  ;;  %v4640_v25 = vld [vmem:[#allocation42_spill] sm:$0xff] }
 0x16c   :  { %v2156_v51 = vmax.f32 %v2058_v48, %v2107_v2  ;;  %v2158_v56 = vmax.f32 %v2060_v22, %v2109_v57  ;;  %v1756_v46 = vadd.f32 %v2716_v31, %v3390_v38  ;;  %v1359_v62 = vadd.f32 %v2617_v21, %v3390_v38  ;;  %v4638_v2 = vld [vmem:[#allocation56_spill] sm:$0xff]  ;;  %v2720_v22 = vpop.f32.mrf.mxu1 }
 0x16d   :  { %v2014_v18 = vmax.f32 %v1748_v50, 0.0  ;;  %v4634_v36 = vmax.f32 %v4633_v24, 0.0  ;;  %v4636_v31 = vmax.f32 %v4635_v28, 0.0  ;;  %v1351_v17 = vadd.f32 %v3390_v38, %v1350_v13  ;;  %v4648_v24 = vld [vmem:[#allocation51_spill] sm:$0xff] }
 0x16e   :  { %2206 = vst.msk [vmem:[%s4432_s3 + $0xa0] sm:$0xff] %vm2185_vm3, %v2156_v51  ;;  %2208 = vst.msk [vmem:[%s4432_s3 + $0xb0] sm:$0xff] %vm2185_vm3, %v2158_v56  ;;  %v1751_v44 = vadd.f32 %v3390_v38, %v1750_v1  ;;  %v4123_v34 = vadd.f32 %v4637_v59, %v3390_v38  ;;  %v4641_v14 = vmax.f32 %v4640_v25, 0.0  ;;  %v1917_v8 = vmax.f32 %v1359_v62, 0.0  ;;  %v1363_v51 = vpop.f32.mrf.mxu0  ;;  %v4644_v56 = vld [vmem:[#allocation46_spill] sm:$0xff]  ;;  %v4646_v62 = vld [vmem:[#allocation48_spill] sm:$0xff] }
 0x16f   :  { %v2110_v27 = vmax.f32 %v4634_v36, %v2012_v61  ;;  %v2061_v7 = vmax.f32 %v4636_v31, %v1914_v37  ;;  %v4639_v61 = vmax.f32 %v4638_v2, 0.0  ;;  %v1915_v53 = vmax.f32 %v1351_v17, 0.0 }
 0x170   :  { %v2112_v52 = vmax.f32 %v4641_v14, %v2014_v18  ;;  %v2015_v48 = vmax.f32 %v1751_v44, 0.0  ;;  %v1372_v12 = vadd.f32 %v2620_v55, %v3390_v38  ;;  %v4643_v57 = vmax.f32 %v4642_v32, 0.0  ;;  %v4650_v44 = vld [vmem:[#allocation38_spill] sm:$0xff] }
 0x171   :  { %v2063_v60 = vmax.f32 %v4639_v61, %v1916_v39  ;;  %v2159_v45 = vmax.f32 %v2061_v7, %v2110_v27  ;;  %v2016_v50 = vmax.f32 %v1756_v46, 0.0  ;;  %v1759_v9 = vadd.f32 %v2717_v15, %v3390_v38  ;;  %v1763_v39 = vpop.f32.mrf.mxu1  ;;  %v2621_v7 = vpop.f32.mrf.mxu0 }
 0x172   :  { %v2111_v43 = vmax.f32 %v4643_v57, %v2013_v35  ;;  %v4645_v37 = vmax.f32 %v4644_v56, 0.0  ;;  %v4647_v13 = vmax.f32 %v4646_v62, 0.0  ;;  %v4649_v36 = vmax.f32 %v4648_v24, 0.0 }
 0x173   :  { %v2161_v21 = vmax.f32 %v2063_v60, %v2112_v52  ;;  %2209 = vst.msk [vmem:[%s4432_s3 + $0xb8] sm:$0xff] %vm2185_vm3, %v2159_v45  ;;  %v1364_v46 = vadd.f32 %v3390_v38, %v1363_v51  ;;  %v1885_v15 = vmax.f32 %v4103_v63, 0.0  ;;  %v1985_v27 = vmax.f32 %v4123_v34, 0.0  ;;  %v2721_v17 = vpop.f32.mrf.mxu1  ;;  %v1366_v55 = vpop.f32.mrf.mxu0  ;;  %v4656_v51 = vld [vmem:[#allocation53_spill] sm:$0xff] }
 0x174   :  { %v2064_v18 = vmax.f32 %v4645_v37, %v1917_v8  ;;  %v2062_v1 = vmax.f32 %v4647_v13, %v1915_v53  ;;  %v2113_v35 = vmax.f32 %v4649_v36, %v2015_v48  ;;  %v1920_v28 = vmax.f32 %v1372_v12, 0.0  ;;  %v4652_v12 = vld [vmem:[#allocation52_spill] sm:$0xff] }
 0x175   :  { %2211 = vst.msk [vmem:[%s4432_s3 + $0xc8] sm:$0xff] %vm2185_vm3, %v2161_v21  ;;  %v1764_v31 = vadd.f32 %v3390_v38, %v1763_v39  ;;  %v4153_v59 = vadd.f32 %v3390_v38, %v4650_v44  ;;  %v1918_v60 = vmax.f32 %v1364_v46, 0.0  ;;  %v2017_v25 = vmax.f32 %v1759_v9, 0.0  ;;  %v1766_v45 = vpop.f32.mrf.mxu1  ;;  %v4654_v21 = vld [vmem:[#allocation39_spill] sm:$0xff] }
 0x176   :  { %v2160_v2 = vmax.f32 %v2062_v1, %v2111_v43  ;;  %v2162_v61 = vmax.f32 %v2064_v18, %v2113_v35  ;;  %v1772_v14 = vadd.f32 %v2720_v22, %v3390_v38  ;;  %v1375_v8 = vadd.f32 %v2621_v7, %v3390_v38  ;;  %v2624_v18 = vpop.f32.mrf.mxu0  ;;  %v4658_v35 = vld [vmem:[#allocation47_spill] sm:$0xff] }
 0x177   :  { %v2018_v52 = vmax.f32 %v1764_v31, 0.0  ;;  %v4651_v53 = vmax.f32 %v3729_v19, 0.0  ;;  %v4653_v22 = vmax.f32 %v4652_v12, 0.0  ;;  %v1367_v57 = vadd.f32 %v3390_v38, %v1366_v55  ;;  %v2724_v62 = vpop.f32.mrf.mxu1 }
 0x178   :  { %2210 = vst.msk [vmem:[%s4432_s3 + $0xc0] sm:$0xff] %vm2185_vm3, %v2160_v2  ;;  %2212 = vst.msk [vmem:[%s4432_s3 + $0xd0] sm:$0xff] %vm2185_vm3, %v2162_v61  ;;  %v1767_v43 = vadd.f32 %v3390_v38, %v1766_v45  ;;  %v4173_v19 = vadd.f32 %v3390_v38, %v4654_v21  ;;  %v4657_v39 = vmax.f32 %v4656_v51, 0.0  ;;  %v1921_v37 = vmax.f32 %v1375_v8, 0.0  ;;  %v4660_v61 = vld [vmem:[#allocation2_spill] sm:$0xff]  ;;  %v4662_v8 = vld [vmem:[#allocation4_spill] sm:$0xff] }
 0x179   :  { %v2114_v48 = vmax.f32 %v4651_v53, %v2016_v50  ;;  %v2065_v32 = vmax.f32 %v4653_v22, %v1918_v60  ;;  %v4655_v50 = vmax.f32 %v3764_v30, 0.0  ;;  %v1919_v1 = vmax.f32 %v1367_v57, 0.0  ;;  %v1379_v30 = vpop.f32.mrf.mxu0  ;;  %v4664_v53 = vld [vmem:[#allocation6_spill] sm:$0xff]  ;;  %v4666_v21 = vld [vmem:[#allocation44_spill] sm:$0xff] }
 0x17a   :  { %v2116_v56 = vmax.f32 %v4657_v39, %v2018_v52  ;;  %v2019_v24 = vmax.f32 %v1767_v43, 0.0  ;;  %v1388_v36 = vadd.f32 %v2624_v18, %v3390_v38  ;;  %v4659_v46 = vmax.f32 %v4658_v35, 0.0 }
 0x17b   :  { %v2067_v9 = vmax.f32 %v4655_v50, %v1920_v28  ;;  %v2163_v13 = vmax.f32 %v2065_v32, %v2114_v48  ;;  %v2020_v7 = vmax.f32 %v1772_v14, 0.0  ;;  %v1775_v2 = vadd.f32 %v2721_v17, %v3390_v38  ;;  %v1779_v28 = vpop.f32.mrf.mxu1  ;;  %v4196_v38 = vld [vmem:[%s4431_s2] ss:$0 sm:$0xff]  ;;  %v2625_v57 = vpop.f32.mrf.mxu0 }
 0x17c   :  { %v2115_v31 = vmax.f32 %v4659_v46, %v2017_v25  ;;  %v4661_v60 = vmax.f32 %v4660_v61, 0.0  ;;  %v4663_v55 = vmax.f32 %v4662_v8, 0.0  ;;  %v4665_v48 = vmax.f32 %v4664_v53, 0.0  ;;  %v4672_v61 = vld [vmem:[#allocation61_spill] sm:$0xff]  ;;  %v4674_v8 = vld [vmem:[#allocation8_spill] sm:$0xff] }
 0x17d   :  { %v2165_v44 = vmax.f32 %v2067_v9, %v2116_v56  ;;  %2213 = vst.msk [vmem:[%s4432_s3 + $0xd8] sm:$0xff] %vm2185_vm3, %v2163_v13  ;;  %v1380_v17 = vadd.f32 %v4196_v38, %v1379_v30  ;;  %v1883_v14 = vmax.f32 %v4153_v59, 0.0  ;;  %v1983_v12 = vmax.f32 %v4173_v19, 0.0  ;;  %v2725_v43 = vpop.f32.mrf.mxu1 }
 0x17e   :  { %v2068_v52 = vmax.f32 %v4661_v60, %v1921_v37  ;;  %v2066_v45 = vmax.f32 %v4663_v55, %v1919_v1  ;;  %v2117_v25 = vmax.f32 %v4665_v48, %v2019_v24  ;;  %v1924_v22 = vmax.f32 %v1388_v36, 0.0  ;;  %v1382_v1 = vpop.f32.mrf.mxu0  ;;  %v4667_v36 = vld [vmem:[#allocation9_spill] sm:$0xff] }
 0x17f   :  { %2215 = vst.msk [vmem:[%s4432_s3 + $0xe8] sm:$0xff] %vm2185_vm3, %v2165_v44  ;;  %v1780_v32 = vadd.f32 %v4196_v38, %v1779_v28  ;;  %v4208_v50 = vadd.f32 %v4196_v38, %v4666_v21  ;;  %v1922_v39 = vmax.f32 %v1380_v17, 0.0  ;;  %v2021_v56 = vmax.f32 %v1775_v2, 0.0  ;;  %v1782_v24 = vpop.f32.mrf.mxu1  ;;  %v4671_v28 = vld [vmem:[#allocation45_spill] sm:$0xff] }
 0x180   :  { %v2164_v9 = vmax.f32 %v2066_v45, %v2115_v31  ;;  %v2166_v51 = vmax.f32 %v2068_v52, %v2117_v25  ;;  %v1788_v37 = vadd.f32 %v4196_v38, %v2724_v62  ;;  %v1391_v13 = vadd.f32 %v4196_v38, %v2625_v57  ;;  %v4669_v31 = vld [vmem:[#allocation7_spill] sm:$0xff]  ;;  %v2628_v48 = vpop.f32.mrf.mxu0 }
 0x181   :  { %v2022_v18 = vmax.f32 %v1780_v32, 0.0  ;;  %v4668_v35 = vmax.f32 %v4667_v36, 0.0  ;;  %v4670_v62 = vmax.f32 %v4669_v31, 0.0  ;;  %v1383_v2 = vadd.f32 %v4196_v38, %v1382_v1  ;;  %v2728_v25 = vpop.f32.mrf.mxu1  ;;  %v4680_v31 = vld [vmem:[#allocation16_spill] sm:$0xff] }
 0x182   :  { %2214 = vst.msk [vmem:[%s4432_s3 + $0xe0] sm:$0xff] %vm2185_vm3, %v2164_v9  ;;  %2216 = vst.msk [vmem:[%s4432_s3 + $0xf0] sm:$0xff] %vm2185_vm3, %v2166_v51  ;;  %v1783_v30 = vadd.f32 %v4196_v38, %v1782_v24  ;;  %v4673_v60 = vmax.f32 %v4672_v61, 0.0  ;;  %v4675_v55 = vmax.f32 %v4674_v8, 0.0  ;;  %v1925_v53 = vmax.f32 %v1391_v13, 0.0  ;;  %v4676_v9 = vld [vmem:[#allocation3_spill] sm:$0xff] }
 0x183   :  { %v2118_v46 = vmax.f32 %v4668_v35, %v2020_v7  ;;  %v2069_v44 = vmax.f32 %v4670_v62, %v1922_v39  ;;  %v4228_v7 = vadd.f32 %v4196_v38, %v4671_v28  ;;  %v1923_v32 = vmax.f32 %v1383_v2, 0.0  ;;  %v1395_v35 = vpop.f32.mrf.mxu0  ;;  %v4682_v2 = vld [vmem:[#allocation17_spill] sm:$0xff] }
 0x184   :  { %v2071_v52 = vmax.f32 %v4673_v60, %v1924_v22  ;;  %v2120_v45 = vmax.f32 %v4675_v55, %v2022_v18  ;;  %v2023_v57 = vmax.f32 %v1783_v30, 0.0  ;;  %v1404_v21 = vadd.f32 %v4196_v38, %v2628_v48  ;;  %v1795_v22 = vpop.f32.mrf.mxu1  ;;  %v4678_v18 = vld [vmem:[#allocation10_spill] sm:$0xff]  ;;  %v4684_v28 = vld [vmem:[#allocation49_spill] sm:$0xff] }
 0x185   :  { %v2167_v17 = vmax.f32 %v2069_v44, %v2118_v46  ;;  %v4677_v51 = vmax.f32 %v4676_v9, 0.0  ;;  %v2024_v1 = vmax.f32 %v1788_v37, 0.0  ;;  %v1791_v36 = vadd.f32 %v4196_v38, %v2725_v43  ;;  %v2629_v8 = vpop.f32.mrf.mxu0 }
 0x186   :  { %v2169_v24 = vmax.f32 %v2071_v52, %v2120_v45  ;;  %v4679_v13 = vmax.f32 %v4678_v18, 0.0  ;;  %v4681_v62 = vmax.f32 %v4680_v31, 0.0  ;;  %v4683_v30 = vmax.f32 %v4682_v2, 0.0  ;;  %v2729_v55 = vpop.f32.mrf.mxu1  ;;  %v4685_v45 = vld [vmem:[#allocation50_spill] sm:$0xff] }
 0x187   :  { %v2119_v39 = vmax.f32 %v4677_v51, %v2021_v56  ;;  %2217 = vst.msk [vmem:[%s4432_s3 + $0xf8] sm:$0xff] %vm2185_vm3, %v2167_v17  ;;  %v1396_v37 = vadd.f32 %v4196_v38, %v1395_v35  ;;  %v1888_v43 = vmax.f32 %v4208_v50, 0.0  ;;  %v4252_v61 = vadd.f32 %v4196_v38, %v4684_v28  ;;  %v1398_v18 = vpop.f32.mrf.mxu0 }
 0x188   :  { %v2072_v46 = vmax.f32 %v4679_v13, %v1925_v53  ;;  %v2070_v44 = vmax.f32 %v4681_v62, %v1923_v32  ;;  %v2121_v56 = vmax.f32 %v4683_v30, %v2023_v57  ;;  %2219 = vst.msk [vmem:[%s4432_s3 + $0x108] sm:$0xff] %vm2185_vm3, %v2169_v24  ;;  %v1928_v60 = vmax.f32 %v1404_v21, 0.0  ;;  %v1798_v24 = vpop.f32.mrf.mxu1  ;;  %v4686_v21 = vld [vmem:[#allocation62_spill] sm:$0xff] }
 0x189   :  { %v1796_v52 = vadd.f32 %v4196_v38, %v1795_v22  ;;  %v4261_v53 = vadd.f32 %v4196_v38, %v4685_v45  ;;  %v1926_v32 = vmax.f32 %v1396_v37, 0.0  ;;  %v2025_v57 = vmax.f32 %v1791_v36, 0.0  ;;  %v2632_v37 = vpop.f32.mrf.mxu0 }
 0x18a   :  { %v2168_v48 = vmax.f32 %v2070_v44, %v2119_v39  ;;  %v2170_v17 = vmax.f32 %v2072_v46, %v2121_v56  ;;  %v1804_v9 = vadd.f32 %v4196_v38, %v2728_v25  ;;  %v1407_v35 = vadd.f32 %v4196_v38, %v2629_v8  ;;  %v4688_v39 = vld [vmem:[#allocation59_spill] sm:$0xff]  ;;  %v4690_v44 = vld [vmem:[#allocation21_spill] sm:$0xff]  ;;  %v2732_v28 = vpop.f32.mrf.mxu1 }
 0x18b   :  { %v2026_v51 = vmax.f32 %v1796_v52, 0.0  ;;  %v4687_v13 = vmax.f32 %v4686_v21, 0.0  ;;  %v4689_v25 = vmax.f32 %v4688_v39, 0.0  ;;  %v1399_v46 = vadd.f32 %v4196_v38, %v1398_v18  ;;  %v1411_v58 = vpop.f32.mrf.mxu0  ;;  %v4696_v39 = vld [vmem:[#allocation54_spill] sm:$0xff] }
 0x18c   :  { %2218 = vst.msk [vmem:[%s4432_s3 + $0x100] sm:$0xff] %vm2185_vm3, %v2168_v48  ;;  %2220 = vst.msk [vmem:[%s4432_s3 + $0x110] sm:$0xff] %vm2185_vm3, %v2170_v17  ;;  %v1799_v31 = vadd.f32 %v4196_v38, %v1798_v24  ;;  %v1886_v62 = vmax.f32 %v4252_v61, 0.0  ;;  %v4691_v2 = vmax.f32 %v4690_v44, 0.0  ;;  %v1929_v56 = vmax.f32 %v1407_v35, 0.0  ;;  %v4692_v17 = vld [vmem:[#allocation11_spill] sm:$0xff] }
 0x18d   :  { %v2122_v22 = vmax.f32 %v4687_v13, %v2024_v1  ;;  %v2073_v36 = vmax.f32 %v4689_v25, %v1926_v32  ;;  %v2075_v1 = vmax.f32 %v1879_v54, %v1928_v60  ;;  %v1927_v8 = vmax.f32 %v1399_v46, 0.0  ;;  %v1811_v54 = vpop.f32.mrf.mxu1  ;;  %v4694_v60 = vld [vmem:[#allocation63_spill] sm:$0xff] }
 0x18e   :  { %v2124_v30 = vmax.f32 %v4691_v2, %v2026_v51  ;;  %v2027_v45 = vmax.f32 %v1799_v31, 0.0  ;;  %v1420_v48 = vadd.f32 %v4196_v38, %v2632_v37  ;;  %v4693_v32 = vmax.f32 %v4692_v17, 0.0 }
 0x18f   :  { %v2171_v52 = vmax.f32 %v2073_v36, %v2122_v22  ;;  %v2028_v24 = vmax.f32 %v1804_v9, 0.0  ;;  %v1807_v13 = vadd.f32 %v4196_v38, %v2729_v55  ;;  %v4695_v51 = vmax.f32 %v4694_v60, 0.0  ;;  %v2733_v46 = vpop.f32.mrf.mxu1 }
 0x190   :  { %v2123_v18 = vmax.f32 %v4693_v32, %v2025_v57  ;;  %v2173_v21 = vmax.f32 %v2075_v1, %v2124_v30  ;;  %v2074_v22 = vmax.f32 %v1878_v23, %v1927_v8  ;;  %v2125_v57 = vmax.f32 %v1978_v4, %v2027_v45  ;;  %v2633_v23 = vpop.f32.mrf.mxu0 }
 0x191   :  { %2221 = vst.msk [vmem:[%s4432_s3 + $0x118] sm:$0xff] %vm2185_vm3, %v2171_v52  ;;  %v2076_v35 = vmax.f32 %v4695_v51, %v1929_v56  ;;  %v1412_v9 = vadd.f32 %v4196_v38, %v1411_v58  ;;  %v1986_v55 = vmax.f32 %v4261_v53, 0.0  ;;  %v4302_v25 = vadd.f32 %v4196_v38, %v4696_v39  ;;  %v1814_v8 = vpop.f32.mrf.mxu1  ;;  %v4699_v51 = vld [vmem:[#allocation64_spill] sm:$0xff] }
 0x192   :  { %2223 = vst.msk [vmem:[%s4432_s3 + $0x128] sm:$0xff] %vm2185_vm3, %v2173_v21  ;;  %v1932_v36 = vmax.f32 %v1420_v48, 0.0  ;;  %v1812_v5 = vadd.f32 %v4196_v38, %v1811_v54  ;;  %v4311_v4 = vadd.f32 %v4196_v38, %v4697_v20  ;;  %v2172_v31 = vmax.f32 %v2074_v22, %v2123_v18  ;;  %v1414_v52 = vpop.f32.mrf.mxu0 }
 0x193   :  { %v2174_v1 = vmax.f32 %v2076_v35, %v2125_v57  ;;  %v1930_v44 = vmax.f32 %v1412_v9, 0.0  ;;  %v2029_v2 = vmax.f32 %v1807_v13, 0.0  ;;  %v1820_v30 = vadd.f32 %v4196_v38, %v2732_v28  ;;  %v2736_v21 = vpop.f32.mrf.mxu1 }
 0x194   :  { %v2030_v56 = vmax.f32 %v1812_v5, 0.0  ;;  %v1423_v37 = vadd.f32 %v4196_v38, %v2633_v23  ;;  %v2126_v45 = vmax.f32 %v1979_v33, %v2028_v24  ;;  %2222 = vst.msk [vmem:[%s4432_s3 + $0x120] sm:$0xff] %vm2185_vm3, %v2172_v31  ;;  %v1415_v48 = vadd.f32 %v4196_v38, %v1414_v52  ;;  %v2636_v24 = vpop.f32.mrf.mxu0 }
 0x195   :  { %2224 = vst.msk [vmem:[%s4432_s3 + $0x130] sm:$0xff] %vm2185_vm3, %v2174_v1  ;;  %v2077_v28 = vmax.f32 %v1881_v11, %v1930_v44  ;;  %v1815_v17 = vadd.f32 %v4196_v38, %v1814_v8  ;;  %v2079_v41 = vmax.f32 %v1883_v14, %v1932_v36  ;;  %v1823_v18 = vadd.f32 %v4196_v38, %v2733_v46  ;;  %v4698_v11 = vld [vmem:[#allocation5_spill] sm:$0xff] }
 0x196   :  { %v2128_v33 = vmax.f32 %v1981_v26, %v2030_v56  ;;  %v1933_v32 = vmax.f32 %v1423_v37, 0.0  ;;  %v1931_v58 = vmax.f32 %v1415_v48, 0.0  ;;  %v1436_v42 = vadd.f32 %v4196_v38, %v2636_v24  ;;  %v1427_v47 = vpop.f32.mrf.mxu0  ;;  %v1827_v26 = vpop.f32.mrf.mxu1 }
 0x197   :  { %v2175_v13 = vmax.f32 %v2077_v28, %v2126_v45  ;;  %v2031_v54 = vmax.f32 %v1815_v17, 0.0  ;;  %v1239_v60 = vadd.f32 %v4196_v38, %v4698_v11  ;;  %v4700_v35 = vmax.f32 %v4699_v51, 0.0 }
 0x198   :  { %v2032_v14 = vmax.f32 %v1820_v30, 0.0  ;;  %v2177_v22 = vmax.f32 %v2079_v41, %v2128_v33  ;;  %v2080_v57 = vmax.f32 %v1884_v49, %v1933_v32  ;;  %v2078_v9 = vmax.f32 %v1882_v6, %v1931_v58  ;;  %v2637_v49 = vpop.f32.mrf.mxu0  ;;  %v2737_v20 = vpop.f32.mrf.mxu1  ;;  %v4702_v58 = vld [vmem:[#allocation12_spill] sm:$0xff] }
 0x199   :  { %v2127_v59 = vmax.f32 %v4700_v35, %v2029_v2  ;;  %2225 = vst.msk [vmem:[%s4432_s3 + $0x138] sm:$0xff] %vm2185_vm3, %v2175_v13  ;;  %v2129_v39 = vmax.f32 %v1982_v40, %v2031_v54  ;;  %v1428_v36 = vadd.f32 %v4196_v38, %v1427_v47  ;;  %v1989_v5 = vmax.f32 %v4311_v4, 0.0 }
 0x19a   :  { %2227 = vst.msk [vmem:[%s4432_s3 + $0x148] sm:$0xff] %vm2185_vm3, %v2177_v22  ;;  %v2033_v23 = vmax.f32 %v1823_v18, 0.0  ;;  %v1936_v46 = vmax.f32 %v1436_v42, 0.0  ;;  %v1828_v0 = vadd.f32 %v4196_v38, %v1827_v26  ;;  %v1639_v6 = vadd.f32 %v4196_v38, %v4701_v10  ;;  %v1430_v30 = vpop.f32.mrf.mxu0  ;;  %v1830_v56 = vpop.f32.mrf.mxu1  ;;  %v4703_v42 = vld [vmem:[#allocation58_spill] sm:$0xff] }
 0x19b   :  { %v2176_v3 = vmax.f32 %v2078_v9, %v2127_v59  ;;  %v2178_v40 = vmax.f32 %v2080_v57, %v2129_v39  ;;  %v1934_v31 = vmax.f32 %v1428_v36, 0.0  ;;  %v1887_v1 = vmax.f32 %v1239_v60, 0.0 }
 0x19c   :  { %v1836_v4 = vadd.f32 %v4196_v38, %v2736_v21  ;;  %v2034_v44 = vmax.f32 %v1828_v0, 0.0  ;;  %v1439_v2 = vadd.f32 %v4196_v38, %v2637_v49  ;;  %v2130_v37 = vmax.f32 %v1983_v12, %v2032_v14  ;;  %v2640_v17 = vpop.f32.mrf.mxu0  ;;  %v4704_v14 = vld [vmem:[#allocation13_spill] sm:$0xff]  ;;  %v4705_v49 = vld [vmem:[#allocation60_spill] sm:$0xff] }
 0x19d   :  { %2226 = vst.msk [vmem:[%s4432_s3 + $0x140] sm:$0xff] %vm2185_vm3, %v2176_v3  ;;  %2228 = vst.msk [vmem:[%s4432_s3 + $0x150] sm:$0xff] %vm2185_vm3, %v2178_v40  ;;  %v2081_v52 = vmax.f32 %v1885_v15, %v1934_v31  ;;  %v1431_v8 = vadd.f32 %v4196_v38, %v1430_v30  ;;  %v1831_v45 = vadd.f32 %v4196_v38, %v1830_v56  ;;  %v1889_v50 = vmax.f32 %v4302_v25, 0.0 }
 0x19e   :  { %v2131_v19 = vmax.f32 %v1984_v16, %v2033_v23  ;;  %v2083_v12 = vmax.f32 %v1887_v1, %v1936_v46  ;;  %v2132_v28 = vmax.f32 %v1985_v27, %v2034_v44  ;;  %v1937_v48 = vmax.f32 %v1439_v2, 0.0  ;;  %v1443_v29 = vpop.f32.mrf.mxu0 }
 0x19f   :  { %v2179_v41 = vmax.f32 %v2081_v52, %v2130_v37  ;;  %v1935_v33 = vmax.f32 %v1431_v8, 0.0  ;;  %v2035_v32 = vmax.f32 %v1831_v45, 0.0  ;;  %v1452_v18 = vadd.f32 %v4196_v38, %v2640_v17 }
 0x1a0   :  { %v2036_v63 = vmax.f32 %v1836_v4, 0.0  ;;  %v2181_v15 = vmax.f32 %v2083_v12, %v2132_v28  ;;  %v2084_v24 = vmax.f32 %v1888_v43, %v1937_v48  ;;  %v1839_v21 = vadd.f32 %v4196_v38, %v2737_v20  ;;  %v2641_v61 = vpop.f32.mrf.mxu0 }
 0x1a1   :  { %2229 = vst.msk [vmem:[%s4432_s3 + $0x158] sm:$0xff] %vm2185_vm3, %v2179_v41  ;;  %v2082_v16 = vmax.f32 %v1886_v62, %v1935_v33  ;;  %v2133_v34 = vmax.f32 %v1986_v55, %v2035_v32  ;;  %v1940_v27 = vmax.f32 %v1452_v18, 0.0  ;;  %v1444_v13 = vadd.f32 %v4196_v38, %v1443_v29 }
 0x1a2   :  { %v1987_v43 = vmax.f32 %v1639_v6, 0.0  ;;  %v1252_v54 = vadd.f32 %v4196_v38, %v4702_v58  ;;  %v1652_v11 = vadd.f32 %v4196_v38, %v4703_v42  ;;  %2231 = vst.msk [vmem:[%s4432_s3 + $0x168] sm:$0xff] %vm2185_vm3, %v2181_v15  ;;  %v1455_v25 = vadd.f32 %v4196_v38, %v2641_v61  ;;  %v1446_v35 = vpop.f32.mrf.mxu0 }
 0x1a3   :  { %v2180_v53 = vmax.f32 %v2082_v16, %v2131_v19  ;;  %v2182_v62 = vmax.f32 %v2084_v24, %v2133_v34  ;;  %v2087_v55 = vmax.f32 %v1940_v27, %v1989_v5  ;;  %v1938_v60 = vmax.f32 %v1444_v13, 0.0 }
 0x1a4   :  { %v2134_v51 = vmax.f32 %v1987_v43, %v2036_v63  ;;  %v2037_v59 = vmax.f32 %v1839_v21, 0.0  ;;  %v1447_v26 = vadd.f32 %v4196_v38, %v1446_v35  ;;  %v1990_v57 = vmax.f32 %v1652_v11, 0.0 }
 0x1a5   :  { %2230 = vst.msk [vmem:[%s4432_s3 + $0x160] sm:$0xff] %vm2185_vm3, %v2180_v53  ;;  %2232 = vst.msk [vmem:[%s4432_s3 + $0x170] sm:$0xff] %vm2185_vm3, %v2182_v62  ;;  %v2136_v22 = vmax.f32 %v4704_v14, %v2087_v55  ;;  %v2085_v47 = vmax.f32 %v1889_v50, %v1938_v60  ;;  %v1941_v9 = vmax.f32 %v1455_v25, 0.0  ;;  %v1988_v39 = vmax.f32 %v4228_v7, 0.0 }
 0x1a6   :  { %v1890_v36 = vmax.f32 %v1252_v54, 0.0  ;;  %v1939_v23 = vmax.f32 %v1447_v26, 0.0 }
 0x1a7   :  { %2186 = vst.msk [vmem:[%s4432_s3] sm:$0xff] %vm2185_vm3, %v2136_v22  ;;  %v2183_v5 = vmax.f32 %v2085_v47, %v2134_v51  ;;  %v2088_v46 = vmax.f32 %v1941_v9, %v1990_v57  ;;  %v2135_v0 = vmax.f32 %v1988_v39, %v2037_v59 }
 0x1a8   :  { %v2086_v38 = vmax.f32 %v1890_v36, %v1939_v23 }
 0x1a9   :  { %2233 = vst.msk [vmem:[%s4432_s3 + $0x178] sm:$0xff] %vm2185_vm3, %v2183_v5  ;;  %v2137_v20 = vmax.f32 %v4705_v49, %v2088_v46 }
 0x1aa   :  { %v2184_v10 = vmax.f32 %v2086_v38, %v2135_v0 }
 0x1ab   :  { %2187 = vst.msk [vmem:[%s4432_s3 + $0x8] sm:$0xff] %vm2185_vm3, %v2137_v20 }
 0x1ac   :  { %2234 = vst.msk [vmem:[%s4432_s3 + $0x180] sm:$0xff] %vm2185_vm3, %v2184_v10 }

// kernel: vgg_cam_forward.4
= control target key start
LH: loop header
LB: loop body
LE: loop exit
PB: predicated region body
PF: predicated region fallthrough
CT: control target
= control target key end

     0   :  { %v1016_v0 = vmov 0   ;;  %vm380_vm0 = vcmask 130048   ;;  %vm804_vm1 = vcmask 261120   ;;  %s1421_s1 = inlined_call_operand.vmem [shape: bf16[144,32], index: 1, kind: input, shape index: {}]   ;;  %s1422_s0 = inlined_call_operand.vmem [shape: bf16[416,144], index: 0, kind: input, shape index: {}]   ;;  %s1423_s2 = inlined_call_operand.vmem [shape: f32[1,32], index: 2, kind: input, shape index: {}]   ;;  %s1424_s3 = inlined_call_operand.vmem [shape: f32[104,32], index: 3, kind: output, shape index: {}]  }
   0x1   :  { %459 = vmatprep.subr.bf16.mxu0 %v1016_v0  ;;  %910 = vmatprep.subr.bf16.mxu1 %v1016_v0  ;;  %v929_v1 = vld [vmem:[%s1421_s1 + $0x38] sm:$0xff]   ;;  %v930_v2 = vld [vmem:[%s1421_s1 + $0x30] sm:$0xff]   ;;  %v931_v3 = vld [vmem:[%s1421_s1 + $0x28] sm:$0xff]  }
   0x2   :  { %460 = vmatpush1.bf16.msra.mxu0 %v929_v1  ;;  %919 = vmatpush1.bf16.msra.mxu1 %v929_v1  ;;  %v932_v4 = vld [vmem:[%s1421_s1 + $0x20] sm:$0xff]   ;;  %v943_v6 = vld [vmem:[%s1422_s0 + $0xd4] ss:$8 sps:$4 sm:$0xff]   ;;  %v935_v9 = vld [vmem:[%s1421_s1 + $0x8] sm:$0xff]  }
   0x3   :  { %461 = vmatprep.subr.bf16.mxu0 %v1016_v0  ;;  %911 = vmatprep.subr.bf16.mxu1 %v1016_v0  ;;  %v940_v5 = vld [vmem:[%s1422_s0 + $0x4] ss:$8 sps:$4 sm:$0xff]   ;;  %v933_v7 = vld [vmem:[%s1421_s1 + $0x18] sm:$0xff]   ;;  %v934_v8 = vld [vmem:[%s1421_s1 + $0x10] sm:$0xff]  }
   0x4   :  { %884 = vmatprep.mubr.msk.bf16.mxu0 %vm380_vm0, %v940_v5  ;;  %897 = vmatprep.mubr.msk.bf16.mxu1 %vm380_vm0, %v943_v6  ;;  %v936_v10 = vld [vmem:[%s1421_s1] sm:$0xff]   ;;  %v941_v13 = vld [vmem:[%s1422_s0 + $0xd0] ss:$8 sps:$4 sm:$0xff]   ;;  %v944_v14 = vld [vmem:[%s1422_s0 + $0x14] ss:$8 sps:$4 sm:$0xff]  }
   0x5   :  { %v937_v11 = vld [vmem:[%s1421_s1 + $0x40] sm:$0xff]   ;;  %v948_v16 = vld [vmem:[%s1422_s0 + $0x10] ss:$8 sps:$4 sm:$0xff]   ;;  %v952_v19 = vld [vmem:[%s1422_s0 + $0xf4] ss:$8 sps:$4 sm:$0xff]  }
   0x6   :  { %462 = vmatpush1.bf16.msra.mxu0 %v930_v2  ;;  %920 = vmatpush1.bf16.msra.mxu1 %v930_v2  ;;  %v938_v12 = vld [vmem:[%s1422_s0] ss:$8 sps:$4 sm:$0xff]   ;;  %v946_v15 = vld [vmem:[%s1422_s0 + $0xe4] ss:$8 sps:$4 sm:$0xff]   ;;  %v955_v21 = vld [vmem:[%s1422_s0 + $0xf0] ss:$8 sps:$4 sm:$0xff]  }
   0x7   :  { %463 = vmatprep.subr.bf16.mxu0 %v1016_v0  ;;  %912 = vmatprep.subr.bf16.mxu1 %v1016_v0  ;;  %v949_v17 = vld [vmem:[%s1422_s0 + $0xe0] ss:$8 sps:$4 sm:$0xff]   ;;  %v950_v18 = vld [vmem:[%s1422_s0 + $0x24] ss:$8 sps:$4 sm:$0xff]   ;;  %v956_v22 = vld [vmem:[%s1422_s0 + $0x34] ss:$8 sps:$4 sm:$0xff]  }
   0x8   :  { %v954_v20 = vld [vmem:[%s1422_s0 + $0x20] ss:$8 sps:$4 sm:$0xff]   ;;  %v958_v23 = vld [vmem:[%s1422_s0 + $0x104] ss:$8 sps:$4 sm:$0xff]   ;;  %v960_v24 = vld [vmem:[%s1422_s0 + $0x30] ss:$8 sps:$4 sm:$0xff]  }
   0x9   :  { %v961_v25 = vld [vmem:[%s1422_s0 + $0x100] ss:$8 sps:$4 sm:$0xff]   ;;  %v962_v26 = vld [vmem:[%s1422_s0 + $0x44] ss:$8 sps:$4 sm:$0xff]   ;;  %v964_v27 = vld [vmem:[%s1422_s0 + $0x114] ss:$8 sps:$4 sm:$0xff]  }
   0xa   :  { %464 = vmatpush1.bf16.msra.mxu0 %v931_v3  ;;  %921 = vmatpush1.bf16.msra.mxu1 %v931_v3  ;;  %v966_v28 = vld [vmem:[%s1422_s0 + $0x40] ss:$8 sps:$4 sm:$0xff]   ;;  %v967_v29 = vld [vmem:[%s1422_s0 + $0x110] ss:$8 sps:$4 sm:$0xff]   ;;  %v968_v30 = vld [vmem:[%s1422_s0 + $0x54] ss:$8 sps:$4 sm:$0xff]  }
   0xb   :  { %465 = vmatprep.subr.bf16.mxu0 %v1016_v0  ;;  %913 = vmatprep.subr.bf16.mxu1 %v1016_v0  ;;  %v970_v31 = vld [vmem:[%s1422_s0 + $0x124] ss:$8 sps:$4 sm:$0xff]   ;;  %v972_v32 = vld [vmem:[%s1422_s0 + $0x50] ss:$8 sps:$4 sm:$0xff]   ;;  %v973_v33 = vld [vmem:[%s1422_s0 + $0x120] ss:$8 sps:$4 sm:$0xff]  }
   0xc   :  { %v974_v34 = vld [vmem:[%s1422_s0 + $0x64] ss:$8 sps:$4 sm:$0xff]   ;;  %v976_v35 = vld [vmem:[%s1422_s0 + $0x134] ss:$8 sps:$4 sm:$0xff]   ;;  %v978_v36 = vld [vmem:[%s1422_s0 + $0x60] ss:$8 sps:$4 sm:$0xff]  }
   0xd   :  { %v979_v37 = vld [vmem:[%s1422_s0 + $0x130] ss:$8 sps:$4 sm:$0xff]   ;;  %v980_v38 = vld [vmem:[%s1422_s0 + $0x74] ss:$8 sps:$4 sm:$0xff]   ;;  %v982_v39 = vld [vmem:[%s1422_s0 + $0x144] ss:$8 sps:$4 sm:$0xff]  }
   0xe   :  { %466 = vmatpush1.bf16.msra.mxu0 %v932_v4  ;;  %922 = vmatpush1.bf16.msra.mxu1 %v932_v4  ;;  %v984_v40 = vld [vmem:[%s1422_s0 + $0x70] ss:$8 sps:$4 sm:$0xff]   ;;  %v985_v41 = vld [vmem:[%s1422_s0 + $0x140] ss:$8 sps:$4 sm:$0xff]   ;;  %v986_v42 = vld [vmem:[%s1422_s0 + $0x84] ss:$8 sps:$4 sm:$0xff]  }
   0xf   :  { %467 = vmatprep.subr.bf16.mxu0 %v1016_v0  ;;  %914 = vmatprep.subr.bf16.mxu1 %v1016_v0  ;;  %v988_v43 = vld [vmem:[%s1422_s0 + $0x154] ss:$8 sps:$4 sm:$0xff]   ;;  %v990_v44 = vld [vmem:[%s1422_s0 + $0x80] ss:$8 sps:$4 sm:$0xff]   ;;  %v991_v45 = vld [vmem:[%s1422_s0 + $0x150] ss:$8 sps:$4 sm:$0xff]  }
  0x10   :  { %v992_v46 = vld [vmem:[%s1422_s0 + $0x94] ss:$8 sps:$4 sm:$0xff]   ;;  %v994_v47 = vld [vmem:[%s1422_s0 + $0x164] ss:$8 sps:$4 sm:$0xff]   ;;  %v996_v48 = vld [vmem:[%s1422_s0 + $0x90] ss:$8 sps:$4 sm:$0xff]  }
  0x11   :  { %v997_v49 = vld [vmem:[%s1422_s0 + $0x160] ss:$8 sps:$4 sm:$0xff]   ;;  %v998_v50 = vld [vmem:[%s1422_s0 + $0xa4] ss:$8 sps:$4 sm:$0xff]   ;;  %v1000_v51 = vld [vmem:[%s1422_s0 + $0x174] ss:$8 sps:$4 sm:$0xff]  }
  0x12   :  { %468 = vmatpush1.bf16.msra.mxu0 %v933_v7  ;;  %923 = vmatpush1.bf16.msra.mxu1 %v933_v7  ;;  %v1002_v52 = vld [vmem:[%s1422_s0 + $0xa0] ss:$8 sps:$4 sm:$0xff]   ;;  %v1003_v53 = vld [vmem:[%s1422_s0 + $0x170] ss:$8 sps:$4 sm:$0xff]   ;;  %v1004_v54 = vld [vmem:[%s1422_s0 + $0xb4] ss:$8 sps:$4 sm:$0xff]  }
  0x13   :  { %469 = vmatprep.subr.bf16.mxu0 %v1016_v0  ;;  %915 = vmatprep.subr.bf16.mxu1 %v1016_v0  ;;  %v1006_v55 = vld [vmem:[%s1422_s0 + $0x184] ss:$8 sps:$4 sm:$0xff]   ;;  %v1008_v56 = vld [vmem:[%s1422_s0 + $0xb0] ss:$8 sps:$4 sm:$0xff]   ;;  %v1009_v57 = vld [vmem:[%s1422_s0 + $0x180] ss:$8 sps:$4 sm:$0xff]  }
  0x14   :  { %v1010_v58 = vld [vmem:[%s1422_s0 + $0xc4] ss:$8 sps:$4 sm:$0xff]   ;;  %v1012_v59 = vld [vmem:[%s1422_s0 + $0x194] ss:$8 sps:$4 sm:$0xff]   ;;  %v1014_v60 = vld [vmem:[%s1422_s0 + $0xc0] ss:$8 sps:$4 sm:$0xff]  }
  0x15   :  { %v1015_v61 = vld [vmem:[%s1422_s0 + $0x190] ss:$8 sps:$4 sm:$0xff]  }
  0x16   :  { %470 = vmatpush1.bf16.msra.mxu0 %v934_v8  ;;  %924 = vmatpush1.bf16.msra.mxu1 %v934_v8 }
  0x17   :  { %471 = vmatprep.subr.bf16.mxu0 %v1016_v0  ;;  %916 = vmatprep.subr.bf16.mxu1 %v1016_v0 }
  0x1a   :  { %472 = vmatpush1.bf16.msra.mxu0 %v935_v9  ;;  %925 = vmatpush1.bf16.msra.mxu1 %v935_v9 }
  0x1b   :  { %473 = vmatprep.subr.bf16.mxu0 %v1016_v0  ;;  %917 = vmatprep.subr.bf16.mxu1 %v1016_v0 }
  0x1e   :  { %474 = vmatpush1.bf16.msra.mxu0 %v936_v10  ;;  %926 = vmatpush1.bf16.msra.mxu1 %v936_v10 }
  0x1f   :  { %489 = vmatprep.subr.bf16.mxu0 %v1016_v0  ;;  %918 = vmatprep.subr.bf16.mxu1 %v1016_v0 }
  0x22   :  { %490 = vmatpush2.bf16.msra.mxu0 %v937_v11  ;;  %927 = vmatpush2.bf16.msra.mxu1 %v937_v11 }
  0x25   :  { %492 = vmatmul.mubr.bf16.vlgmr.msra.gmra.mxu0 %v938_v12  ;;  %596 = vmatmul.mubr.bf16.vlgmr.msra.gmra.mxu1 %v941_v13 }
  0x26   :  { %885 = vmatprep.mubr.msk.bf16.mxu0 %vm380_vm0, %v944_v14  ;;  %898 = vmatprep.mubr.msk.bf16.mxu1 %vm380_vm0, %v946_v15 }
  0x2d   :  { %500 = vmatmul.mubr.bf16.gmra.mxu0 %v948_v16  ;;  %604 = vmatmul.mubr.bf16.gmra.mxu1 %v949_v17 }
  0x2e   :  { %886 = vmatprep.mubr.msk.bf16.mxu0 %vm380_vm0, %v950_v18  ;;  %899 = vmatprep.mubr.msk.bf16.mxu1 %vm380_vm0, %v952_v19 }
  0x35   :  { %508 = vmatmul.mubr.bf16.gmra.mxu0 %v954_v20  ;;  %612 = vmatmul.mubr.bf16.gmra.mxu1 %v955_v21 }
  0x36   :  { %887 = vmatprep.mubr.msk.bf16.mxu0 %vm380_vm0, %v956_v22  ;;  %900 = vmatprep.mubr.msk.bf16.mxu1 %vm380_vm0, %v958_v23 }
  0x3d   :  { %516 = vmatmul.mubr.bf16.gmra.mxu0 %v960_v24  ;;  %620 = vmatmul.mubr.bf16.gmra.mxu1 %v961_v25 }
  0x3e   :  { %888 = vmatprep.mubr.msk.bf16.mxu0 %vm380_vm0, %v962_v26  ;;  %901 = vmatprep.mubr.msk.bf16.mxu1 %vm380_vm0, %v964_v27 }
  0x45   :  { %524 = vmatmul.mubr.bf16.gmra.mxu0 %v966_v28  ;;  %628 = vmatmul.mubr.bf16.gmra.mxu1 %v967_v29 }
  0x46   :  { %889 = vmatprep.mubr.msk.bf16.mxu0 %vm380_vm0, %v968_v30  ;;  %902 = vmatprep.mubr.msk.bf16.mxu1 %vm380_vm0, %v970_v31 }
  0x4d   :  { %532 = vmatmul.mubr.bf16.gmra.mxu0 %v972_v32  ;;  %636 = vmatmul.mubr.bf16.gmra.mxu1 %v973_v33 }
  0x4e   :  { %890 = vmatprep.mubr.msk.bf16.mxu0 %vm380_vm0, %v974_v34  ;;  %903 = vmatprep.mubr.msk.bf16.mxu1 %vm380_vm0, %v976_v35 }
  0x55   :  { %540 = vmatmul.mubr.bf16.gmra.mxu0 %v978_v36  ;;  %644 = vmatmul.mubr.bf16.gmra.mxu1 %v979_v37 }
  0x56   :  { %891 = vmatprep.mubr.msk.bf16.mxu0 %vm380_vm0, %v980_v38  ;;  %904 = vmatprep.mubr.msk.bf16.mxu1 %vm380_vm0, %v982_v39 }
  0x5d   :  { %548 = vmatmul.mubr.bf16.gmra.mxu0 %v984_v40  ;;  %652 = vmatmul.mubr.bf16.gmra.mxu1 %v985_v41 }
  0x5e   :  { %892 = vmatprep.mubr.msk.bf16.mxu0 %vm380_vm0, %v986_v42  ;;  %905 = vmatprep.mubr.msk.bf16.mxu1 %vm380_vm0, %v988_v43 }
  0x65   :  { %556 = vmatmul.mubr.bf16.gmra.mxu0 %v990_v44  ;;  %660 = vmatmul.mubr.bf16.gmra.mxu1 %v991_v45 }
  0x66   :  { %893 = vmatprep.mubr.msk.bf16.mxu0 %vm380_vm0, %v992_v46  ;;  %906 = vmatprep.mubr.msk.bf16.mxu1 %vm380_vm0, %v994_v47  ;;  %v1289_v46 = vld [vmem:[%s1423_s2] ss:$0 sm:$0xff] }
  0x6d   :  { %564 = vmatmul.mubr.bf16.gmra.mxu0 %v996_v48  ;;  %668 = vmatmul.mubr.bf16.gmra.mxu1 %v997_v49 }
  0x6e   :  { %894 = vmatprep.mubr.msk.bf16.mxu0 %vm380_vm0, %v998_v50  ;;  %907 = vmatprep.mubr.msk.bf16.mxu1 %vm380_vm0, %v1000_v51 }
  0x75   :  { %572 = vmatmul.mubr.bf16.gmra.mxu0 %v1002_v52  ;;  %676 = vmatmul.mubr.bf16.gmra.mxu1 %v1003_v53 }
  0x76   :  { %895 = vmatprep.mubr.msk.bf16.mxu0 %vm380_vm0, %v1004_v54  ;;  %908 = vmatprep.mubr.msk.bf16.mxu1 %vm380_vm0, %v1006_v55 }
  0x7d   :  { %580 = vmatmul.mubr.bf16.gmra.mxu0 %v1008_v56  ;;  %684 = vmatmul.mubr.bf16.gmra.mxu1 %v1009_v57 }
  0x7e   :  { %896 = vmatprep.mubr.msk.bf16.mxu0 %vm380_vm0, %v1010_v58  ;;  %909 = vmatprep.mubr.msk.bf16.mxu1 %vm380_vm0, %v1012_v59 }
  0x85   :  { %588 = vmatmul.mubr.bf16.gmra.mxu0 %v1014_v60  ;;  %692 = vmatmul.mubr.bf16.gmra.mxu1 %v1015_v61 }
  0xe5   :  { %v493_v62 = vpop.f32.mrf.mxu0  ;;  %v597_v63 = vpop.f32.mrf.mxu1 }
  0xe6   :  { %v494_v51 = vadd.f32 %v1289_v46, %v493_v62  ;;  %v598_v54 = vadd.f32 %v1289_v46, %v597_v63 }
  0xe7   :  { %v495_v0 = vpop.f32.mrf.mxu0  ;;  %v599_v1 = vpop.f32.mrf.mxu1 }
  0xe8   :  { %v700_v58 = vmax.f32 %v494_v51, 0.0 }
  0xe9   :  { %v496_v2 = vpop.f32.mrf.mxu0  ;;  %v600_v3 = vpop.f32.mrf.mxu1 }
  0xea   :  { %v497_v59 = vadd.f32 %v1289_v46, %v496_v2  ;;  %v601_v0 = vadd.f32 %v1289_v46, %v600_v3 }
  0xeb   :  { %v498_v4 = vpop.f32.mrf.mxu0  ;;  %v602_v5 = vpop.f32.mrf.mxu1 }
  0xec   :  { %v726_v5 = vmax.f32 %v598_v54, 0.0 }
  0xed   :  { %v1246_v6 = vpop.f32.mrf.mxu0  ;;  %v1248_v7 = vpop.f32.mrf.mxu1 }
  0xee   :  { %v606_v3 = vadd.f32 %v1289_v46, %v1248_v7 }
  0xef   :  { %v503_v8 = vpop.f32.mrf.mxu0  ;;  %v607_v9 = vpop.f32.mrf.mxu1 }
  0xf0   :  { %v502_v9 = vadd.f32 %v1289_v46, %v1246_v6  ;;  %v728_v7 = vmax.f32 %v606_v3, 0.0 }
  0xf1   :  { %v1250_v10 = vpop.f32.mrf.mxu0  ;;  %v1252_v11 = vpop.f32.mrf.mxu1 }
  0xf2   :  { %v505_v6 = vadd.f32 %v1289_v46, %v1250_v10 }
  0xf3   :  { %v506_v12 = vpop.f32.mrf.mxu0  ;;  %v610_v13 = vpop.f32.mrf.mxu1 }
  0xf5   :  { %v1254_v14 = vpop.f32.mrf.mxu0  ;;  %v1256_v15 = vpop.f32.mrf.mxu1 }
  0xf7   :  { %v511_v16 = vpop.f32.mrf.mxu0  ;;  %v615_v17 = vpop.f32.mrf.mxu1 }
  0xf8   :  { %v701_v16 = vmax.f32 %v497_v59, 0.0 }
  0xf9   :  { %v1258_v18 = vpop.f32.mrf.mxu0  ;;  %v1260_v19 = vpop.f32.mrf.mxu1 }
  0xfb   :  { %v514_v20 = vpop.f32.mrf.mxu0  ;;  %v618_v21 = vpop.f32.mrf.mxu1 }
  0xfc   :  { %v727_v21 = vmax.f32 %v601_v0, 0.0 }
  0xfd   :  { %v1262_v22 = vpop.f32.mrf.mxu0  ;;  %v1264_v23 = vpop.f32.mrf.mxu1 }
  0xff   :  { %v519_v24 = vpop.f32.mrf.mxu0  ;;  %v623_v25 = vpop.f32.mrf.mxu1 }
 0x101   :  { %v1266_v26 = vpop.f32.mrf.mxu0  ;;  %v1268_v27 = vpop.f32.mrf.mxu1 }
 0x103   :  { %v522_v28 = vpop.f32.mrf.mxu0  ;;  %v626_v29 = vpop.f32.mrf.mxu1 }
 0x105   :  { %v1270_v30 = vpop.f32.mrf.mxu0  ;;  %v1272_v31 = vpop.f32.mrf.mxu1 }
 0x107   :  { %v527_v32 = vpop.f32.mrf.mxu0  ;;  %v631_v33 = vpop.f32.mrf.mxu1 }
 0x109   :  { %v1274_v34 = vpop.f32.mrf.mxu0  ;;  %v1276_v35 = vpop.f32.mrf.mxu1 }
 0x10b   :  { %v530_v36 = vpop.f32.mrf.mxu0  ;;  %v634_v37 = vpop.f32.mrf.mxu1 }
 0x10c   :  { %v702_v36 = vmax.f32 %v502_v9, 0.0 }
 0x10d   :  { %v1278_v38 = vpop.f32.mrf.mxu0  ;;  %v1280_v39 = vpop.f32.mrf.mxu1 }
 0x10f   :  { %v535_v40 = vpop.f32.mrf.mxu0  ;;  %v639_v41 = vpop.f32.mrf.mxu1 }
 0x111   :  { %v1282_v42 = vpop.f32.mrf.mxu0  ;;  %v1284_v43 = vpop.f32.mrf.mxu1 }
 0x113   :  { %v538_v44 = vpop.f32.mrf.mxu0  ;;  %v642_v45 = vpop.f32.mrf.mxu1 }
 0x115   :  { %v1291_v47 = vpop.f32.mrf.mxu0  ;;  %v1293_v48 = vpop.f32.mrf.mxu1 }
 0x117   :  { %v543_v49 = vpop.f32.mrf.mxu0  ;;  %v647_v50 = vpop.f32.mrf.mxu1 }
 0x118   :  { %v609_v50 = vadd.f32 %v1289_v46, %v1252_v11 }
 0x119   :  { %v544_v52 = vpop.f32.mrf.mxu0  ;;  %v648_v53 = vpop.f32.mrf.mxu1 }
 0x11a   :  { %v545_v55 = vadd.f32 %v1289_v46, %v544_v52  ;;  %v649_v61 = vadd.f32 %v1289_v46, %v648_v53 }
 0x11b   :  { %v546_v56 = vpop.f32.mrf.mxu0  ;;  %v650_v57 = vpop.f32.mrf.mxu1 }
 0x11c   :  { %v713_v60 = vmax.f32 %v545_v55, 0.0  ;;  %v739_v2 = vmax.f32 %v649_v61, 0.0  ;;  %v703_v56 = vmax.f32 %v505_v6, 0.0  ;;  %v510_v57 = vadd.f32 %v1289_v46, %v1254_v14 }
 0x11d   :  { %v549_v1 = vpop.f32.mrf.mxu0  ;;  %v653_v4 = vpop.f32.mrf.mxu1  ;;  %v518_v6 = vadd.f32 %v1289_v46, %v1262_v22 }
 0x11e   :  { %v752_v62 = vadd.f32 %v713_v60, %v700_v58  ;;  %v550_v8 = vadd.f32 %v1289_v46, %v549_v1  ;;  %v654_v63 = vadd.f32 %v1289_v46, %v653_v4  ;;  %v729_v1 = vmax.f32 %v609_v50, 0.0 }
 0x11f   :  { %v551_v12 = vpop.f32.mrf.mxu0  ;;  %v655_v13 = vpop.f32.mrf.mxu1  ;;  %v614_v4 = vadd.f32 %v1289_v46, %v1256_v15 }
 0x120   :  { %v765_v17 = vadd.f32 %v752_v62, %v726_v5  ;;  %v714_v20 = vmax.f32 %v550_v8, 0.0  ;;  %v740_v32 = vmax.f32 %v654_v63, 0.0  ;;  %v704_v12 = vmax.f32 %v510_v57, 0.0 }
 0x121   :  { %v552_v24 = vpop.f32.mrf.mxu0  ;;  %v656_v25 = vpop.f32.mrf.mxu1  ;;  %v513_v13 = vadd.f32 %v1289_v46, %v1258_v18  ;;  %v730_v3 = vmax.f32 %v614_v4, 0.0 }
 0x122   :  { %v778_v28 = vadd.f32 %v765_v17, %v739_v2  ;;  %v753_v29 = vadd.f32 %v714_v20, %v701_v16  ;;  %v553_v33 = vadd.f32 %v1289_v46, %v552_v24  ;;  %v657_v49 = vadd.f32 %v1289_v46, %v656_v25 }
 0x123   :  { %v554_v37 = vpop.f32.mrf.mxu0  ;;  %v658_v40 = vpop.f32.mrf.mxu1  ;;  %v617_v24 = vadd.f32 %v1289_v46, %v1260_v19 }
 0x124   :  { %v791_v41 = vmul.f32 0.25, %v778_v28  ;;  %v766_v44 = vadd.f32 %v753_v29, %v727_v21  ;;  %v715_v45 = vmax.f32 %v553_v33, 0.0  ;;  %v741_v60 = vmax.f32 %v657_v49, 0.0 }
 0x125   :  { %v557_v51 = vpop.f32.mrf.mxu0  ;;  %v661_v52 = vpop.f32.mrf.mxu1  ;;  %v731_v49 = vmax.f32 %v617_v24, 0.0 }
 0x126   :  { %805 = vst.msk [vmem:[%s1424_s3] sm:$0xff] %vm804_vm1, %v791_v41  ;;  %v779_v10 = vadd.f32 %v766_v44, %v740_v32  ;;  %v754_v53 = vadd.f32 %v715_v45, %v702_v36  ;;  %v558_v54 = vadd.f32 %v1289_v46, %v557_v51  ;;  %v662_v55 = vadd.f32 %v1289_v46, %v661_v52 }
 0x127   :  { %v559_v58 = vpop.f32.mrf.mxu0  ;;  %v663_v59 = vpop.f32.mrf.mxu1  ;;  %v705_v36 = vmax.f32 %v513_v13, 0.0 }
 0x128   :  { %v792_v11 = vmul.f32 0.25, %v779_v10  ;;  %v767_v61 = vadd.f32 %v754_v53, %v728_v7  ;;  %v716_v0 = vmax.f32 %v558_v54, 0.0  ;;  %v742_v14 = vmax.f32 %v662_v55, 0.0 }
 0x129   :  { %v560_v5 = vpop.f32.mrf.mxu0  ;;  %v664_v62 = vpop.f32.mrf.mxu1  ;;  %v622_v7 = vadd.f32 %v1289_v46, %v1264_v23  ;;  %v706_v54 = vmax.f32 %v518_v6, 0.0  ;;  %v521_v55 = vadd.f32 %v1289_v46, %v1266_v26 }
 0x12a   :  { %806 = vst.msk [vmem:[%s1424_s3 + $0x8] sm:$0xff] %vm804_vm1, %v792_v11  ;;  %v780_v8 = vadd.f32 %v767_v61, %v741_v60  ;;  %v755_v63 = vadd.f32 %v716_v0, %v703_v56  ;;  %v561_v9 = vadd.f32 %v1289_v46, %v560_v5  ;;  %v665_v21 = vadd.f32 %v1289_v46, %v664_v62 }
 0x12b   :  { %v562_v16 = vpop.f32.mrf.mxu0  ;;  %v666_v2 = vpop.f32.mrf.mxu1  ;;  %v732_v60 = vmax.f32 %v622_v7, 0.0  ;;  %v625_v61 = vadd.f32 %v1289_v46, %v1268_v27  ;;  %v534_v7 = vadd.f32 %v1289_v46, %v1278_v38 }
 0x12c   :  { %v793_v17 = vmul.f32 0.25, %v780_v8  ;;  %v768_v15 = vadd.f32 %v755_v63, %v729_v1  ;;  %v717_v20 = vmax.f32 %v561_v9, 0.0  ;;  %v743_v41 = vmax.f32 %v665_v21, 0.0 }
 0x12d   :  { %v565_v25 = vpop.f32.mrf.mxu0  ;;  %v669_v28 = vpop.f32.mrf.mxu1  ;;  %v707_v8 = vmax.f32 %v521_v55, 0.0  ;;  %v526_v63 = vadd.f32 %v1289_v46, %v1270_v30  ;;  %v733_v2 = vmax.f32 %v625_v61, 0.0 }
 0x12e   :  { %807 = vst.msk [vmem:[%s1424_s3 + $0x10] sm:$0xff] %vm804_vm1, %v793_v17  ;;  %v781_v29 = vadd.f32 %v768_v15, %v742_v14  ;;  %v756_v18 = vadd.f32 %v717_v20, %v704_v12  ;;  %v566_v32 = vadd.f32 %v1289_v46, %v565_v25  ;;  %v670_v33 = vadd.f32 %v1289_v46, %v669_v28 }
 0x12f   :  { %v567_v37 = vpop.f32.mrf.mxu0  ;;  %v671_v40 = vpop.f32.mrf.mxu1  ;;  %v630_v17 = vadd.f32 %v1289_v46, %v1272_v31  ;;  %v708_v25 = vmax.f32 %v526_v63, 0.0  ;;  %v529_v28 = vadd.f32 %v1289_v46, %v1274_v34 }
 0x130   :  { %v794_v19 = vmul.f32 0.25, %v781_v29  ;;  %v769_v44 = vadd.f32 %v756_v18, %v730_v3  ;;  %v718_v45 = vmax.f32 %v566_v32, 0.0  ;;  %v744_v22 = vmax.f32 %v670_v33, 0.0 }
 0x131   :  { %v568_v50 = vpop.f32.mrf.mxu0  ;;  %v672_v51 = vpop.f32.mrf.mxu1  ;;  %v734_v6 = vmax.f32 %v630_v17, 0.0  ;;  %v633_v37 = vadd.f32 %v1289_v46, %v1276_v35 }
 0x132   :  { %808 = vst.msk [vmem:[%s1424_s3 + $0x18] sm:$0xff] %vm804_vm1, %v794_v19  ;;  %v782_v52 = vadd.f32 %v769_v44, %v743_v41  ;;  %v757_v10 = vadd.f32 %v718_v45, %v705_v36  ;;  %v569_v53 = vadd.f32 %v1289_v46, %v568_v50  ;;  %v673_v11 = vadd.f32 %v1289_v46, %v672_v51 }
 0x133   :  { %v570_v56 = vpop.f32.mrf.mxu0  ;;  %v674_v57 = vpop.f32.mrf.mxu1 }
 0x134   :  { %v795_v58 = vmul.f32 0.25, %v782_v52  ;;  %v770_v23 = vadd.f32 %v757_v10, %v731_v49  ;;  %v719_v59 = vmax.f32 %v569_v53, 0.0  ;;  %v745_v12 = vmax.f32 %v673_v11, 0.0 }
 0x135   :  { %v573_v0 = vpop.f32.mrf.mxu0  ;;  %v677_v1 = vpop.f32.mrf.mxu1  ;;  %v709_v49 = vmax.f32 %v529_v28, 0.0  ;;  %v735_v53 = vmax.f32 %v633_v37, 0.0  ;;  %v537_v11 = vadd.f32 %v1289_v46, %v1282_v42 }
 0x136   :  { %809 = vst.msk [vmem:[%s1424_s3 + $0x20] sm:$0xff] %vm804_vm1, %v795_v58  ;;  %v783_v4 = vadd.f32 %v770_v23, %v744_v22  ;;  %v758_v26 = vadd.f32 %v719_v59, %v706_v54  ;;  %v574_v5 = vadd.f32 %v1289_v46, %v573_v0  ;;  %v678_v62 = vadd.f32 %v1289_v46, %v677_v1 }
 0x137   :  { %v575_v14 = vpop.f32.mrf.mxu0  ;;  %v679_v9 = vpop.f32.mrf.mxu1  ;;  %v638_v54 = vadd.f32 %v1289_v46, %v1280_v39  ;;  %v710_v59 = vmax.f32 %v534_v7, 0.0 }
 0x138   :  { %v796_v27 = vmul.f32 0.25, %v783_v4  ;;  %v771_v13 = vadd.f32 %v758_v26, %v732_v60  ;;  %v720_v16 = vmax.f32 %v574_v5, 0.0  ;;  %v746_v30 = vmax.f32 %v678_v62, 0.0 }
 0x139   :  { %v576_v15 = vpop.f32.mrf.mxu0  ;;  %v680_v20 = vpop.f32.mrf.mxu1  ;;  %v736_v26 = vmax.f32 %v638_v54, 0.0  ;;  %v641_v5 = vadd.f32 %v1289_v46, %v1284_v43 }
 0x13a   :  { %810 = vst.msk [vmem:[%s1424_s3 + $0x28] sm:$0xff] %vm804_vm1, %v796_v27  ;;  %v784_v21 = vadd.f32 %v771_v13, %v745_v12  ;;  %v759_v3 = vadd.f32 %v720_v16, %v707_v8  ;;  %v577_v24 = vadd.f32 %v1289_v46, %v576_v15  ;;  %v681_v36 = vadd.f32 %v1289_v46, %v680_v20 }
 0x13b   :  { %v578_v29 = vpop.f32.mrf.mxu0  ;;  %v682_v18 = vpop.f32.mrf.mxu1  ;;  %v711_v27 = vmax.f32 %v537_v11, 0.0  ;;  %v542_v12 = vadd.f32 %v1289_v46, %v1291_v47  ;;  %v737_v20 = vmax.f32 %v641_v5, 0.0 }
 0x13c   :  { %v797_v32 = vmul.f32 0.25, %v784_v21  ;;  %v772_v31 = vadd.f32 %v759_v3, %v733_v2  ;;  %v721_v33 = vmax.f32 %v577_v24, 0.0  ;;  %v747_v52 = vmax.f32 %v681_v36, 0.0 }
 0x13d   :  { %v581_v40 = vpop.f32.mrf.mxu0  ;;  %v685_v19 = vpop.f32.mrf.mxu1  ;;  %v646_v21 = vadd.f32 %v1289_v46, %v1293_v48  ;;  %v712_v29 = vmax.f32 %v542_v12, 0.0 }
 0x13e   :  { %811 = vst.msk [vmem:[%s1424_s3 + $0x30] sm:$0xff] %vm804_vm1, %v797_v32  ;;  %v785_v41 = vadd.f32 %v772_v31, %v746_v30  ;;  %v760_v34 = vadd.f32 %v721_v33, %v708_v25  ;;  %v582_v44 = vadd.f32 %v1289_v46, %v581_v40  ;;  %v686_v45 = vadd.f32 %v1289_v46, %v685_v19 }
 0x13f   :  { %v583_v50 = vpop.f32.mrf.mxu0  ;;  %v687_v51 = vpop.f32.mrf.mxu1 }
 0x140   :  { %v798_v35 = vmul.f32 0.25, %v785_v41  ;;  %v773_v10 = vadd.f32 %v760_v34, %v734_v6  ;;  %v722_v22 = vmax.f32 %v582_v44, 0.0  ;;  %v748_v38 = vmax.f32 %v686_v45, 0.0 }
 0x141   :  { %v584_v55 = vpop.f32.mrf.mxu0  ;;  %v688_v56 = vpop.f32.mrf.mxu1  ;;  %v738_v6 = vmax.f32 %v646_v21, 0.0 }
 0x142   :  { %812 = vst.msk [vmem:[%s1424_s3 + $0x38] sm:$0xff] %vm804_vm1, %v798_v35  ;;  %v786_v57 = vadd.f32 %v773_v10, %v747_v52  ;;  %v761_v58 = vadd.f32 %v722_v22, %v709_v49  ;;  %v585_v23 = vadd.f32 %v1289_v46, %v584_v55  ;;  %v689_v4 = vadd.f32 %v1289_v46, %v688_v56 }
 0x143   :  { %v586_v60 = vpop.f32.mrf.mxu0  ;;  %v690_v61 = vpop.f32.mrf.mxu1 }
 0x144   :  { %v799_v0 = vmul.f32 0.25, %v786_v57  ;;  %v774_v39 = vadd.f32 %v761_v58, %v735_v53  ;;  %v723_v1 = vmax.f32 %v585_v23, 0.0  ;;  %v749_v2 = vmax.f32 %v689_v4, 0.0 }
 0x145   :  { %v589_v62 = vpop.f32.mrf.mxu0  ;;  %v693_v8 = vpop.f32.mrf.mxu1 }
 0x146   :  { %813 = vst.msk [vmem:[%s1424_s3 + $0x40] sm:$0xff] %vm804_vm1, %v799_v0  ;;  %v787_v63 = vadd.f32 %v774_v39, %v748_v38  ;;  %v762_v42 = vadd.f32 %v723_v1, %v710_v59  ;;  %v590_v14 = vadd.f32 %v1289_v46, %v589_v62  ;;  %v694_v9 = vadd.f32 %v1289_v46, %v693_v8 }
 0x147   :  { %v591_v13 = vpop.f32.mrf.mxu0  ;;  %v695_v16 = vpop.f32.mrf.mxu1 }
 0x148   :  { %v800_v43 = vmul.f32 0.25, %v787_v63  ;;  %v775_v17 = vadd.f32 %v762_v42, %v736_v26  ;;  %v724_v15 = vmax.f32 %v590_v14, 0.0  ;;  %v750_v47 = vmax.f32 %v694_v9, 0.0 }
 0x149   :  { %v592_v3 = vpop.f32.mrf.mxu0  ;;  %v696_v30 = vpop.f32.mrf.mxu1 }
 0x14a   :  { %814 = vst.msk [vmem:[%s1424_s3 + $0x48] sm:$0xff] %vm804_vm1, %v800_v43  ;;  %v788_v24 = vadd.f32 %v775_v17, %v749_v2  ;;  %v763_v25 = vadd.f32 %v724_v15, %v711_v27  ;;  %v593_v28 = vadd.f32 %v1289_v46, %v592_v3  ;;  %v697_v48 = vadd.f32 %v1289_v46, %v696_v30 }
 0x14b   :  { %v594_v18 = vpop.f32.mrf.mxu0  ;;  %v698_v32 = vpop.f32.mrf.mxu1 }
 0x14c   :  { %v801_v31 = vmul.f32 0.25, %v788_v24  ;;  %v776_v33 = vadd.f32 %v763_v25, %v737_v20  ;;  %v725_v36 = vmax.f32 %v593_v28, 0.0  ;;  %v751_v41 = vmax.f32 %v697_v48, 0.0 }
 0x14e   :  { %815 = vst.msk [vmem:[%s1424_s3 + $0x50] sm:$0xff] %vm804_vm1, %v801_v31  ;;  %v789_v37 = vadd.f32 %v776_v33, %v750_v47  ;;  %v764_v40 = vadd.f32 %v725_v36, %v712_v29 }
 0x150   :  { %v802_v19 = vmul.f32 0.25, %v789_v37  ;;  %v777_v34 = vadd.f32 %v764_v40, %v738_v6 }
 0x152   :  { %816 = vst.msk [vmem:[%s1424_s3 + $0x58] sm:$0xff] %vm804_vm1, %v802_v19  ;;  %v790_v44 = vadd.f32 %v777_v34, %v751_v41 }
 0x154   :  { %v803_v45 = vmul.f32 0.25, %v790_v44 }
 0x156   :  { %817 = vst.msk [vmem:[%s1424_s3 + $0x60] sm:$0xff] %vm804_vm1, %v803_v45 }

// kernel: vgg_cam_forward.5
= control target key start
LH: loop header
LB: loop body
LE: loop exit
PB: predicated region body
PF: predicated region fallthrough
CT: control target
= control target key end

     0   :  { %v423_v36 = vlaneseq  ;;  %v5818_v37 = vmov 1966171168   ;;  %vm2505_vm0 = vcmask 261120   ;;  %vm4396_vm1 = vcmask 156672   ;;  %s7695_s1 = inlined_call_operand.vmem [shape: bf16[1568,512], index: 1, kind: input, shape index: {}]   ;;  %s7696_s0 = inlined_call_operand.vmem [shape: bf16[2,1568], index: 0, kind: input, shape index: {}]   ;;  %s7697_s2 = inlined_call_operand.vmem [shape: f32[1,512], index: 2, kind: input, shape index: {}]   ;;  %s7698_s3 = inlined_call_operand.vmem [shape: bf16[512,512], index: 3, kind: input, shape index: {}]   ;;  %s7699_s5 = inlined_call_operand.vmem [shape: bf16[512,20], index: 5, kind: input, shape index: {}]   ;;  %s7700_s4 = inlined_call_operand.vmem [shape: f32[1,512], index: 4, kind: input, shape index: {}]   ;;  %s7701_s6 = inlined_call_operand.vmem [shape: f32[1,20], index: 6, kind: input, shape index: {}]   ;;  %s7702_s7 = inlined_call_operand.vmem [shape: f32[2,20], index: 7, kind: output, shape index: {}]  }
   0x1   :  { %v5003_v0 = vld [vmem:[%s7695_s1 + $0xe4] ss:$16 sps:$4 sm:$0xff]   ;;  %v5007_v2 = vld [vmem:[%s7695_s1 + $0xe0] ss:$16 sps:$4 sm:$0xff]   ;;  %v447_v38 = vunpack.c.l.s4 %v5818_v37 }
   0x2   :  { %v5005_v1 = vld [vmem:[%s7695_s1 + $0x2e4] ss:$16 sps:$4 sm:$0xff]   ;;  %2509 = vmatprep.subr.bf16.mxu0 %v5003_v0  ;;  %v5008_v3 = vld [vmem:[%s7695_s1 + $0x2e0] ss:$16 sps:$4 sm:$0xff]   ;;  %v5977_v42 = vshrl.u32 %v423_v36, 7 }
   0x3   :  { %2550 = vmatprep.subr.bf16.mxu1 %v5005_v1  ;;  %v5009_v4 = vld [vmem:[%s7695_s1 + $0xc4] ss:$16 sps:$4 sm:$0xff]   ;;  %2510 = vmatpush1.bf16.msra.mxu0 %v5007_v2  ;;  %v5013_v6 = vld [vmem:[%s7695_s1 + $0xc0] ss:$16 sps:$4 sm:$0xff]   ;;  %v448_v43 = vunpack.c.0.s8 %v447_v38 }
   0x4   :  { %2551 = vmatpush1.bf16.msra.mxu1 %v5008_v3  ;;  %v5011_v5 = vld [vmem:[%s7695_s1 + $0x2c4] ss:$16 sps:$4 sm:$0xff]   ;;  %2511 = vmatprep.subr.bf16.mxu0 %v5009_v4  ;;  %v5014_v7 = vld [vmem:[%s7695_s1 + $0x2c0] ss:$16 sps:$4 sm:$0xff]  }
   0x5   :  { %2552 = vmatprep.subr.bf16.mxu1 %v5011_v5  ;;  %v5015_v8 = vld [vmem:[%s7695_s1 + $0xa4] ss:$16 sps:$4 sm:$0xff]   ;;  %v5019_v10 = vld [vmem:[%s7695_s1 + $0xa0] ss:$16 sps:$4 sm:$0xff]   ;;  %v5995_v49 = vsub.s32 %v448_v43, %v5977_v42 }
   0x6   :  { %v5017_v9 = vld [vmem:[%s7695_s1 + $0x2a4] ss:$16 sps:$4 sm:$0xff]   ;;  %v5020_v11 = vld [vmem:[%s7695_s1 + $0x2a0] ss:$16 sps:$4 sm:$0xff]  }
   0x7   :  { %2512 = vmatpush1.bf16.msra.mxu0 %v5013_v6  ;;  %v5021_v12 = vld [vmem:[%s7695_s1 + $0x84] ss:$16 sps:$4 sm:$0xff]   ;;  %v5025_v14 = vld [vmem:[%s7695_s1 + $0x80] ss:$16 sps:$4 sm:$0xff]  }
   0x8   :  { %2553 = vmatpush1.bf16.msra.mxu1 %v5014_v7  ;;  %2513 = vmatprep.subr.bf16.mxu0 %v5015_v8  ;;  %v5023_v13 = vld [vmem:[%s7695_s1 + $0x284] ss:$16 sps:$4 sm:$0xff]   ;;  %v5026_v15 = vld [vmem:[%s7695_s1 + $0x280] ss:$16 sps:$4 sm:$0xff]  }
   0x9   :  { %2554 = vmatprep.subr.bf16.mxu1 %v5017_v9  ;;  %v5027_v16 = vld [vmem:[%s7695_s1 + $0x64] ss:$16 sps:$4 sm:$0xff]   ;;  %v5031_v18 = vld [vmem:[%s7695_s1 + $0x60] ss:$16 sps:$4 sm:$0xff]  }
   0xa   :  { %v5029_v17 = vld [vmem:[%s7695_s1 + $0x264] ss:$16 sps:$4 sm:$0xff]   ;;  %v5032_v19 = vld [vmem:[%s7695_s1 + $0x260] ss:$16 sps:$4 sm:$0xff]  }
   0xb   :  { %2514 = vmatpush1.bf16.msra.mxu0 %v5019_v10  ;;  %v5033_v20 = vld [vmem:[%s7695_s1 + $0x44] ss:$16 sps:$4 sm:$0xff]   ;;  %v5037_v22 = vld [vmem:[%s7695_s1 + $0x40] ss:$16 sps:$4 sm:$0xff]  }
   0xc   :  { %2555 = vmatpush1.bf16.msra.mxu1 %v5020_v11  ;;  %2515 = vmatprep.subr.bf16.mxu0 %v5021_v12  ;;  %v5035_v21 = vld [vmem:[%s7695_s1 + $0x244] ss:$16 sps:$4 sm:$0xff]   ;;  %v5038_v23 = vld [vmem:[%s7695_s1 + $0x240] ss:$16 sps:$4 sm:$0xff]  }
   0xd   :  { %2556 = vmatprep.subr.bf16.mxu1 %v5023_v13  ;;  %v5039_v24 = vld [vmem:[%s7695_s1 + $0x24] ss:$16 sps:$4 sm:$0xff]   ;;  %v5043_v26 = vld [vmem:[%s7695_s1 + $0x20] ss:$16 sps:$4 sm:$0xff]  }
   0xe   :  { %v5041_v25 = vld [vmem:[%s7695_s1 + $0x224] ss:$16 sps:$4 sm:$0xff]   ;;  %v5044_v27 = vld [vmem:[%s7695_s1 + $0x220] ss:$16 sps:$4 sm:$0xff]  }
   0xf   :  { %2516 = vmatpush1.bf16.msra.mxu0 %v5025_v14  ;;  %v5045_v28 = vld [vmem:[%s7695_s1 + $0x4] ss:$16 sps:$4 sm:$0xff]   ;;  %v5049_v30 = vld [vmem:[%s7695_s1] ss:$16 sps:$4 sm:$0xff]  }
  0x10   :  { %2557 = vmatpush1.bf16.msra.mxu1 %v5026_v15  ;;  %2517 = vmatprep.subr.bf16.mxu0 %v5027_v16  ;;  %v5047_v29 = vld [vmem:[%s7695_s1 + $0x204] ss:$16 sps:$4 sm:$0xff]   ;;  %v5050_v31 = vld [vmem:[%s7695_s1 + $0x200] ss:$16 sps:$4 sm:$0xff]  }
  0x11   :  { %2558 = vmatprep.subr.bf16.mxu1 %v5029_v17  ;;  %v5051_v32 = vld [vmem:[%s7695_s1 + $0x1e4] ss:$16 sps:$4 sm:$0xff]   ;;  %v5055_v34 = vld [vmem:[%s7695_s1 + $0x1e0] ss:$16 sps:$4 sm:$0xff]  }
  0x12   :  { %v5053_v33 = vld [vmem:[%s7695_s1 + $0x3e4] ss:$16 sps:$4 sm:$0xff]   ;;  %v5056_v35 = vld [vmem:[%s7695_s1 + $0x3e0] ss:$16 sps:$4 sm:$0xff]  }
  0x13   :  { %2518 = vmatpush1.bf16.msra.mxu0 %v5031_v18  ;;  %v5057_v39 = vld [vmem:[%s7695_s1 + $0x1c4] ss:$16 sps:$4 sm:$0xff]   ;;  %v5061_v41 = vld [vmem:[%s7695_s1 + $0x1c0] ss:$16 sps:$4 sm:$0xff]  }
  0x14   :  { %2559 = vmatpush1.bf16.msra.mxu1 %v5032_v19  ;;  %2519 = vmatprep.subr.bf16.mxu0 %v5033_v20  ;;  %v5059_v40 = vld [vmem:[%s7695_s1 + $0x3c4] ss:$16 sps:$4 sm:$0xff]   ;;  %v5062_v44 = vld [vmem:[%s7695_s1 + $0x3c0] ss:$16 sps:$4 sm:$0xff]  }
  0x15   :  { %2560 = vmatprep.subr.bf16.mxu1 %v5035_v21  ;;  %v5063_v45 = vld [vmem:[%s7695_s1 + $0x1a4] ss:$16 sps:$4 sm:$0xff]   ;;  %v5067_v47 = vld [vmem:[%s7695_s1 + $0x1a0] ss:$16 sps:$4 sm:$0xff]  }
  0x16   :  { %v5065_v46 = vld [vmem:[%s7695_s1 + $0x3a4] ss:$16 sps:$4 sm:$0xff]   ;;  %v5068_v48 = vld [vmem:[%s7695_s1 + $0x3a0] ss:$16 sps:$4 sm:$0xff]  }
  0x17   :  { %2520 = vmatpush1.bf16.msra.mxu0 %v5037_v22  ;;  %v5069_v50 = vld [vmem:[%s7695_s1 + $0x184] ss:$16 sps:$4 sm:$0xff]   ;;  %v5073_v53 = vld [vmem:[%s7695_s1 + $0x180] ss:$16 sps:$4 sm:$0xff]  }
  0x18   :  { %2561 = vmatpush1.bf16.msra.mxu1 %v5038_v23  ;;  %2521 = vmatprep.subr.bf16.mxu0 %v5039_v24  ;;  %v5071_v51 = vld [vmem:[%s7695_s1 + $0x384] ss:$16 sps:$4 sm:$0xff]   ;;  %v5074_v55 = vld [vmem:[%s7695_s1 + $0x380] ss:$16 sps:$4 sm:$0xff]  }
  0x19   :  { %2562 = vmatprep.subr.bf16.mxu1 %v5041_v25  ;;  %v27_v52 = vld [vmem:[%s7696_s0] sm:$0xff] }
  0x1a   :  { %v452_v54 = vrot.slane %v27_v52, %v5995_v49  ;;  %v5075_v56 = vld [vmem:[%s7695_s1 + $0x164] ss:$16 sps:$4 sm:$0xff]   ;;  %v5079_v59 = vld [vmem:[%s7695_s1 + $0x160] ss:$16 sps:$4 sm:$0xff]   ;;  %v445_v1 = vcombine.high %v27_v52, %v27_v52 }
  0x1b   :  { %2522 = vmatpush1.bf16.msra.mxu0 %v5043_v26  ;;  %v5077_v57 = vld [vmem:[%s7695_s1 + $0x364] ss:$16 sps:$4 sm:$0xff]   ;;  %v5080_v61 = vld [vmem:[%s7695_s1 + $0x360] ss:$16 sps:$4 sm:$0xff]  }
  0x1c   :  { %2563 = vmatpush1.bf16.msra.mxu1 %v5044_v27  ;;  %2523 = vmatprep.subr.bf16.mxu0 %v5045_v28  ;;  %v460_v58 = vcombine.high %v452_v54, %v452_v54  ;;  %v5081_v62 = vld [vmem:[%s7695_s1 + $0x144] ss:$16 sps:$4 sm:$0xff]   ;;  %v5085_v2 = vld [vmem:[%s7695_s1 + $0x140] ss:$16 sps:$4 sm:$0xff]   ;;  %v6053_v6 = vrot.slane %v445_v1, %v5995_v49  ;;  %v6073_v13 = vrot.slane %v452_v54, %v5995_v49 }
  0x1d   :  { %2564 = vmatprep.subr.bf16.mxu1 %v5047_v29  ;;  %v5083_v63 = vld [vmem:[%s7695_s1 + $0x344] ss:$16 sps:$4 sm:$0xff]   ;;  %v5086_v3 = vld [vmem:[%s7695_s1 + $0x340] ss:$16 sps:$4 sm:$0xff]  }
  0x1e   :  { %v6023_v60 = vrot.slane %v460_v58, %v5995_v49  ;;  %v5087_v4 = vld [vmem:[%s7695_s1 + $0x124] ss:$16 sps:$4 sm:$0xff]   ;;  %v5091_v7 = vld [vmem:[%s7695_s1 + $0x120] ss:$16 sps:$4 sm:$0xff]   ;;  %v461_v11 = vcombine.high %v6053_v6, %v6053_v6  ;;  %v6089_v18 = vcombine.high %v6073_v13, %v6073_v13 }
  0x1f   :  { %2524 = vmatpush1.bf16.msra.mxu0 %v5049_v30  ;;  %v5089_v5 = vld [vmem:[%s7695_s1 + $0x324] ss:$16 sps:$4 sm:$0xff]   ;;  %v5092_v8 = vld [vmem:[%s7695_s1 + $0x320] ss:$16 sps:$4 sm:$0xff]  }
  0x20   :  { %2565 = vmatpush1.bf16.msra.mxu1 %v5050_v31  ;;  %2525 = vmatprep.subr.bf16.mxu0 %v5051_v32  ;;  %v6036_v0 = vcombine.high %v6023_v60, %v6023_v60  ;;  %v5093_v9 = vld [vmem:[%s7695_s1 + $0x104] ss:$16 sps:$4 sm:$0xff]   ;;  %v5097_v12 = vld [vmem:[%s7695_s1 + $0x100] ss:$16 sps:$4 sm:$0xff]   ;;  %v6085_v17 = vrot.slane %v461_v11, %v5995_v49 }
  0x21   :  { %2566 = vmatprep.subr.bf16.mxu1 %v5053_v33  ;;  %2541 = vmatprep.mubr.bf16.mxu0 %v6023_v60  ;;  %v5095_v10 = vld [vmem:[%s7695_s1 + $0x304] ss:$16 sps:$4 sm:$0xff]   ;;  %v5098_v14 = vld [vmem:[%s7695_s1 + $0x300] ss:$16 sps:$4 sm:$0xff]  }
  0x22   :  { %2582 = vmatprep.mubr.bf16.mxu1 %v6036_v0  ;;  %v5101_v15 = vld [vmem:[%s7695_s1 + $0x4e4] ss:$16 sps:$4 sm:$0xff]   ;;  %v5099_v19 = vld [vmem:[%s7695_s1 + $0x4e0] ss:$16 sps:$4 sm:$0xff]   ;;  %v6105_v23 = vcombine.high %v6085_v17, %v6085_v17 }
  0x23   :  { %2526 = vmatpush2.bf16.msra.mxu0 %v5055_v34  ;;  %v5104_v16 = vld [vmem:[%s7695_s1 + $0x6e4] ss:$16 sps:$4 sm:$0xff]   ;;  %v5102_v20 = vld [vmem:[%s7695_s1 + $0x6e0] ss:$16 sps:$4 sm:$0xff]  }
  0x24   :  { %2567 = vmatpush2.bf16.msra.mxu1 %v5056_v35  ;;  %2527 = vmatprep.subr.bf16.mxu0 %v5057_v39  ;;  %v5107_v21 = vld [vmem:[%s7695_s1 + $0x4c4] ss:$16 sps:$4 sm:$0xff]   ;;  %v5105_v24 = vld [vmem:[%s7695_s1 + $0x4c0] ss:$16 sps:$4 sm:$0xff]  }
  0x25   :  { %2568 = vmatprep.subr.bf16.mxu1 %v5059_v40  ;;  %v5110_v22 = vld [vmem:[%s7695_s1 + $0x6c4] ss:$16 sps:$4 sm:$0xff]   ;;  %v5108_v25 = vld [vmem:[%s7695_s1 + $0x6c0] ss:$16 sps:$4 sm:$0xff]  }
  0x26   :  { %v5113_v26 = vld [vmem:[%s7695_s1 + $0x4a4] ss:$16 sps:$4 sm:$0xff]   ;;  %v5111_v28 = vld [vmem:[%s7695_s1 + $0x4a0] ss:$16 sps:$4 sm:$0xff]  }
  0x27   :  { %2528 = vmatpush2.bf16.msra.mxu0 %v5061_v41  ;;  %v5116_v27 = vld [vmem:[%s7695_s1 + $0x6a4] ss:$16 sps:$4 sm:$0xff]   ;;  %v5114_v29 = vld [vmem:[%s7695_s1 + $0x6a0] ss:$16 sps:$4 sm:$0xff]  }
  0x28   :  { %2569 = vmatpush2.bf16.msra.mxu1 %v5062_v44  ;;  %2529 = vmatprep.subr.bf16.mxu0 %v5063_v45  ;;  %v5119_v30 = vld [vmem:[%s7695_s1 + $0x484] ss:$16 sps:$4 sm:$0xff]   ;;  %v5117_v32 = vld [vmem:[%s7695_s1 + $0x480] ss:$16 sps:$4 sm:$0xff]  }
  0x29   :  { %2570 = vmatprep.subr.bf16.mxu1 %v5065_v46  ;;  %v5122_v31 = vld [vmem:[%s7695_s1 + $0x684] ss:$16 sps:$4 sm:$0xff]   ;;  %v5120_v33 = vld [vmem:[%s7695_s1 + $0x680] ss:$16 sps:$4 sm:$0xff]  }
  0x2a   :  { %v5125_v34 = vld [vmem:[%s7695_s1 + $0x464] ss:$16 sps:$4 sm:$0xff]   ;;  %v5123_v36 = vld [vmem:[%s7695_s1 + $0x460] ss:$16 sps:$4 sm:$0xff]  }
  0x2b   :  { %2530 = vmatpush2.bf16.msra.mxu0 %v5067_v47  ;;  %v5128_v35 = vld [vmem:[%s7695_s1 + $0x664] ss:$16 sps:$4 sm:$0xff]   ;;  %v5126_v37 = vld [vmem:[%s7695_s1 + $0x660] ss:$16 sps:$4 sm:$0xff]  }
  0x2c   :  { %2571 = vmatpush2.bf16.msra.mxu1 %v5068_v48  ;;  %2531 = vmatprep.subr.bf16.mxu0 %v5069_v50  ;;  %v5131_v38 = vld [vmem:[%s7695_s1 + $0x444] ss:$16 sps:$4 sm:$0xff]   ;;  %v5129_v40 = vld [vmem:[%s7695_s1 + $0x440] ss:$16 sps:$4 sm:$0xff]  }
  0x2d   :  { %2572 = vmatprep.subr.bf16.mxu1 %v5071_v51  ;;  %v5134_v39 = vld [vmem:[%s7695_s1 + $0x644] ss:$16 sps:$4 sm:$0xff]   ;;  %v5132_v41 = vld [vmem:[%s7695_s1 + $0x640] ss:$16 sps:$4 sm:$0xff]  }
  0x2e   :  { %v5137_v43 = vld [vmem:[%s7695_s1 + $0x424] ss:$16 sps:$4 sm:$0xff]   ;;  %v5135_v45 = vld [vmem:[%s7695_s1 + $0x420] ss:$16 sps:$4 sm:$0xff]  }
  0x2f   :  { %2532 = vmatpush2.bf16.msra.mxu0 %v5073_v53  ;;  %v5140_v44 = vld [vmem:[%s7695_s1 + $0x624] ss:$16 sps:$4 sm:$0xff]   ;;  %v5138_v46 = vld [vmem:[%s7695_s1 + $0x620] ss:$16 sps:$4 sm:$0xff]  }
  0x30   :  { %2573 = vmatpush2.bf16.msra.mxu1 %v5074_v55  ;;  %2533 = vmatprep.subr.bf16.mxu0 %v5075_v56  ;;  %v5143_v47 = vld [vmem:[%s7695_s1 + $0x404] ss:$16 sps:$4 sm:$0xff]   ;;  %v5141_v50 = vld [vmem:[%s7695_s1 + $0x400] ss:$16 sps:$4 sm:$0xff]  }
  0x31   :  { %2574 = vmatprep.subr.bf16.mxu1 %v5077_v57  ;;  %v5146_v48 = vld [vmem:[%s7695_s1 + $0x604] ss:$16 sps:$4 sm:$0xff]   ;;  %v5144_v51 = vld [vmem:[%s7695_s1 + $0x600] ss:$16 sps:$4 sm:$0xff]  }
  0x32   :  { %v5149_v52 = vld [vmem:[%s7695_s1 + $0x5e4] ss:$16 sps:$4 sm:$0xff]   ;;  %v5147_v54 = vld [vmem:[%s7695_s1 + $0x5e0] ss:$16 sps:$4 sm:$0xff]  }
  0x33   :  { %2534 = vmatpush2.bf16.msra.mxu0 %v5079_v59  ;;  %v5152_v53 = vld [vmem:[%s7695_s1 + $0x7e4] ss:$16 sps:$4 sm:$0xff]   ;;  %v5150_v55 = vld [vmem:[%s7695_s1 + $0x7e0] ss:$16 sps:$4 sm:$0xff]  }
  0x34   :  { %2575 = vmatpush2.bf16.msra.mxu1 %v5080_v61  ;;  %2535 = vmatprep.subr.bf16.mxu0 %v5081_v62  ;;  %v5155_v56 = vld [vmem:[%s7695_s1 + $0x5c4] ss:$16 sps:$4 sm:$0xff]   ;;  %v5153_v58 = vld [vmem:[%s7695_s1 + $0x5c0] ss:$16 sps:$4 sm:$0xff]  }
  0x35   :  { %2576 = vmatprep.subr.bf16.mxu1 %v5083_v63  ;;  %v5158_v57 = vld [vmem:[%s7695_s1 + $0x7c4] ss:$16 sps:$4 sm:$0xff]   ;;  %v5156_v59 = vld [vmem:[%s7695_s1 + $0x7c0] ss:$16 sps:$4 sm:$0xff]  }
  0x36   :  { %v5161_v61 = vld [vmem:[%s7695_s1 + $0x5a4] ss:$16 sps:$4 sm:$0xff]   ;;  %v5159_v63 = vld [vmem:[%s7695_s1 + $0x5a0] ss:$16 sps:$4 sm:$0xff]  }
  0x37   :  { %2536 = vmatpush2.bf16.msra.mxu0 %v5085_v2  ;;  %v5164_v62 = vld [vmem:[%s7695_s1 + $0x7a4] ss:$16 sps:$4 sm:$0xff]   ;;  %v5162_v1 = vld [vmem:[%s7695_s1 + $0x7a0] ss:$16 sps:$4 sm:$0xff]  }
  0x38   :  { %2577 = vmatpush2.bf16.msra.mxu1 %v5086_v3  ;;  %2537 = vmatprep.subr.bf16.mxu0 %v5087_v4  ;;  %v5167_v2 = vld [vmem:[%s7695_s1 + $0x584] ss:$16 sps:$4 sm:$0xff]   ;;  %v5165_v4 = vld [vmem:[%s7695_s1 + $0x580] ss:$16 sps:$4 sm:$0xff]  }
  0x39   :  { %2578 = vmatprep.subr.bf16.mxu1 %v5089_v5  ;;  %v5170_v3 = vld [vmem:[%s7695_s1 + $0x784] ss:$16 sps:$4 sm:$0xff]   ;;  %v5168_v5 = vld [vmem:[%s7695_s1 + $0x780] ss:$16 sps:$4 sm:$0xff]  }
  0x3a   :  { %v5179_v11 = vld [vmem:[%s7695_s1 + $0x544] ss:$16 sps:$4 sm:$0xff]  }
  0x3b   :  { %2538 = vmatpush2.bf16.msra.mxu0 %v5091_v7  ;;  %v5173_v7 = vld [vmem:[%s7695_s1 + $0x564] ss:$16 sps:$4 sm:$0xff]  }
  0x3c   :  { %2579 = vmatpush2.bf16.msra.mxu1 %v5092_v8  ;;  %2539 = vmatprep.subr.bf16.mxu0 %v5093_v9  ;;  %v5176_v8 = vld [vmem:[%s7695_s1 + $0x764] ss:$16 sps:$4 sm:$0xff]   ;;  %v5171_v9 = vld [vmem:[%s7695_s1 + $0x560] ss:$16 sps:$4 sm:$0xff]  }
  0x3d   :  { %2580 = vmatprep.subr.bf16.mxu1 %v5095_v10  ;;  %v5174_v10 = vld [vmem:[%s7695_s1 + $0x760] ss:$16 sps:$4 sm:$0xff]  }
  0x3f   :  { %2540 = vmatpush2.bf16.msra.mxu0 %v5097_v12  ;;  %v5182_v12 = vld [vmem:[%s7695_s1 + $0x744] ss:$16 sps:$4 sm:$0xff]  }
  0x40   :  { %2581 = vmatpush2.bf16.msra.mxu1 %v5098_v14  ;;  %2591 = vmatprep.subr.bf16.mxu0 %v5101_v15  ;;  %v5177_v14 = vld [vmem:[%s7695_s1 + $0x540] ss:$16 sps:$4 sm:$0xff]  }
  0x41   :  { %2632 = vmatprep.subr.bf16.mxu1 %v5104_v16  ;;  %v5180_v15 = vld [vmem:[%s7695_s1 + $0x740] ss:$16 sps:$4 sm:$0xff]   ;;  %v5185_v16 = vld [vmem:[%s7695_s1 + $0x524] ss:$16 sps:$4 sm:$0xff]  }
  0x42   :  { %2542 = vmatmul.mubr.bf16.vlgmr.msra.gmra.mxu0 %v6073_v13 }
  0x43   :  { %2583 = vmatmul.mubr.bf16.vlgmr.msra.gmra.mxu1 %v6089_v18  ;;  %2592 = vmatpush1.bf16.msra.mxu0 %v5099_v19  ;;  %v5188_v19 = vld [vmem:[%s7695_s1 + $0x724] ss:$16 sps:$4 sm:$0xff]  }
  0x44   :  { %2633 = vmatpush1.bf16.msra.mxu1 %v5102_v20  ;;  %2593 = vmatprep.subr.bf16.mxu0 %v5107_v21  ;;  %v5183_v20 = vld [vmem:[%s7695_s1 + $0x520] ss:$16 sps:$4 sm:$0xff]  }
  0x45   :  { %2634 = vmatprep.subr.bf16.mxu1 %v5110_v22  ;;  %2623 = vmatprep.mubr.bf16.mxu0 %v6085_v17  ;;  %v5186_v21 = vld [vmem:[%s7695_s1 + $0x720] ss:$16 sps:$4 sm:$0xff]   ;;  %v5191_v22 = vld [vmem:[%s7695_s1 + $0x504] ss:$16 sps:$4 sm:$0xff]  }
  0x46   :  { %2664 = vmatprep.mubr.bf16.mxu1 %v6105_v23 }
  0x47   :  { %2594 = vmatpush1.bf16.msra.mxu0 %v5105_v24  ;;  %v5194_v24 = vld [vmem:[%s7695_s1 + $0x704] ss:$16 sps:$4 sm:$0xff]  }
  0x48   :  { %2635 = vmatpush1.bf16.msra.mxu1 %v5108_v25  ;;  %2595 = vmatprep.subr.bf16.mxu0 %v5113_v26  ;;  %v5189_v25 = vld [vmem:[%s7695_s1 + $0x500] ss:$16 sps:$4 sm:$0xff]   ;;  %v6284_v26 = vrot.slane %v6053_v6, %v5995_v49 }
  0x49   :  { %2636 = vmatprep.subr.bf16.mxu1 %v5116_v27  ;;  %v5192_v27 = vld [vmem:[%s7695_s1 + $0x700] ss:$16 sps:$4 sm:$0xff]  }
  0x4a   :  { %v6297_v6 = vcombine.high %v6284_v26, %v6284_v26 }
  0x4b   :  { %2596 = vmatpush1.bf16.msra.mxu0 %v5111_v28  ;;  %v5198_v28 = vld [vmem:[%s7695_s1 + $0x8e4] ss:$16 sps:$4 sm:$0xff]  }
  0x4c   :  { %2637 = vmatpush1.bf16.msra.mxu1 %v5114_v29  ;;  %2597 = vmatprep.subr.bf16.mxu0 %v5119_v30  ;;  %v5201_v29 = vld [vmem:[%s7695_s1 + $0xae4] ss:$16 sps:$4 sm:$0xff]   ;;  %v5196_v30 = vld [vmem:[%s7695_s1 + $0x8e0] ss:$16 sps:$4 sm:$0xff]  }
  0x4d   :  { %2638 = vmatprep.subr.bf16.mxu1 %v5122_v31  ;;  %v5199_v31 = vld [vmem:[%s7695_s1 + $0xae0] ss:$16 sps:$4 sm:$0xff]  }
  0x4f   :  { %2598 = vmatpush1.bf16.msra.mxu0 %v5117_v32  ;;  %v6308_v32 = vld [vmem:[%s7696_s0 + $0x8] sm:$0x1f] }
  0x50   :  { %2639 = vmatpush1.bf16.msra.mxu1 %v5120_v33  ;;  %2599 = vmatprep.subr.bf16.mxu0 %v5125_v34  ;;  %v5204_v33 = vld [vmem:[%s7695_s1 + $0x8c4] ss:$16 sps:$4 sm:$0xff]  }
  0x51   :  { %2640 = vmatprep.subr.bf16.mxu1 %v5128_v35  ;;  %v5207_v34 = vld [vmem:[%s7695_s1 + $0xac4] ss:$16 sps:$4 sm:$0xff]   ;;  %v6318_v35 = vrot.slane %v6308_v32, %v5995_v49 }
  0x53   :  { %2600 = vmatpush1.bf16.msra.mxu0 %v5123_v36  ;;  %v509_v36 = vcombine.high %v6318_v35, %v6318_v35 }
  0x54   :  { %2641 = vmatpush1.bf16.msra.mxu1 %v5126_v37  ;;  %2601 = vmatprep.subr.bf16.mxu0 %v5131_v38  ;;  %v5202_v37 = vld [vmem:[%s7695_s1 + $0x8c0] ss:$16 sps:$4 sm:$0xff]  }
  0x55   :  { %2642 = vmatprep.subr.bf16.mxu1 %v5134_v39  ;;  %v5205_v38 = vld [vmem:[%s7695_s1 + $0xac0] ss:$16 sps:$4 sm:$0xff]   ;;  %v5210_v39 = vld [vmem:[%s7695_s1 + $0x8a4] ss:$16 sps:$4 sm:$0xff]  }
  0x57   :  { %2602 = vmatpush1.bf16.msra.mxu0 %v5129_v40  ;;  %v5213_v40 = vld [vmem:[%s7695_s1 + $0xaa4] ss:$16 sps:$4 sm:$0xff]  }
  0x58   :  { %2643 = vmatpush1.bf16.msra.mxu1 %v5132_v41  ;;  %2603 = vmatprep.subr.bf16.mxu0 %v5137_v43  ;;  %v6337_v41 = vrot.slane %v509_v36, %v5995_v49  ;;  %v5277_v36 = vld [vmem:[%s7695_s1 + $0xb40] ss:$16 sps:$4 sm:$0xff]  }
  0x59   :  { %2644 = vmatprep.subr.bf16.mxu1 %v5140_v44  ;;  %v5208_v44 = vld [vmem:[%s7695_s1 + $0x8a0] ss:$16 sps:$4 sm:$0xff]  }
  0x5a   :  { %v6342_v43 = vcombine.high %v6337_v41, %v6337_v41 }
  0x5b   :  { %2604 = vmatpush1.bf16.msra.mxu0 %v5135_v45  ;;  %v5211_v45 = vld [vmem:[%s7695_s1 + $0xaa0] ss:$16 sps:$4 sm:$0xff]  }
  0x5c   :  { %2645 = vmatpush1.bf16.msra.mxu1 %v5138_v46  ;;  %2605 = vmatprep.subr.bf16.mxu0 %v5143_v47  ;;  %v5216_v46 = vld [vmem:[%s7695_s1 + $0x884] ss:$16 sps:$4 sm:$0xff]  }
  0x5d   :  { %2646 = vmatprep.subr.bf16.mxu1 %v5146_v48  ;;  %v5219_v47 = vld [vmem:[%s7695_s1 + $0xa84] ss:$16 sps:$4 sm:$0xff]   ;;  %v5214_v48 = vld [vmem:[%s7695_s1 + $0x880] ss:$16 sps:$4 sm:$0xff]  }
  0x5f   :  { %2606 = vmatpush1.bf16.msra.mxu0 %v5141_v50  ;;  %v5217_v50 = vld [vmem:[%s7695_s1 + $0xa80] ss:$16 sps:$4 sm:$0xff]  }
  0x60   :  { %2647 = vmatpush1.bf16.msra.mxu1 %v5144_v51  ;;  %2607 = vmatprep.subr.bf16.mxu0 %v5149_v52  ;;  %v5222_v51 = vld [vmem:[%s7695_s1 + $0x864] ss:$16 sps:$4 sm:$0xff]  }
  0x61   :  { %2648 = vmatprep.subr.bf16.mxu1 %v5152_v53  ;;  %v5225_v52 = vld [vmem:[%s7695_s1 + $0xa64] ss:$16 sps:$4 sm:$0xff]   ;;  %v5220_v53 = vld [vmem:[%s7695_s1 + $0x860] ss:$16 sps:$4 sm:$0xff]  }
  0x63   :  { %2608 = vmatpush2.bf16.msra.mxu0 %v5147_v54  ;;  %v5223_v54 = vld [vmem:[%s7695_s1 + $0xa60] ss:$16 sps:$4 sm:$0xff]  }
  0x64   :  { %2649 = vmatpush2.bf16.msra.mxu1 %v5150_v55  ;;  %2609 = vmatprep.subr.bf16.mxu0 %v5155_v56  ;;  %v5228_v55 = vld [vmem:[%s7695_s1 + $0x844] ss:$16 sps:$4 sm:$0xff]  }
  0x65   :  { %2650 = vmatprep.subr.bf16.mxu1 %v5158_v57  ;;  %v5231_v56 = vld [vmem:[%s7695_s1 + $0xa44] ss:$16 sps:$4 sm:$0xff]   ;;  %v5226_v57 = vld [vmem:[%s7695_s1 + $0x840] ss:$16 sps:$4 sm:$0xff]  }
  0x67   :  { %2610 = vmatpush2.bf16.msra.mxu0 %v5153_v58  ;;  %v5229_v58 = vld [vmem:[%s7695_s1 + $0xa40] ss:$16 sps:$4 sm:$0xff]  }
  0x68   :  { %2651 = vmatpush2.bf16.msra.mxu1 %v5156_v59  ;;  %2611 = vmatprep.subr.bf16.mxu0 %v5161_v61  ;;  %v5234_v59 = vld [vmem:[%s7695_s1 + $0x824] ss:$16 sps:$4 sm:$0xff]  }
  0x69   :  { %2652 = vmatprep.subr.bf16.mxu1 %v5164_v62  ;;  %v5237_v61 = vld [vmem:[%s7695_s1 + $0xa24] ss:$16 sps:$4 sm:$0xff]   ;;  %v5232_v62 = vld [vmem:[%s7695_s1 + $0x820] ss:$16 sps:$4 sm:$0xff]  }
  0x6b   :  { %2612 = vmatpush2.bf16.msra.mxu0 %v5159_v63  ;;  %v5235_v63 = vld [vmem:[%s7695_s1 + $0xa20] ss:$16 sps:$4 sm:$0xff]  }
  0x6c   :  { %2653 = vmatpush2.bf16.msra.mxu1 %v5162_v1  ;;  %2613 = vmatprep.subr.bf16.mxu0 %v5167_v2  ;;  %v5240_v1 = vld [vmem:[%s7695_s1 + $0x804] ss:$16 sps:$4 sm:$0xff]  }
  0x6d   :  { %2654 = vmatprep.subr.bf16.mxu1 %v5170_v3  ;;  %v5243_v2 = vld [vmem:[%s7695_s1 + $0xa04] ss:$16 sps:$4 sm:$0xff]   ;;  %v5238_v3 = vld [vmem:[%s7695_s1 + $0x800] ss:$16 sps:$4 sm:$0xff]  }
  0x6f   :  { %2614 = vmatpush2.bf16.msra.mxu0 %v5165_v4  ;;  %v5241_v4 = vld [vmem:[%s7695_s1 + $0xa00] ss:$16 sps:$4 sm:$0xff]  }
  0x70   :  { %2655 = vmatpush2.bf16.msra.mxu1 %v5168_v5  ;;  %2615 = vmatprep.subr.bf16.mxu0 %v5173_v7  ;;  %v5246_v5 = vld [vmem:[%s7695_s1 + $0x9e4] ss:$16 sps:$4 sm:$0xff]  }
  0x71   :  { %2656 = vmatprep.subr.bf16.mxu1 %v5176_v8  ;;  %v5249_v7 = vld [vmem:[%s7695_s1 + $0xbe4] ss:$16 sps:$4 sm:$0xff]   ;;  %v5244_v8 = vld [vmem:[%s7695_s1 + $0x9e0] ss:$16 sps:$4 sm:$0xff]  }
  0x73   :  { %2616 = vmatpush2.bf16.msra.mxu0 %v5171_v9  ;;  %v5247_v9 = vld [vmem:[%s7695_s1 + $0xbe0] ss:$16 sps:$4 sm:$0xff]  }
  0x74   :  { %2657 = vmatpush2.bf16.msra.mxu1 %v5174_v10  ;;  %2617 = vmatprep.subr.bf16.mxu0 %v5179_v11  ;;  %v5252_v10 = vld [vmem:[%s7695_s1 + $0x9c4] ss:$16 sps:$4 sm:$0xff]  }
  0x75   :  { %2658 = vmatprep.subr.bf16.mxu1 %v5182_v12  ;;  %v5255_v11 = vld [vmem:[%s7695_s1 + $0xbc4] ss:$16 sps:$4 sm:$0xff]   ;;  %v5250_v12 = vld [vmem:[%s7695_s1 + $0x9c0] ss:$16 sps:$4 sm:$0xff]  }
  0x77   :  { %2618 = vmatpush2.bf16.msra.mxu0 %v5177_v14  ;;  %v5253_v14 = vld [vmem:[%s7695_s1 + $0xbc0] ss:$16 sps:$4 sm:$0xff]  }
  0x78   :  { %2659 = vmatpush2.bf16.msra.mxu1 %v5180_v15  ;;  %2619 = vmatprep.subr.bf16.mxu0 %v5185_v16  ;;  %v5258_v15 = vld [vmem:[%s7695_s1 + $0x9a4] ss:$16 sps:$4 sm:$0xff]  }
  0x79   :  { %2660 = vmatprep.subr.bf16.mxu1 %v5188_v19  ;;  %v5261_v16 = vld [vmem:[%s7695_s1 + $0xba4] ss:$16 sps:$4 sm:$0xff]   ;;  %v5256_v19 = vld [vmem:[%s7695_s1 + $0x9a0] ss:$16 sps:$4 sm:$0xff]  }
  0x7b   :  { %2620 = vmatpush2.bf16.msra.mxu0 %v5183_v20  ;;  %v5259_v20 = vld [vmem:[%s7695_s1 + $0xba0] ss:$16 sps:$4 sm:$0xff]  }
  0x7c   :  { %2661 = vmatpush2.bf16.msra.mxu1 %v5186_v21  ;;  %2621 = vmatprep.subr.bf16.mxu0 %v5191_v22  ;;  %v5264_v21 = vld [vmem:[%s7695_s1 + $0x984] ss:$16 sps:$4 sm:$0xff]  }
  0x7d   :  { %2662 = vmatprep.subr.bf16.mxu1 %v5194_v24  ;;  %v5267_v22 = vld [vmem:[%s7695_s1 + $0xb84] ss:$16 sps:$4 sm:$0xff]   ;;  %v5262_v24 = vld [vmem:[%s7695_s1 + $0x980] ss:$16 sps:$4 sm:$0xff]  }
  0x7f   :  { %2622 = vmatpush2.bf16.msra.mxu0 %v5189_v25  ;;  %v5265_v25 = vld [vmem:[%s7695_s1 + $0xb80] ss:$16 sps:$4 sm:$0xff]  }
  0x80   :  { %2663 = vmatpush2.bf16.msra.mxu1 %v5192_v27  ;;  %2673 = vmatprep.subr.bf16.mxu0 %v5198_v28  ;;  %v5270_v27 = vld [vmem:[%s7695_s1 + $0x964] ss:$16 sps:$4 sm:$0xff]  }
  0x81   :  { %2714 = vmatprep.subr.bf16.mxu1 %v5201_v29  ;;  %v5273_v28 = vld [vmem:[%s7695_s1 + $0xb64] ss:$16 sps:$4 sm:$0xff]   ;;  %v5268_v29 = vld [vmem:[%s7695_s1 + $0x960] ss:$16 sps:$4 sm:$0xff]  }
  0x82   :  { %2624 = vmatmul.mubr.bf16.vlgmr.msra.gmra.mxu0 %v6284_v26 }
  0x83   :  { %2665 = vmatmul.mubr.bf16.vlgmr.msra.gmra.mxu1 %v6297_v6  ;;  %2674 = vmatpush1.bf16.msra.mxu0 %v5196_v30  ;;  %v5271_v30 = vld [vmem:[%s7695_s1 + $0xb60] ss:$16 sps:$4 sm:$0xff]  }
  0x84   :  { %2715 = vmatpush1.bf16.msra.mxu1 %v5199_v31  ;;  %2675 = vmatprep.subr.bf16.mxu0 %v5204_v33  ;;  %v5276_v31 = vld [vmem:[%s7695_s1 + $0x944] ss:$16 sps:$4 sm:$0xff]  }
  0x85   :  { %2716 = vmatprep.subr.bf16.mxu1 %v5207_v34  ;;  %2705 = vmatprep.mubr.bf16.mxu0 %v6337_v41  ;;  %v5279_v33 = vld [vmem:[%s7695_s1 + $0xb44] ss:$16 sps:$4 sm:$0xff]   ;;  %v5274_v34 = vld [vmem:[%s7695_s1 + $0x940] ss:$16 sps:$4 sm:$0xff]  }
  0x86   :  { %2746 = vmatprep.mubr.bf16.mxu1 %v6342_v43 }
  0x87   :  { %2676 = vmatpush1.bf16.msra.mxu0 %v5202_v37  ;;  %v5282_v37 = vld [vmem:[%s7695_s1 + $0x924] ss:$16 sps:$4 sm:$0xff]  }
  0x88   :  { %2717 = vmatpush1.bf16.msra.mxu1 %v5205_v38  ;;  %2677 = vmatprep.subr.bf16.mxu0 %v5210_v39  ;;  %v5285_v38 = vld [vmem:[%s7695_s1 + $0xb24] ss:$16 sps:$4 sm:$0xff]   ;;  %v5280_v39 = vld [vmem:[%s7695_s1 + $0x920] ss:$16 sps:$4 sm:$0xff]  }
  0x89   :  { %2718 = vmatprep.subr.bf16.mxu1 %v5213_v40  ;;  %v5283_v40 = vld [vmem:[%s7695_s1 + $0xb20] ss:$16 sps:$4 sm:$0xff]  }
  0x8b   :  { %2678 = vmatpush1.bf16.msra.mxu0 %v5208_v44  ;;  %v5288_v44 = vld [vmem:[%s7695_s1 + $0x904] ss:$16 sps:$4 sm:$0xff]  }
  0x8c   :  { %2719 = vmatpush1.bf16.msra.mxu1 %v5211_v45  ;;  %2679 = vmatprep.subr.bf16.mxu0 %v5216_v46  ;;  %v5291_v45 = vld [vmem:[%s7695_s1 + $0xb04] ss:$16 sps:$4 sm:$0xff]   ;;  %v5286_v46 = vld [vmem:[%s7695_s1 + $0x900] ss:$16 sps:$4 sm:$0xff]  }
  0x8d   :  { %2720 = vmatprep.subr.bf16.mxu1 %v5219_v47  ;;  %v6506_v47 = vrot.slane %v6318_v35, %v5995_v49  ;;  %v494_v35 = vcombine.high %v6308_v32, %v6308_v32  ;;  %v5304_v32 = vld [vmem:[%s7695_s1 + $0xcc] ss:$16 sps:$4 sm:$0xff]  }
  0x8f   :  { %2680 = vmatpush1.bf16.msra.mxu0 %v5214_v48  ;;  %v5289_v48 = vld [vmem:[%s7695_s1 + $0xb00] ss:$16 sps:$4 sm:$0xff]  }
  0x90   :  { %2721 = vmatpush1.bf16.msra.mxu1 %v5217_v50  ;;  %2681 = vmatprep.subr.bf16.mxu0 %v5222_v51  ;;  %v5295_v50 = vld [vmem:[%s7695_s1 + $0xc24] ss:$16 sps:$4 sm:$0xff]   ;;  %v5298_v51 = vld [vmem:[%s7695_s1 + $0xec] ss:$16 sps:$4 sm:$0xff]  }
  0x91   :  { %2722 = vmatprep.subr.bf16.mxu1 %v5225_v52  ;;  %v6521_v52 = vcombine.high %v6506_v47, %v6506_v47 }
  0x93   :  { %2682 = vmatpush1.bf16.msra.mxu0 %v5220_v53  ;;  %v5293_v53 = vld [vmem:[%s7695_s1 + $0xc20] ss:$16 sps:$4 sm:$0xff]  }
  0x94   :  { %2723 = vmatpush1.bf16.msra.mxu1 %v5223_v54  ;;  %2683 = vmatprep.subr.bf16.mxu0 %v5228_v55  ;;  %v5296_v54 = vld [vmem:[%s7695_s1 + $0xe8] ss:$16 sps:$4 sm:$0xff]   ;;  %v5301_v55 = vld [vmem:[%s7695_s1 + $0xc04] ss:$16 sps:$4 sm:$0xff]  }
  0x95   :  { %2724 = vmatprep.subr.bf16.mxu1 %v5231_v56  ;;  %v508_v56 = vrot.slane %v494_v35, %v5995_v49  ;;  %v5368_v35 = vld [vmem:[%s7695_s1 + $0x3a8] ss:$16 sps:$4 sm:$0xff]  }
  0x97   :  { %2684 = vmatpush1.bf16.msra.mxu0 %v5226_v57  ;;  %v5299_v57 = vld [vmem:[%s7695_s1 + $0xc00] ss:$16 sps:$4 sm:$0xff]  }
  0x98   :  { %2725 = vmatpush1.bf16.msra.mxu1 %v5229_v58  ;;  %2685 = vmatprep.subr.bf16.mxu0 %v5234_v59  ;;  %v5302_v58 = vld [vmem:[%s7695_s1 + $0xc8] ss:$16 sps:$4 sm:$0xff]   ;;  %v5307_v59 = vld [vmem:[%s7695_s1 + $0xac] ss:$16 sps:$4 sm:$0xff]  }
  0x99   :  { %2726 = vmatprep.subr.bf16.mxu1 %v5237_v61  ;;  %v5310_v61 = vld [vmem:[%s7695_s1 + $0x2ec] ss:$16 sps:$4 sm:$0xff]  }
  0x9b   :  { %2686 = vmatpush1.bf16.msra.mxu0 %v5232_v62  ;;  %v5819_v62 = vmov 0  }
  0x9c   :  { %2727 = vmatpush1.bf16.msra.mxu1 %v5235_v63  ;;  %2687 = vmatprep.subr.bf16.mxu0 %v5240_v1  ;;  %v6553_v63 = vrot.slane %v508_v56, %v5995_v49  ;;  %v5305_v1 = vld [vmem:[%s7695_s1 + $0xa8] ss:$16 sps:$4 sm:$0xff]   ;;  %v5316_v49 = vld [vmem:[%s7695_s1 + $0x2cc] ss:$16 sps:$4 sm:$0xff]  }
  0x9d   :  { %2728 = vmatprep.subr.bf16.mxu1 %v5243_v2  ;;  %v5308_v2 = vld [vmem:[%s7695_s1 + $0x2e8] ss:$16 sps:$4 sm:$0xff]   ;;  %v5379_v56 = vld [vmem:[%s7695_s1 + $0x12c] ss:$16 sps:$4 sm:$0xff]  }
  0x9f   :  { %2688 = vmatpush1.bf16.msra.mxu0 %v5238_v3  ;;  %v5313_v3 = vld [vmem:[%s7695_s1 + $0x8c] ss:$16 sps:$4 sm:$0xff]  }
  0xa0   :  { %2729 = vmatpush1.bf16.msra.mxu1 %v5241_v4  ;;  %2689 = vmatprep.subr.bf16.mxu0 %v5246_v5  ;;  %v5314_v4 = vld [vmem:[%s7695_s1 + $0x2c8] ss:$16 sps:$4 sm:$0xff]   ;;  %v5319_v5 = vld [vmem:[%s7695_s1 + $0x6c] ss:$16 sps:$4 sm:$0xff]  }
  0xa1   :  { %2730 = vmatprep.subr.bf16.mxu1 %v5249_v7  ;;  %v5322_v7 = vld [vmem:[%s7695_s1 + $0x2ac] ss:$16 sps:$4 sm:$0xff]  }
  0xa3   :  { %2690 = vmatpush2.bf16.msra.mxu0 %v5244_v8  ;;  %v5317_v8 = vld [vmem:[%s7695_s1 + $0x68] ss:$16 sps:$4 sm:$0xff]  }
  0xa4   :  { %2731 = vmatpush2.bf16.msra.mxu1 %v5247_v9  ;;  %2691 = vmatprep.subr.bf16.mxu0 %v5252_v10  ;;  %v5320_v9 = vld [vmem:[%s7695_s1 + $0x2a8] ss:$16 sps:$4 sm:$0xff]   ;;  %v5325_v10 = vld [vmem:[%s7695_s1 + $0x4c] ss:$16 sps:$4 sm:$0xff]  }
  0xa5   :  { %2732 = vmatprep.subr.bf16.mxu1 %v5255_v11  ;;  %v5323_v11 = vld [vmem:[%s7695_s1 + $0x48] ss:$16 sps:$4 sm:$0xff]  }
  0xa7   :  { %2692 = vmatpush2.bf16.msra.mxu0 %v5250_v12  ;;  %v5326_v12 = vld [vmem:[%s7695_s1 + $0x288] ss:$16 sps:$4 sm:$0xff]  }
  0xa8   :  { %2733 = vmatpush2.bf16.msra.mxu1 %v5253_v14  ;;  %2693 = vmatprep.subr.bf16.mxu0 %v5258_v15  ;;  %v5331_v14 = vld [vmem:[%s7695_s1 + $0x2c] ss:$16 sps:$4 sm:$0xff]  }
  0xa9   :  { %2734 = vmatprep.subr.bf16.mxu1 %v5261_v16  ;;  %v5334_v15 = vld [vmem:[%s7695_s1 + $0x26c] ss:$16 sps:$4 sm:$0xff]   ;;  %v5329_v16 = vld [vmem:[%s7695_s1 + $0x28] ss:$16 sps:$4 sm:$0xff]  }
  0xab   :  { %2694 = vmatpush2.bf16.msra.mxu0 %v5256_v19  ;;  %v5332_v19 = vld [vmem:[%s7695_s1 + $0x268] ss:$16 sps:$4 sm:$0xff]  }
  0xac   :  { %2735 = vmatpush2.bf16.msra.mxu1 %v5259_v20  ;;  %2695 = vmatprep.subr.bf16.mxu0 %v5264_v21  ;;  %v5337_v20 = vld [vmem:[%s7695_s1 + $0xc] ss:$16 sps:$4 sm:$0xff]  }
  0xad   :  { %2736 = vmatprep.subr.bf16.mxu1 %v5267_v22  ;;  %v5340_v21 = vld [vmem:[%s7695_s1 + $0x24c] ss:$16 sps:$4 sm:$0xff]   ;;  %v5335_v22 = vld [vmem:[%s7695_s1 + $0x8] ss:$16 sps:$4 sm:$0xff]  }
  0xaf   :  { %2696 = vmatpush2.bf16.msra.mxu0 %v5262_v24  ;;  %v5338_v24 = vld [vmem:[%s7695_s1 + $0x248] ss:$16 sps:$4 sm:$0xff]  }
  0xb0   :  { %2737 = vmatpush2.bf16.msra.mxu1 %v5265_v25  ;;  %2697 = vmatprep.subr.bf16.mxu0 %v5270_v27  ;;  %v5343_v25 = vld [vmem:[%s7695_s1 + $0x1ec] ss:$16 sps:$4 sm:$0xff]  }
  0xb1   :  { %2738 = vmatprep.subr.bf16.mxu1 %v5273_v28  ;;  %v5346_v27 = vld [vmem:[%s7695_s1 + $0x22c] ss:$16 sps:$4 sm:$0xff]   ;;  %v5341_v28 = vld [vmem:[%s7695_s1 + $0x1e8] ss:$16 sps:$4 sm:$0xff]  }
  0xb3   :  { %2698 = vmatpush2.bf16.msra.mxu0 %v5268_v29  ;;  %v5344_v29 = vld [vmem:[%s7695_s1 + $0x228] ss:$16 sps:$4 sm:$0xff]  }
  0xb4   :  { %2739 = vmatpush2.bf16.msra.mxu1 %v5271_v30  ;;  %2699 = vmatprep.subr.bf16.mxu0 %v5276_v31  ;;  %v5349_v30 = vld [vmem:[%s7695_s1 + $0x1cc] ss:$16 sps:$4 sm:$0xff]  }
  0xb5   :  { %2740 = vmatprep.subr.bf16.mxu1 %v5279_v33  ;;  %v5352_v31 = vld [vmem:[%s7695_s1 + $0x20c] ss:$16 sps:$4 sm:$0xff]   ;;  %v5347_v33 = vld [vmem:[%s7695_s1 + $0x1c8] ss:$16 sps:$4 sm:$0xff]  }
  0xb7   :  { %2700 = vmatpush2.bf16.msra.mxu0 %v5274_v34  ;;  %v5350_v34 = vld [vmem:[%s7695_s1 + $0x208] ss:$16 sps:$4 sm:$0xff]  }
  0xb8   :  { %2741 = vmatpush2.bf16.msra.mxu1 %v5277_v36  ;;  %2701 = vmatprep.subr.bf16.mxu0 %v5282_v37  ;;  %v5355_v36 = vld [vmem:[%s7695_s1 + $0x1ac] ss:$16 sps:$4 sm:$0xff]  }
  0xb9   :  { %2742 = vmatprep.subr.bf16.mxu1 %v5285_v38  ;;  %v5358_v37 = vld [vmem:[%s7695_s1 + $0x3ec] ss:$16 sps:$4 sm:$0xff]   ;;  %v5353_v38 = vld [vmem:[%s7695_s1 + $0x1a8] ss:$16 sps:$4 sm:$0xff]  }
  0xbb   :  { %2702 = vmatpush2.bf16.msra.mxu0 %v5280_v39  ;;  %v5356_v39 = vld [vmem:[%s7695_s1 + $0x3e8] ss:$16 sps:$4 sm:$0xff]  }
  0xbc   :  { %2743 = vmatpush2.bf16.msra.mxu1 %v5283_v40  ;;  %2703 = vmatprep.subr.bf16.mxu0 %v5288_v44  ;;  %v5361_v40 = vld [vmem:[%s7695_s1 + $0x18c] ss:$16 sps:$4 sm:$0xff]  }
  0xbd   :  { %2744 = vmatprep.subr.bf16.mxu1 %v5291_v45  ;;  %v5364_v44 = vld [vmem:[%s7695_s1 + $0x3cc] ss:$16 sps:$4 sm:$0xff]   ;;  %v5359_v45 = vld [vmem:[%s7695_s1 + $0x188] ss:$16 sps:$4 sm:$0xff]  }
  0xbf   :  { %2704 = vmatpush2.bf16.msra.mxu0 %v5286_v46  ;;  %v5362_v46 = vld [vmem:[%s7695_s1 + $0x3c8] ss:$16 sps:$4 sm:$0xff]  }
  0xc0   :  { %2745 = vmatpush2.bf16.msra.mxu1 %v5289_v48  ;;  %2767 = vmatprep.subr.bf16.mxu0 %v5295_v50  ;;  %v5367_v48 = vld [vmem:[%s7695_s1 + $0x16c] ss:$16 sps:$4 sm:$0xff]  }
  0xc1   :  { %2796 = vmatprep.subr.bf16.mxu1 %v5298_v51  ;;  %v5370_v50 = vld [vmem:[%s7695_s1 + $0x3ac] ss:$16 sps:$4 sm:$0xff]   ;;  %v5365_v51 = vld [vmem:[%s7695_s1 + $0x168] ss:$16 sps:$4 sm:$0xff]  }
  0xc2   :  { %2706 = vmatmul.mubr.bf16.vlgmr.msra.gmra.mxu0 %v6506_v47 }
  0xc3   :  { %2747 = vmatmul.mubr.bf16.vlgmr.msra.gmra.mxu1 %v6521_v52  ;;  %2768 = vmatpush1.bf16.msra.mxu0 %v5293_v53  ;;  %v5373_v53 = vld [vmem:[%s7695_s1 + $0x14c] ss:$16 sps:$4 sm:$0xff]  }
  0xc4   :  { %2797 = vmatpush1.bf16.msra.mxu1 %v5296_v54  ;;  %2769 = vmatprep.subr.bf16.mxu0 %v5301_v55  ;;  %v5376_v54 = vld [vmem:[%s7695_s1 + $0x38c] ss:$16 sps:$4 sm:$0xff]   ;;  %v5371_v55 = vld [vmem:[%s7695_s1 + $0x148] ss:$16 sps:$4 sm:$0xff]  }
  0xc5   :  { %2798 = vmatprep.subr.bf16.mxu1 %v5304_v32  ;;  %2787 = vmatprep.mubr.bf16.mxu0 %v5819_v62  ;;  %v5374_v32 = vld [vmem:[%s7695_s1 + $0x388] ss:$16 sps:$4 sm:$0xff]  }
  0xc6   :  { %2828 = vmatprep.mubr.bf16.mxu1 %v6023_v60  ;;  %v5311_v60 = vld [vmem:[%s7695_s1 + $0x88] ss:$16 sps:$4 sm:$0xff]  }
  0xc7   :  { %2770 = vmatpush1.bf16.msra.mxu0 %v5299_v57  ;;  %v5382_v57 = vld [vmem:[%s7695_s1 + $0x36c] ss:$16 sps:$4 sm:$0xff]  }
  0xc8   :  { %2799 = vmatpush1.bf16.msra.mxu1 %v5302_v58  ;;  %2837 = vmatprep.subr.bf16.mxu0 %v5310_v61  ;;  %v5377_v58 = vld [vmem:[%s7695_s1 + $0x128] ss:$16 sps:$4 sm:$0xff]   ;;  %v5385_v61 = vld [vmem:[%s7695_s1 + $0x10c] ss:$16 sps:$4 sm:$0xff]  }
  0xc9   :  { %2800 = vmatprep.subr.bf16.mxu1 %v5307_v59  ;;  %v5380_v59 = vld [vmem:[%s7695_s1 + $0x368] ss:$16 sps:$4 sm:$0xff]  }
  0xca   :  { %4794 = vmatmul.mubr.msk.bf16.vlgmr.msra.gmra.mxu0 %vm2505_vm0, %v6553_v63 }
  0xcb   :  { %2838 = vmatpush1.bf16.msra.mxu0 %v5308_v2  ;;  %2869 = vmatprep.mubr.bf16.mxu0 %v6036_v0  ;;  %v5328_v0 = vld [vmem:[%s7695_s1 + $0x28c] ss:$16 sps:$4 sm:$0xff]   ;;  %v5383_v2 = vld [vmem:[%s7695_s1 + $0x108] ss:$16 sps:$4 sm:$0xff]  }
  0xcc   :  { %2801 = vmatpush1.bf16.msra.mxu1 %v5305_v1  ;;  %2839 = vmatprep.subr.bf16.mxu0 %v5316_v49  ;;  %v5388_v1 = vld [vmem:[%s7695_s1 + $0x34c] ss:$16 sps:$4 sm:$0xff]   ;;  %v421_v49 = vld [vmem:[%s7697_s2] sm:$0xf] }
  0xcd   :  { %2802 = vmatprep.subr.bf16.mxu1 %v5313_v3  ;;  %v5386_v3 = vld [vmem:[%s7695_s1 + $0x348] ss:$16 sps:$4 sm:$0xff]  }
  0xcf   :  { %2840 = vmatpush1.bf16.msra.mxu0 %v5314_v4  ;;  %v5391_v4 = vld [vmem:[%s7695_s1 + $0x32c] ss:$16 sps:$4 sm:$0xff]  }
  0xd0   :  { %2803 = vmatpush1.bf16.msra.mxu1 %v5311_v60  ;;  %2841 = vmatprep.subr.bf16.mxu0 %v5322_v7  ;;  %v425_v60 = vsub.s32 0, %v5977_v42  ;;  %v429_v7 = vsub.s32 1, %v5977_v42 }
  0xd1   :  { %2804 = vmatprep.subr.bf16.mxu1 %v5319_v5  ;;  %v5394_v5 = vld [vmem:[%s7695_s1 + $0x4ec] ss:$16 sps:$4 sm:$0xff]  }
  0xd3   :  { %2842 = vmatpush1.bf16.msra.mxu0 %v5320_v9  ;;  %v426_v9 = vrot.slane %v421_v49, %v425_v60 }
  0xd4   :  { %2805 = vmatpush1.bf16.msra.mxu1 %v5317_v8  ;;  %2843 = vmatprep.subr.bf16.mxu0 %v5328_v0  ;;  %v5389_v8 = vld [vmem:[%s7695_s1 + $0x328] ss:$16 sps:$4 sm:$0xff]   ;;  %v5397_v0 = vld [vmem:[%s7695_s1 + $0x30c] ss:$16 sps:$4 sm:$0xff]  }
  0xd5   :  { %2806 = vmatprep.subr.bf16.mxu1 %v5325_v10  ;;  %v5392_v10 = vld [vmem:[%s7695_s1 + $0x4e8] ss:$16 sps:$4 sm:$0xff]  }
  0xd7   :  { %2844 = vmatpush1.bf16.msra.mxu0 %v5326_v12  ;;  %v430_v12 = vrot.slane %v421_v49, %v429_v7  ;;  %v5443_v49 = vld [vmem:[%s7695_s1 + $0x5c8] ss:$16 sps:$4 sm:$0xff]  }
  0xd8   :  { %2807 = vmatpush1.bf16.msra.mxu1 %v5323_v11  ;;  %2845 = vmatprep.subr.bf16.mxu0 %v5334_v15  ;;  %v5400_v11 = vld [vmem:[%s7695_s1 + $0x4cc] ss:$16 sps:$4 sm:$0xff]  }
  0xd9   :  { %2808 = vmatprep.subr.bf16.mxu1 %v5331_v14 }
  0xdb   :  { %2846 = vmatpush1.bf16.msra.mxu0 %v5332_v19  ;;  %v5398_v19 = vld [vmem:[%s7695_s1 + $0x4c8] ss:$16 sps:$4 sm:$0xff]  }
  0xdc   :  { %2809 = vmatpush1.bf16.msra.mxu1 %v5329_v16  ;;  %2847 = vmatprep.subr.bf16.mxu0 %v5340_v21  ;;  %v5395_v16 = vld [vmem:[%s7695_s1 + $0x308] ss:$16 sps:$4 sm:$0xff]  }
  0xdd   :  { %2810 = vmatprep.subr.bf16.mxu1 %v5337_v20 }
  0xdf   :  { %2848 = vmatpush1.bf16.msra.mxu0 %v5338_v24  ;;  %v5403_v24 = vld [vmem:[%s7695_s1 + $0x4ac] ss:$16 sps:$4 sm:$0xff]  }
  0xe0   :  { %2811 = vmatpush1.bf16.msra.mxu1 %v5335_v22  ;;  %2849 = vmatprep.subr.bf16.mxu0 %v5346_v27 }
  0xe1   :  { %2812 = vmatprep.subr.bf16.mxu1 %v5343_v25 }
  0xe3   :  { %2850 = vmatpush1.bf16.msra.mxu0 %v5344_v29 }
  0xe4   :  { %2813 = vmatpush2.bf16.msra.mxu1 %v5341_v28  ;;  %2851 = vmatprep.subr.bf16.mxu0 %v5352_v31  ;;  %v5401_v31 = vld [vmem:[%s7695_s1 + $0x4a8] ss:$16 sps:$4 sm:$0xff]  }
  0xe5   :  { %2814 = vmatprep.subr.bf16.mxu1 %v5349_v30 }
  0xe7   :  { %2852 = vmatpush1.bf16.msra.mxu0 %v5350_v34  ;;  %v5409_v34 = vld [vmem:[%s7695_s1 + $0x48c] ss:$16 sps:$4 sm:$0xff]  }
  0xe8   :  { %2815 = vmatpush2.bf16.msra.mxu1 %v5347_v33  ;;  %2853 = vmatprep.subr.bf16.mxu0 %v5358_v37  ;;  %v5404_v33 = vld [vmem:[%s7695_s1 + $0x6e8] ss:$16 sps:$4 sm:$0xff]   ;;  %v5412_v37 = vld [vmem:[%s7695_s1 + $0x6cc] ss:$16 sps:$4 sm:$0xff]  }
  0xe9   :  { %2816 = vmatprep.subr.bf16.mxu1 %v5355_v36 }
  0xeb   :  { %2854 = vmatpush2.bf16.msra.mxu0 %v5356_v39  ;;  %v5410_v39 = vld [vmem:[%s7695_s1 + $0x6c8] ss:$16 sps:$4 sm:$0xff]  }
  0xec   :  { %2817 = vmatpush2.bf16.msra.mxu1 %v5353_v38  ;;  %2855 = vmatprep.subr.bf16.mxu0 %v5364_v44  ;;  %v5407_v38 = vld [vmem:[%s7695_s1 + $0x488] ss:$16 sps:$4 sm:$0xff]   ;;  %v5418_v44 = vld [vmem:[%s7695_s1 + $0x6ac] ss:$16 sps:$4 sm:$0xff]  }
  0xed   :  { %2818 = vmatprep.subr.bf16.mxu1 %v5361_v40  ;;  %v5415_v40 = vld [vmem:[%s7695_s1 + $0x46c] ss:$16 sps:$4 sm:$0xff]  }
  0xef   :  { %2856 = vmatpush2.bf16.msra.mxu0 %v5362_v46  ;;  %v5421_v46 = vld [vmem:[%s7695_s1 + $0x44c] ss:$16 sps:$4 sm:$0xff]  }
  0xf0   :  { %2819 = vmatpush2.bf16.msra.mxu1 %v5359_v45  ;;  %2857 = vmatprep.subr.bf16.mxu0 %v5370_v50  ;;  %v5413_v45 = vld [vmem:[%s7695_s1 + $0x468] ss:$16 sps:$4 sm:$0xff]  }
  0xf1   :  { %2820 = vmatprep.subr.bf16.mxu1 %v5367_v48  ;;  %v5424_v48 = vld [vmem:[%s7695_s1 + $0x68c] ss:$16 sps:$4 sm:$0xff]   ;;  %v5419_v50 = vld [vmem:[%s7695_s1 + $0x448] ss:$16 sps:$4 sm:$0xff]  }
  0xf3   :  { %2858 = vmatpush2.bf16.msra.mxu0 %v5368_v35  ;;  %v5430_v35 = vld [vmem:[%s7695_s1 + $0x66c] ss:$16 sps:$4 sm:$0xff]  }
  0xf4   :  { %2821 = vmatpush2.bf16.msra.mxu1 %v5365_v51  ;;  %2859 = vmatprep.subr.bf16.mxu0 %v5376_v54  ;;  %v5427_v51 = vld [vmem:[%s7695_s1 + $0x42c] ss:$16 sps:$4 sm:$0xff]   ;;  %v5428_v54 = vld [vmem:[%s7695_s1 + $0x668] ss:$16 sps:$4 sm:$0xff]  }
  0xf5   :  { %2822 = vmatprep.subr.bf16.mxu1 %v5373_v53  ;;  %v5425_v53 = vld [vmem:[%s7695_s1 + $0x428] ss:$16 sps:$4 sm:$0xff]  }
  0xf7   :  { %2860 = vmatpush2.bf16.msra.mxu0 %v5374_v32  ;;  %v5436_v32 = vld [vmem:[%s7695_s1 + $0x64c] ss:$16 sps:$4 sm:$0xff]  }
  0xf8   :  { %2823 = vmatpush2.bf16.msra.mxu1 %v5371_v55  ;;  %2861 = vmatprep.subr.bf16.mxu0 %v5382_v57  ;;  %v5433_v55 = vld [vmem:[%s7695_s1 + $0x40c] ss:$16 sps:$4 sm:$0xff]   ;;  %v5434_v57 = vld [vmem:[%s7695_s1 + $0x648] ss:$16 sps:$4 sm:$0xff]  }
  0xf9   :  { %2824 = vmatprep.subr.bf16.mxu1 %v5379_v56  ;;  %v5431_v56 = vld [vmem:[%s7695_s1 + $0x408] ss:$16 sps:$4 sm:$0xff]  }
  0xfb   :  { %2862 = vmatpush2.bf16.msra.mxu0 %v5380_v59  ;;  %v5442_v59 = vld [vmem:[%s7695_s1 + $0x62c] ss:$16 sps:$4 sm:$0xff]  }
  0xfc   :  { %2825 = vmatpush2.bf16.msra.mxu1 %v5377_v58  ;;  %2863 = vmatprep.subr.bf16.mxu0 %v5388_v1  ;;  %v5439_v58 = vld [vmem:[%s7695_s1 + $0x5ec] ss:$16 sps:$4 sm:$0xff]   ;;  %v5440_v1 = vld [vmem:[%s7695_s1 + $0x628] ss:$16 sps:$4 sm:$0xff]  }
  0xfd   :  { %2826 = vmatprep.subr.bf16.mxu1 %v5385_v61  ;;  %v5437_v61 = vld [vmem:[%s7695_s1 + $0x5e8] ss:$16 sps:$4 sm:$0xff]  }
  0xff   :  { %2864 = vmatpush2.bf16.msra.mxu0 %v5386_v3  ;;  %v5448_v3 = vld [vmem:[%s7695_s1 + $0x60c] ss:$16 sps:$4 sm:$0xff]  }
 0x100   :  { %2827 = vmatpush2.bf16.msra.mxu1 %v5383_v2  ;;  %2865 = vmatprep.subr.bf16.mxu0 %v5391_v4  ;;  %v5445_v2 = vld [vmem:[%s7695_s1 + $0x5cc] ss:$16 sps:$4 sm:$0xff]   ;;  %v5446_v4 = vld [vmem:[%s7695_s1 + $0x608] ss:$16 sps:$4 sm:$0xff]  }
 0x101   :  { %2878 = vmatprep.subr.bf16.mxu1 %v5394_v5  ;;  %v5451_v5 = vld [vmem:[%s7695_s1 + $0x5ac] ss:$16 sps:$4 sm:$0xff]  }
 0x102   :  { %v2543_v14 = vpop.f32.mrf.mxu0 }
 0x103   :  { %v2584_v15 = vpop.f32.mrf.mxu1  ;;  %2829 = vmatmul.mubr.bf16.vlgmr.msra.gmra.mxu1 %v6073_v13  ;;  %v2544_v20 = vadd.f32 %v2543_v14, %v426_v9  ;;  %2866 = vmatpush2.bf16.msra.mxu0 %v5389_v8  ;;  %v5406_v13 = vld [vmem:[%s7695_s1 + $0x6ec] ss:$16 sps:$4 sm:$0xff]   ;;  %v5449_v9 = vld [vmem:[%s7695_s1 + $0x5a8] ss:$16 sps:$4 sm:$0xff]  }
 0x104   :  { %2879 = vmatpush1.bf16.msra.mxu1 %v5392_v10  ;;  %v2545_v21 = vpop.f32.mrf.mxu0  ;;  %2867 = vmatprep.subr.bf16.mxu0 %v5397_v0  ;;  %v5454_v8 = vld [vmem:[%s7695_s1 + $0x7ec] ss:$16 sps:$4 sm:$0xff]   ;;  %v5452_v10 = vld [vmem:[%s7695_s1 + $0x7e8] ss:$16 sps:$4 sm:$0xff]  }
 0x105   :  { %v2586_v22 = vpop.f32.mrf.mxu1  ;;  %2880 = vmatprep.subr.bf16.mxu1 %v5400_v11  ;;  %v6760_v25 = vadd.f32 %v2584_v15, %v2544_v20  ;;  %v2546_v27 = vadd.f32 %v2545_v21, %v430_v12  ;;  %2910 = vmatprep.mubr.bf16.mxu1 %v6085_v17  ;;  %v5457_v0 = vld [vmem:[%s7695_s1 + $0x58c] ss:$16 sps:$4 sm:$0xff]   ;;  %v5455_v12 = vld [vmem:[%s7695_s1 + $0x588] ss:$16 sps:$4 sm:$0xff]  }
 0x106   :  { %v2547_v28 = vpop.f32.mrf.mxu0  ;;  %v5460_v11 = vld [vmem:[%s7695_s1 + $0x7cc] ss:$16 sps:$4 sm:$0xff]   ;;  %v5458_v14 = vld [vmem:[%s7695_s1 + $0x7c8] ss:$16 sps:$4 sm:$0xff]  }
 0x107   :  { %v2588_v29 = vpop.f32.mrf.mxu1  ;;  %v6763_v30 = vadd.f32 %v2586_v22, %v2546_v27  ;;  %2868 = vmatpush2.bf16.msra.mxu0 %v5395_v16  ;;  %v5463_v15 = vld [vmem:[%s7695_s1 + $0x56c] ss:$16 sps:$4 sm:$0xff]   ;;  %v5464_v20 = vld [vmem:[%s7695_s1 + $0x7a8] ss:$16 sps:$4 sm:$0xff]  }
 0x108   :  { %2881 = vmatpush1.bf16.msra.mxu1 %v5398_v19  ;;  %v2548_v36 = vpop.f32.mrf.mxu0  ;;  %2919 = vmatprep.subr.bf16.mxu0 %v5406_v13  ;;  %v5466_v16 = vld [vmem:[%s7695_s1 + $0x7ac] ss:$16 sps:$4 sm:$0xff]   ;;  %v5461_v19 = vld [vmem:[%s7695_s1 + $0x568] ss:$16 sps:$4 sm:$0xff]  }
 0x109   :  { %v2589_v17 = vpop.f32.mrf.mxu1  ;;  %2882 = vmatprep.subr.bf16.mxu1 %v5403_v24  ;;  %v5469_v21 = vld [vmem:[%s7695_s1 + $0x54c] ss:$16 sps:$4 sm:$0xff]   ;;  %v5467_v24 = vld [vmem:[%s7695_s1 + $0x548] ss:$16 sps:$4 sm:$0xff]  }
 0x10a   :  { %2870 = vmatmul.mubr.bf16.vlgmr.msra.gmra.mxu0 %v6089_v18  ;;  %v5416_v18 = vld [vmem:[%s7695_s1 + $0x6a8] ss:$16 sps:$4 sm:$0xff]   ;;  %v5472_v22 = vld [vmem:[%s7695_s1 + $0x78c] ss:$16 sps:$4 sm:$0xff]  }
 0x10b   :  { %2920 = vmatpush1.bf16.msra.mxu0 %v5404_v33  ;;  %2951 = vmatprep.mubr.bf16.mxu0 %v6105_v23  ;;  %v5422_v23 = vld [vmem:[%s7695_s1 + $0x688] ss:$16 sps:$4 sm:$0xff]   ;;  %v5475_v27 = vld [vmem:[%s7695_s1 + $0x52c] ss:$16 sps:$4 sm:$0xff]  }
 0x10c   :  { %2883 = vmatpush1.bf16.msra.mxu1 %v5401_v31  ;;  %2921 = vmatprep.subr.bf16.mxu0 %v5412_v37  ;;  %v5470_v13 = vld [vmem:[%s7695_s1 + $0x788] ss:$16 sps:$4 sm:$0xff]   ;;  %v5478_v28 = vld [vmem:[%s7695_s1 + $0x76c] ss:$16 sps:$4 sm:$0xff]  }
 0x10d   :  { %2884 = vmatprep.subr.bf16.mxu1 %v5409_v34  ;;  %v5473_v29 = vld [vmem:[%s7695_s1 + $0x528] ss:$16 sps:$4 sm:$0xff]   ;;  %v5481_v33 = vld [vmem:[%s7695_s1 + $0x50c] ss:$16 sps:$4 sm:$0xff]  }
 0x10e   :  { %v5476_v31 = vld [vmem:[%s7695_s1 + $0x768] ss:$16 sps:$4 sm:$0xff]   ;;  %v5484_v34 = vld [vmem:[%s7695_s1 + $0x74c] ss:$16 sps:$4 sm:$0xff]  }
 0x10f   :  { %2922 = vmatpush1.bf16.msra.mxu0 %v5410_v39  ;;  %v5479_v36 = vld [vmem:[%s7695_s1 + $0x508] ss:$16 sps:$4 sm:$0xff]   ;;  %v5487_v37 = vld [vmem:[%s7695_s1 + $0x72c] ss:$16 sps:$4 sm:$0xff]  }
 0x110   :  { %2885 = vmatpush1.bf16.msra.mxu1 %v5407_v38  ;;  %2923 = vmatprep.subr.bf16.mxu0 %v5418_v44  ;;  %v5482_v17 = vld [vmem:[%s7695_s1 + $0x748] ss:$16 sps:$4 sm:$0xff]   ;;  %v5490_v38 = vld [vmem:[%s7695_s1 + $0x8ec] ss:$16 sps:$4 sm:$0xff]  }
 0x111   :  { %2886 = vmatprep.subr.bf16.mxu1 %v5415_v40  ;;  %v5485_v39 = vld [vmem:[%s7695_s1 + $0x728] ss:$16 sps:$4 sm:$0xff]   ;;  %v5493_v44 = vld [vmem:[%s7695_s1 + $0x70c] ss:$16 sps:$4 sm:$0xff]  }
 0x112   :  { %v5488_v40 = vld [vmem:[%s7695_s1 + $0x8e8] ss:$16 sps:$4 sm:$0xff]  }
 0x113   :  { %2924 = vmatpush1.bf16.msra.mxu0 %v5416_v18 }
 0x114   :  { %2887 = vmatpush1.bf16.msra.mxu1 %v5413_v45  ;;  %2925 = vmatprep.subr.bf16.mxu0 %v5424_v48  ;;  %v5496_v45 = vld [vmem:[%s7695_s1 + $0x8cc] ss:$16 sps:$4 sm:$0xff]  }
 0x115   :  { %2888 = vmatprep.subr.bf16.mxu1 %v5421_v46 }
 0x117   :  { %2926 = vmatpush1.bf16.msra.mxu0 %v5422_v23  ;;  %v5494_v23 = vld [vmem:[%s7695_s1 + $0x8c8] ss:$16 sps:$4 sm:$0xff]  }
 0x118   :  { %2889 = vmatpush1.bf16.msra.mxu1 %v5419_v50  ;;  %2927 = vmatprep.subr.bf16.mxu0 %v5430_v35  ;;  %v5491_v50 = vld [vmem:[%s7695_s1 + $0x708] ss:$16 sps:$4 sm:$0xff]  }
 0x119   :  { %2890 = vmatprep.subr.bf16.mxu1 %v5427_v51 }
 0x11b   :  { %2928 = vmatpush1.bf16.msra.mxu0 %v5428_v54 }
 0x11c   :  { %2891 = vmatpush1.bf16.msra.mxu1 %v5425_v53  ;;  %2929 = vmatprep.subr.bf16.mxu0 %v5436_v32 }
 0x11d   :  { %2892 = vmatprep.subr.bf16.mxu1 %v5433_v55 }
 0x11f   :  { %2930 = vmatpush1.bf16.msra.mxu0 %v5434_v57  ;;  %v5497_v57 = vld [vmem:[%s7695_s1 + $0x8a8] ss:$16 sps:$4 sm:$0xff]  }
 0x120   :  { %2893 = vmatpush1.bf16.msra.mxu1 %v5431_v56  ;;  %2931 = vmatprep.subr.bf16.mxu0 %v5442_v59 }
 0x121   :  { %2894 = vmatprep.subr.bf16.mxu1 %v5439_v58  ;;  %v5500_v58 = vld [vmem:[%s7695_s1 + $0xae8] ss:$16 sps:$4 sm:$0xff]  }
 0x123   :  { %2932 = vmatpush1.bf16.msra.mxu0 %v5440_v1  ;;  %v5503_v1 = vld [vmem:[%s7695_s1 + $0x888] ss:$16 sps:$4 sm:$0xff]  }
 0x124   :  { %2895 = vmatpush2.bf16.msra.mxu1 %v5437_v61  ;;  %2933 = vmatprep.subr.bf16.mxu0 %v5448_v3  ;;  %v5511_v3 = vld [vmem:[%s7695_s1 + $0x86c] ss:$16 sps:$4 sm:$0xff]  }
 0x125   :  { %2896 = vmatprep.subr.bf16.mxu1 %v5445_v2  ;;  %v5506_v2 = vld [vmem:[%s7695_s1 + $0xac8] ss:$16 sps:$4 sm:$0xff]  }
 0x127   :  { %2934 = vmatpush1.bf16.msra.mxu0 %v5446_v4  ;;  %v5512_v4 = vld [vmem:[%s7695_s1 + $0xaa8] ss:$16 sps:$4 sm:$0xff]  }
 0x128   :  { %2897 = vmatpush2.bf16.msra.mxu1 %v5443_v49  ;;  %2935 = vmatprep.subr.bf16.mxu0 %v5454_v8  ;;  %v5509_v49 = vld [vmem:[%s7695_s1 + $0x868] ss:$16 sps:$4 sm:$0xff]  }
 0x129   :  { %2898 = vmatprep.subr.bf16.mxu1 %v5451_v5  ;;  %v5517_v5 = vld [vmem:[%s7695_s1 + $0x84c] ss:$16 sps:$4 sm:$0xff]   ;;  %v5515_v8 = vld [vmem:[%s7695_s1 + $0x848] ss:$16 sps:$4 sm:$0xff]  }
 0x12b   :  { %2936 = vmatpush2.bf16.msra.mxu0 %v5452_v10  ;;  %v5523_v10 = vld [vmem:[%s7695_s1 + $0x82c] ss:$16 sps:$4 sm:$0xff]  }
 0x12c   :  { %2899 = vmatpush2.bf16.msra.mxu1 %v5449_v9  ;;  %2937 = vmatprep.subr.bf16.mxu0 %v5460_v11  ;;  %v5518_v9 = vld [vmem:[%s7695_s1 + $0xa88] ss:$16 sps:$4 sm:$0xff]  }
 0x12d   :  { %2900 = vmatprep.subr.bf16.mxu1 %v5457_v0  ;;  %v5526_v0 = vld [vmem:[%s7695_s1 + $0xa6c] ss:$16 sps:$4 sm:$0xff]   ;;  %v5521_v11 = vld [vmem:[%s7695_s1 + $0x828] ss:$16 sps:$4 sm:$0xff]  }
 0x12f   :  { %2938 = vmatpush2.bf16.msra.mxu0 %v5458_v14  ;;  %v5529_v14 = vld [vmem:[%s7695_s1 + $0x80c] ss:$16 sps:$4 sm:$0xff]  }
 0x130   :  { %2901 = vmatpush2.bf16.msra.mxu1 %v5455_v12  ;;  %2939 = vmatprep.subr.bf16.mxu0 %v5466_v16  ;;  %v5524_v12 = vld [vmem:[%s7695_s1 + $0xa68] ss:$16 sps:$4 sm:$0xff]  }
 0x131   :  { %2902 = vmatprep.subr.bf16.mxu1 %v5463_v15  ;;  %v5532_v15 = vld [vmem:[%s7695_s1 + $0xa4c] ss:$16 sps:$4 sm:$0xff]   ;;  %v5527_v16 = vld [vmem:[%s7695_s1 + $0x808] ss:$16 sps:$4 sm:$0xff]  }
 0x133   :  { %2940 = vmatpush2.bf16.msra.mxu0 %v5464_v20  ;;  %v5535_v20 = vld [vmem:[%s7695_s1 + $0x9ec] ss:$16 sps:$4 sm:$0xff]  }
 0x134   :  { %2903 = vmatpush2.bf16.msra.mxu1 %v5461_v19  ;;  %2941 = vmatprep.subr.bf16.mxu0 %v5472_v22  ;;  %v5530_v19 = vld [vmem:[%s7695_s1 + $0xa48] ss:$16 sps:$4 sm:$0xff]  }
 0x135   :  { %2904 = vmatprep.subr.bf16.mxu1 %v5469_v21  ;;  %v5538_v21 = vld [vmem:[%s7695_s1 + $0xa2c] ss:$16 sps:$4 sm:$0xff]   ;;  %v5533_v22 = vld [vmem:[%s7695_s1 + $0x9e8] ss:$16 sps:$4 sm:$0xff]  }
 0x137   :  { %2942 = vmatpush2.bf16.msra.mxu0 %v5470_v13  ;;  %v5541_v13 = vld [vmem:[%s7695_s1 + $0x9cc] ss:$16 sps:$4 sm:$0xff]  }
 0x138   :  { %2905 = vmatpush2.bf16.msra.mxu1 %v5467_v24  ;;  %2943 = vmatprep.subr.bf16.mxu0 %v5478_v28  ;;  %v5536_v24 = vld [vmem:[%s7695_s1 + $0xa28] ss:$16 sps:$4 sm:$0xff]  }
 0x139   :  { %2906 = vmatprep.subr.bf16.mxu1 %v5475_v27  ;;  %v5544_v27 = vld [vmem:[%s7695_s1 + $0xa0c] ss:$16 sps:$4 sm:$0xff]   ;;  %v5539_v28 = vld [vmem:[%s7695_s1 + $0x9c8] ss:$16 sps:$4 sm:$0xff]  }
 0x13b   :  { %2944 = vmatpush2.bf16.msra.mxu0 %v5476_v31  ;;  %v5547_v31 = vld [vmem:[%s7695_s1 + $0x9ac] ss:$16 sps:$4 sm:$0xff]  }
 0x13c   :  { %2907 = vmatpush2.bf16.msra.mxu1 %v5473_v29  ;;  %2945 = vmatprep.subr.bf16.mxu0 %v5484_v34  ;;  %v5542_v29 = vld [vmem:[%s7695_s1 + $0xa08] ss:$16 sps:$4 sm:$0xff]  }
 0x13d   :  { %2908 = vmatprep.subr.bf16.mxu1 %v5481_v33  ;;  %v5550_v33 = vld [vmem:[%s7695_s1 + $0xbec] ss:$16 sps:$4 sm:$0xff]   ;;  %v5545_v34 = vld [vmem:[%s7695_s1 + $0x9a8] ss:$16 sps:$4 sm:$0xff]  }
 0x13f   :  { %2946 = vmatpush2.bf16.msra.mxu0 %v5482_v17  ;;  %v5553_v17 = vld [vmem:[%s7695_s1 + $0x98c] ss:$16 sps:$4 sm:$0xff]  }
 0x140   :  { %2909 = vmatpush2.bf16.msra.mxu1 %v5479_v36  ;;  %2947 = vmatprep.subr.bf16.mxu0 %v5487_v37  ;;  %v5548_v36 = vld [vmem:[%s7695_s1 + $0xbe8] ss:$16 sps:$4 sm:$0xff]   ;;  %v5556_v37 = vld [vmem:[%s7695_s1 + $0xbcc] ss:$16 sps:$4 sm:$0xff]  }
 0x141   :  { %2960 = vmatprep.subr.bf16.mxu1 %v5490_v38  ;;  %v5551_v38 = vld [vmem:[%s7695_s1 + $0x988] ss:$16 sps:$4 sm:$0xff]  }
 0x142   :  { %v2625_v18 = vpop.f32.mrf.mxu0 }
 0x143   :  { %v2666_v46 = vpop.f32.mrf.mxu1  ;;  %2911 = vmatmul.mubr.bf16.vlgmr.msra.gmra.mxu1 %v6284_v26  ;;  %v2626_v48 = vadd.f32 %v2625_v18, %v6760_v25  ;;  %2948 = vmatpush2.bf16.msra.mxu0 %v5485_v39  ;;  %v5499_v26 = vld [vmem:[%s7695_s1 + $0x8ac] ss:$16 sps:$4 sm:$0xff]   ;;  %v5554_v39 = vld [vmem:[%s7695_s1 + $0xbc8] ss:$16 sps:$4 sm:$0xff]  }
 0x144   :  { %2961 = vmatpush1.bf16.msra.mxu1 %v5488_v40  ;;  %v2627_v51 = vpop.f32.mrf.mxu0  ;;  %2949 = vmatprep.subr.bf16.mxu0 %v5493_v44  ;;  %v5502_v25 = vld [vmem:[%s7695_s1 + $0xaec] ss:$16 sps:$4 sm:$0xff]   ;;  %v5560_v18 = vld [vmem:[%s7695_s1 + $0xba8] ss:$16 sps:$4 sm:$0xff]  }
 0x145   :  { %v2668_v35 = vpop.f32.mrf.mxu1  ;;  %2962 = vmatprep.subr.bf16.mxu1 %v5496_v45  ;;  %v6961_v53 = vadd.f32 %v2666_v46, %v2626_v48  ;;  %v2628_v54 = vadd.f32 %v2627_v51, %v6763_v30  ;;  %2992 = vmatprep.mubr.bf16.mxu1 %v6337_v41  ;;  %v5505_v41 = vld [vmem:[%s7695_s1 + $0x88c] ss:$16 sps:$4 sm:$0xff]   ;;  %v5557_v45 = vld [vmem:[%s7695_s1 + $0x968] ss:$16 sps:$4 sm:$0xff]  }
 0x146   :  { %v2629_v55 = vpop.f32.mrf.mxu0  ;;  %v5508_v30 = vld [vmem:[%s7695_s1 + $0xacc] ss:$16 sps:$4 sm:$0xff]  }
 0x147   :  { %v2670_v32 = vpop.f32.mrf.mxu1  ;;  %v6965_v56 = vadd.f32 %v2668_v35, %v2628_v54  ;;  %2950 = vmatpush2.bf16.msra.mxu0 %v5491_v50  ;;  %v5559_v40 = vld [vmem:[%s7695_s1 + $0x96c] ss:$16 sps:$4 sm:$0xff]   ;;  %v5563_v50 = vld [vmem:[%s7695_s1 + $0x948] ss:$16 sps:$4 sm:$0xff]  }
 0x148   :  { %2963 = vmatpush1.bf16.msra.mxu1 %v5494_v23  ;;  %v2630_v59 = vpop.f32.mrf.mxu0  ;;  %3001 = vmatprep.subr.bf16.mxu0 %v5502_v25  ;;  %v5562_v44 = vld [vmem:[%s7695_s1 + $0xbac] ss:$16 sps:$4 sm:$0xff]   ;;  %v5566_v23 = vld [vmem:[%s7695_s1 + $0xb88] ss:$16 sps:$4 sm:$0xff]  }
 0x149   :  { %v2671_v61 = vpop.f32.mrf.mxu1  ;;  %2964 = vmatprep.subr.bf16.mxu1 %v5499_v26  ;;  %v5565_v46 = vld [vmem:[%s7695_s1 + $0x94c] ss:$16 sps:$4 sm:$0xff]   ;;  %v5569_v26 = vld [vmem:[%s7695_s1 + $0x928] ss:$16 sps:$4 sm:$0xff]  }
 0x14a   :  { %2952 = vmatmul.mubr.bf16.vlgmr.msra.gmra.mxu0 %v6297_v6  ;;  %v5514_v6 = vld [vmem:[%s7695_s1 + $0xaac] ss:$16 sps:$4 sm:$0xff]   ;;  %v5572_v25 = vld [vmem:[%s7695_s1 + $0xb68] ss:$16 sps:$4 sm:$0xff]  }
 0x14b   :  { %3002 = vmatpush1.bf16.msra.mxu0 %v5500_v58  ;;  %3033 = vmatprep.mubr.bf16.mxu0 %v6342_v43  ;;  %v5520_v43 = vld [vmem:[%s7695_s1 + $0xa8c] ss:$16 sps:$4 sm:$0xff]   ;;  %v5575_v32 = vld [vmem:[%s7695_s1 + $0x908] ss:$16 sps:$4 sm:$0xff]  }
 0x14c   :  { %2965 = vmatpush1.bf16.msra.mxu1 %v5497_v57  ;;  %3003 = vmatprep.subr.bf16.mxu0 %v5508_v30  ;;  %v5568_v48 = vld [vmem:[%s7695_s1 + $0xb8c] ss:$16 sps:$4 sm:$0xff]   ;;  %v5578_v57 = vld [vmem:[%s7695_s1 + $0xb48] ss:$16 sps:$4 sm:$0xff]  }
 0x14d   :  { %2966 = vmatprep.subr.bf16.mxu1 %v5505_v41  ;;  %v5571_v51 = vld [vmem:[%s7695_s1 + $0x92c] ss:$16 sps:$4 sm:$0xff]   ;;  %v5581_v61 = vld [vmem:[%s7695_s1 + $0xb28] ss:$16 sps:$4 sm:$0xff]  }
 0x14e   :  { %v5574_v35 = vld [vmem:[%s7695_s1 + $0xb6c] ss:$16 sps:$4 sm:$0xff]   ;;  %v5584_v41 = vld [vmem:[%s7695_s1 + $0xc28] ss:$16 sps:$4 sm:$0xff]  }
 0x14f   :  { %3004 = vmatpush1.bf16.msra.mxu0 %v5506_v2  ;;  %v5577_v54 = vld [vmem:[%s7695_s1 + $0x90c] ss:$16 sps:$4 sm:$0xff]  }
 0x150   :  { %2967 = vmatpush1.bf16.msra.mxu1 %v5503_v1  ;;  %3005 = vmatprep.subr.bf16.mxu0 %v5514_v6  ;;  %v5580_v55 = vld [vmem:[%s7695_s1 + $0xb4c] ss:$16 sps:$4 sm:$0xff]   ;;  %v5587_v6 = vld [vmem:[%s7695_s1 + $0xb08] ss:$16 sps:$4 sm:$0xff]  }
 0x151   :  { %2968 = vmatprep.subr.bf16.mxu1 %v5511_v3  ;;  %v5583_v58 = vld [vmem:[%s7695_s1 + $0xb2c] ss:$16 sps:$4 sm:$0xff]  }
 0x152   :  { %v5586_v59 = vld [vmem:[%s7695_s1 + $0xc2c] ss:$16 sps:$4 sm:$0xff]  }
 0x153   :  { %3006 = vmatpush1.bf16.msra.mxu0 %v5512_v4  ;;  %v5589_v30 = vld [vmem:[%s7695_s1 + $0xb0c] ss:$16 sps:$4 sm:$0xff]  }
 0x154   :  { %2969 = vmatpush1.bf16.msra.mxu1 %v5509_v49  ;;  %3007 = vmatprep.subr.bf16.mxu0 %v5520_v43  ;;  %v5592_v1 = vld [vmem:[%s7695_s1 + $0xc0c] ss:$16 sps:$4 sm:$0xff]   ;;  %v5590_v49 = vld [vmem:[%s7695_s1 + $0xc08] ss:$16 sps:$4 sm:$0xff]   ;;  %v5595_v43 = vld [vmem:[%s7698_s3 + $0xe4] ss:$16 sps:$4 sm:$0xff]  }
 0x155   :  { %2970 = vmatprep.subr.bf16.mxu1 %v5517_v5 }
 0x157   :  { %3008 = vmatpush1.bf16.msra.mxu0 %v5518_v9 }
 0x158   :  { %2971 = vmatpush1.bf16.msra.mxu1 %v5515_v8  ;;  %3009 = vmatprep.subr.bf16.mxu0 %v5526_v0 }
 0x159   :  { %2972 = vmatprep.subr.bf16.mxu1 %v5523_v10  ;;  %v5593_v10 = vld [vmem:[%s7698_s3 + $0xe0] ss:$16 sps:$4 sm:$0xff]  }
 0x15b   :  { %3010 = vmatpush1.bf16.msra.mxu0 %v5524_v12  ;;  %v5598_v12 = vld [vmem:[%s7698_s3 + $0xc4] ss:$16 sps:$4 sm:$0xff]  }
 0x15c   :  { %2973 = vmatpush1.bf16.msra.mxu1 %v5521_v11  ;;  %3011 = vmatprep.subr.bf16.mxu0 %v5532_v15 }
 0x15d   :  { %2974 = vmatprep.subr.bf16.mxu1 %v5529_v14 }
 0x15f   :  { %3012 = vmatpush1.bf16.msra.mxu0 %v5530_v19 }
 0x160   :  { %2975 = vmatpush1.bf16.msra.mxu1 %v5527_v16  ;;  %3013 = vmatprep.subr.bf16.mxu0 %v5538_v21  ;;  %v5601_v16 = vld [vmem:[%s7698_s3 + $0xa4] ss:$16 sps:$4 sm:$0xff]  }
 0x161   :  { %2976 = vmatprep.subr.bf16.mxu1 %v5535_v20 }
 0x163   :  { %3014 = vmatpush1.bf16.msra.mxu0 %v5536_v24  ;;  %v5689_v24 = vld [vmem:[%s7698_s3 + $0x2e0] ss:$16 sps:$4 sm:$0xff]  }
 0x164   :  { %2977 = vmatpush2.bf16.msra.mxu1 %v5533_v22  ;;  %3015 = vmatprep.subr.bf16.mxu0 %v5544_v27  ;;  %v5604_v22 = vld [vmem:[%s7698_s3 + $0x84] ss:$16 sps:$4 sm:$0xff]  }
 0x165   :  { %2978 = vmatprep.subr.bf16.mxu1 %v5541_v13  ;;  %v5691_v13 = vld [vmem:[%s7698_s3 + $0x2e4] ss:$16 sps:$4 sm:$0xff]  }
 0x167   :  { %3016 = vmatpush1.bf16.msra.mxu0 %v5542_v29  ;;  %v5602_v29 = vld [vmem:[%s7698_s3 + $0x80] ss:$16 sps:$4 sm:$0xff]  }
 0x168   :  { %2979 = vmatpush2.bf16.msra.mxu1 %v5539_v28  ;;  %3017 = vmatprep.subr.bf16.mxu0 %v5550_v33  ;;  %v5694_v28 = vld [vmem:[%s7698_s3 + $0x2c4] ss:$16 sps:$4 sm:$0xff]   ;;  %v5692_v33 = vld [vmem:[%s7698_s3 + $0x2c0] ss:$16 sps:$4 sm:$0xff]  }
 0x169   :  { %2980 = vmatprep.subr.bf16.mxu1 %v5547_v31  ;;  %v5607_v31 = vld [vmem:[%s7698_s3 + $0x64] ss:$16 sps:$4 sm:$0xff]  }
 0x16b   :  { %3018 = vmatpush2.bf16.msra.mxu0 %v5548_v36  ;;  %v5605_v36 = vld [vmem:[%s7698_s3 + $0x60] ss:$16 sps:$4 sm:$0xff]  }
 0x16c   :  { %2981 = vmatpush2.bf16.msra.mxu1 %v5545_v34  ;;  %3019 = vmatprep.subr.bf16.mxu0 %v5556_v37  ;;  %v5697_v34 = vld [vmem:[%s7698_s3 + $0x2a4] ss:$16 sps:$4 sm:$0xff]   ;;  %v5695_v37 = vld [vmem:[%s7698_s3 + $0x2a0] ss:$16 sps:$4 sm:$0xff]  }
 0x16d   :  { %2982 = vmatprep.subr.bf16.mxu1 %v5553_v17  ;;  %v5610_v17 = vld [vmem:[%s7698_s3 + $0x44] ss:$16 sps:$4 sm:$0xff]  }
 0x16f   :  { %3020 = vmatpush2.bf16.msra.mxu0 %v5554_v39  ;;  %v5608_v39 = vld [vmem:[%s7698_s3 + $0x40] ss:$16 sps:$4 sm:$0xff]  }
 0x170   :  { %2983 = vmatpush2.bf16.msra.mxu1 %v5551_v38  ;;  %3021 = vmatprep.subr.bf16.mxu0 %v5562_v44  ;;  %v5700_v38 = vld [vmem:[%s7698_s3 + $0x284] ss:$16 sps:$4 sm:$0xff]   ;;  %v5698_v44 = vld [vmem:[%s7698_s3 + $0x280] ss:$16 sps:$4 sm:$0xff]  }
 0x171   :  { %2984 = vmatprep.subr.bf16.mxu1 %v5559_v40  ;;  %v5613_v40 = vld [vmem:[%s7698_s3 + $0x24] ss:$16 sps:$4 sm:$0xff]  }
 0x173   :  { %3022 = vmatpush2.bf16.msra.mxu0 %v5560_v18  ;;  %v5611_v18 = vld [vmem:[%s7698_s3 + $0x20] ss:$16 sps:$4 sm:$0xff]  }
 0x174   :  { %2985 = vmatpush2.bf16.msra.mxu1 %v5557_v45  ;;  %3023 = vmatprep.subr.bf16.mxu0 %v5568_v48  ;;  %v5703_v45 = vld [vmem:[%s7698_s3 + $0x264] ss:$16 sps:$4 sm:$0xff]   ;;  %v5701_v48 = vld [vmem:[%s7698_s3 + $0x260] ss:$16 sps:$4 sm:$0xff]  }
 0x175   :  { %2986 = vmatprep.subr.bf16.mxu1 %v5565_v46  ;;  %v5616_v46 = vld [vmem:[%s7698_s3 + $0x4] ss:$16 sps:$4 sm:$0xff]  }
 0x177   :  { %3024 = vmatpush2.bf16.msra.mxu0 %v5566_v23  ;;  %v5614_v23 = vld [vmem:[%s7698_s3] ss:$16 sps:$4 sm:$0xff]  }
 0x178   :  { %2987 = vmatpush2.bf16.msra.mxu1 %v5563_v50  ;;  %3025 = vmatprep.subr.bf16.mxu0 %v5574_v35  ;;  %v5706_v50 = vld [vmem:[%s7698_s3 + $0x244] ss:$16 sps:$4 sm:$0xff]   ;;  %v5704_v35 = vld [vmem:[%s7698_s3 + $0x240] ss:$16 sps:$4 sm:$0xff]  }
 0x179   :  { %2988 = vmatprep.subr.bf16.mxu1 %v5571_v51  ;;  %v5619_v51 = vld [vmem:[%s7698_s3 + $0x1e4] ss:$16 sps:$4 sm:$0xff]  }
 0x17b   :  { %3026 = vmatpush2.bf16.msra.mxu0 %v5572_v25  ;;  %v5617_v25 = vld [vmem:[%s7698_s3 + $0x1e0] ss:$16 sps:$4 sm:$0xff]  }
 0x17c   :  { %2989 = vmatpush2.bf16.msra.mxu1 %v5569_v26  ;;  %3027 = vmatprep.subr.bf16.mxu0 %v5580_v55  ;;  %v5709_v26 = vld [vmem:[%s7698_s3 + $0x224] ss:$16 sps:$4 sm:$0xff]   ;;  %v5707_v55 = vld [vmem:[%s7698_s3 + $0x220] ss:$16 sps:$4 sm:$0xff]  }
 0x17d   :  { %2990 = vmatprep.subr.bf16.mxu1 %v5577_v54  ;;  %v5622_v54 = vld [vmem:[%s7698_s3 + $0x1c4] ss:$16 sps:$4 sm:$0xff]  }
 0x17f   :  { %3028 = vmatpush2.bf16.msra.mxu0 %v5578_v57  ;;  %v5620_v57 = vld [vmem:[%s7698_s3 + $0x1c0] ss:$16 sps:$4 sm:$0xff]  }
 0x180   :  { %2991 = vmatpush2.bf16.msra.mxu1 %v5575_v32  ;;  %3029 = vmatprep.subr.bf16.mxu0 %v5583_v58  ;;  %v5712_v32 = vld [vmem:[%s7698_s3 + $0x204] ss:$16 sps:$4 sm:$0xff]  }
 0x181   :  { %3054 = vmatprep.subr.bf16.mxu1 %v5586_v59  ;;  %v5625_v58 = vld [vmem:[%s7698_s3 + $0x1a4] ss:$16 sps:$4 sm:$0xff]   ;;  %v5710_v59 = vld [vmem:[%s7698_s3 + $0x200] ss:$16 sps:$4 sm:$0xff]  }
 0x182   :  { %v7149_v2 = vpop.f32.mrf.mxu0 }
 0x183   :  { %v7151_v3 = vpop.f32.mrf.mxu1  ;;  %2993 = vmatmul.mubr.bf16.vlgmr.msra.gmra.mxu1 %v6506_v47  ;;  %3030 = vmatpush2.bf16.msra.mxu0 %v5581_v61  ;;  %v5715_v61 = vld [vmem:[%s7698_s3 + $0x3e4] ss:$16 sps:$4 sm:$0xff]  }
 0x184   :  { %3055 = vmatpush1.bf16.msra.mxu1 %v5584_v41  ;;  %v2709_v4 = vpop.f32.mrf.mxu0  ;;  %3031 = vmatprep.subr.bf16.mxu0 %v5589_v30  ;;  %v5623_v41 = vld [vmem:[%s7698_s3 + $0x1a0] ss:$16 sps:$4 sm:$0xff]   ;;  %v5628_v30 = vld [vmem:[%s7698_s3 + $0x184] ss:$16 sps:$4 sm:$0xff]  }
 0x185   :  { %v2750_v5 = vpop.f32.mrf.mxu1  ;;  %3056 = vmatprep.subr.bf16.mxu1 %v5592_v1  ;;  %3074 = vmatprep.mubr.bf16.mxu1 %v5819_v62  ;;  %v2710_v9 = vadd.f32 %v2709_v4, %v6965_v56  ;;  %v5596_v56 = vld [vmem:[%s7698_s3 + $0xc0] ss:$16 sps:$4 sm:$0xff]   ;;  %v5631_v4 = vld [vmem:[%s7698_s3 + $0x164] ss:$16 sps:$4 sm:$0xff]  }
 0x186   :  { %v2711_v47 = vpop.f32.mrf.mxu0  ;;  %v5713_v1 = vld [vmem:[%s7698_s3 + $0x3e0] ss:$16 sps:$4 sm:$0xff]  }
 0x187   :  { %v2752_v8 = vpop.f32.mrf.mxu1  ;;  %3032 = vmatpush2.bf16.msra.mxu0 %v5587_v6  ;;  %v2751_v62 = vadd.f32 %v2750_v5, %v2710_v9  ;;  %v5718_v6 = vld [vmem:[%s7698_s3 + $0x3c4] ss:$16 sps:$4 sm:$0xff]   ;;  %v5716_v5 = vld [vmem:[%s7698_s3 + $0x3c0] ss:$16 sps:$4 sm:$0xff]  }
 0x188   :  { %3057 = vmatpush1.bf16.msra.mxu1 %v5590_v49  ;;  %v2712_v0 = vpop.f32.mrf.mxu0  ;;  %3881 = vmatprep.subr.bf16.mxu0 %v5595_v43  ;;  %v5626_v49 = vld [vmem:[%s7698_s3 + $0x180] ss:$16 sps:$4 sm:$0xff]   ;;  %v5721_v43 = vld [vmem:[%s7698_s3 + $0x3a4] ss:$16 sps:$4 sm:$0xff]  }
 0x189   :  { %v2753_v11 = vpop.f32.mrf.mxu1  ;;  %3922 = vmatprep.subr.bf16.mxu1 %v5691_v13  ;;  %v5629_v47 = vld [vmem:[%s7698_s3 + $0x160] ss:$16 sps:$4 sm:$0xff]   ;;  %v5634_v8 = vld [vmem:[%s7698_s3 + $0x144] ss:$16 sps:$4 sm:$0xff]   ;;  %v2708_v0 = vadd.f32 %v7149_v2, %v6961_v53 }
 0x18a   :  { %v7171_v14 = vpop.f32.mrf.mxu0  ;;  %3034 = vmatmul.mubr.bf16.vlgmr.msra.gmra.mxu0 %v6521_v52  ;;  %v5599_v52 = vld [vmem:[%s7698_s3 + $0xa0] ss:$16 sps:$4 sm:$0xff]  }
 0x18b   :  { %4795 = vmatmul.mubr.msk.bf16.vlgmr.msra.gmra.mxu1 %vm2505_vm0, %v6553_v63  ;;  %3882 = vmatpush1.bf16.msra.mxu0 %v5593_v10  ;;  %v5719_v9 = vld [vmem:[%s7698_s3 + $0x3a0] ss:$16 sps:$4 sm:$0xff]   ;;  %v5724_v10 = vld [vmem:[%s7698_s3 + $0x384] ss:$16 sps:$4 sm:$0xff]  }
 0x18c   :  { %v2791_v15 = vpop.f32.mrf.mxu0  ;;  %3883 = vmatprep.subr.bf16.mxu0 %v5598_v12  ;;  %3923 = vmatpush1.bf16.msra.mxu1 %v5689_v24  ;;  %v5632_v11 = vld [vmem:[%s7698_s3 + $0x140] ss:$16 sps:$4 sm:$0xff]   ;;  %v5637_v12 = vld [vmem:[%s7698_s3 + $0x124] ss:$16 sps:$4 sm:$0xff]  }
 0x18d   :  { %v2792_v19 = vadd.f32 %v2791_v15, %v2751_v62  ;;  %3924 = vmatprep.subr.bf16.mxu1 %v5694_v28  ;;  %v5722_v62 = vld [vmem:[%s7698_s3 + $0x380] ss:$16 sps:$4 sm:$0xff]   ;;  %v5640_v15 = vld [vmem:[%s7698_s3 + $0x104] ss:$16 sps:$4 sm:$0xff]  }
 0x18e   :  { %v2793_v20 = vpop.f32.mrf.mxu0  ;;  %v5635_v53 = vld [vmem:[%s7698_s3 + $0x120] ss:$16 sps:$4 sm:$0xff]  }
 0x18f   :  { %v3084_v21 = vmax.f32 %v2792_v19, 0.0  ;;  %3884 = vmatpush1.bf16.msra.mxu0 %v5596_v56  ;;  %v2749_v56 = vadd.f32 %v7151_v3, %v2708_v0  ;;  %v437_v20 = vsub.s32 3, %v5977_v42  ;;  %v5638_v3 = vld [vmem:[%s7698_s3 + $0x100] ss:$16 sps:$4 sm:$0xff]   ;;  %v5679_v0 = vld [vmem:[%s7698_s3 + $0x16c] ss:$16 sps:$4 sm:$0xff]  }
 0x190   :  { %v2794_v63 = vpop.f32.mrf.mxu0  ;;  %3885 = vmatprep.subr.bf16.mxu0 %v5601_v16  ;;  %3925 = vmatpush1.bf16.msra.mxu1 %v5692_v33  ;;  %v433_v16 = vsub.s32 2, %v5977_v42  ;;  %v5817_v24 = vld [vmem:[%s7697_s2] sm:$0xf]  ;;  %v5730_v33 = vld [vmem:[%s7698_s3 + $0x344] ss:$16 sps:$4 sm:$0xff]  }
 0x191   :  { %v7194_v27 = vpack.c.bf16 %v3084_v21, %v3084_v21  ;;  %3926 = vmatprep.subr.bf16.mxu1 %v5697_v34  ;;  %v2790_v2 = vadd.f32 %v7171_v14, %v2749_v56  ;;  %v5727_v14 = vld [vmem:[%s7698_s3 + $0x364] ss:$16 sps:$4 sm:$0xff]   ;;  %v5643_v63 = vld [vmem:[%s7698_s3 + $0xec] ss:$16 sps:$4 sm:$0xff]  }
 0x192   :  { %v434_v13 = vrot.slane %v5817_v24, %v433_v16  ;;  %v5685_v56 = vld [vmem:[%s7698_s3 + $0x12c] ss:$16 sps:$4 sm:$0xff]  }
 0x193   :  { %3886 = vmatpush1.bf16.msra.mxu0 %v5599_v52  ;;  %3913 = vmatprep.mubr.bf16.mxu0 %v7194_v27  ;;  %v3083_v21 = vmax.f32 %v2790_v2, 0.0  ;;  %v5688_v2 = vld [vmem:[%s7698_s3 + $0x10c] ss:$16 sps:$4 sm:$0xff]  }
 0x194   :  { %3887 = vmatprep.subr.bf16.mxu0 %v5604_v22  ;;  %3927 = vmatpush1.bf16.msra.mxu1 %v5695_v37  ;;  %v5725_v22 = vld [vmem:[%s7698_s3 + $0x360] ss:$16 sps:$4 sm:$0xff]  }
 0x195   :  { %3928 = vmatprep.subr.bf16.mxu1 %v5700_v38  ;;  %v7366_v34 = vpack.c.bf16 %v3083_v21, %v3083_v21  ;;  %v5728_v37 = vld [vmem:[%s7698_s3 + $0x340] ss:$16 sps:$4 sm:$0xff]  }
 0x197   :  { %3888 = vmatpush1.bf16.msra.mxu0 %v5602_v29  ;;  %v438_v29 = vrot.slane %v5817_v24, %v437_v20 }
 0x198   :  { %3889 = vmatprep.subr.bf16.mxu0 %v5607_v31  ;;  %3929 = vmatpush1.bf16.msra.mxu1 %v5698_v44  ;;  %v5641_v31 = vld [vmem:[%s7698_s3 + $0xe8] ss:$16 sps:$4 sm:$0xff]  }
 0x199   :  { %3930 = vmatprep.subr.bf16.mxu1 %v5703_v45  ;;  %v5644_v45 = vld [vmem:[%s7698_s3 + $0xc8] ss:$16 sps:$4 sm:$0xff]  }
 0x19b   :  { %3890 = vmatpush1.bf16.msra.mxu0 %v5605_v36 }
 0x19c   :  { %3891 = vmatprep.subr.bf16.mxu0 %v5610_v17  ;;  %3931 = vmatpush1.bf16.msra.mxu1 %v5701_v48  ;;  %v5646_v17 = vld [vmem:[%s7698_s3 + $0xcc] ss:$16 sps:$4 sm:$0xff]  }
 0x19d   :  { %3932 = vmatprep.subr.bf16.mxu1 %v5706_v50  ;;  %v5649_v48 = vld [vmem:[%s7698_s3 + $0xac] ss:$16 sps:$4 sm:$0xff]   ;;  %v5731_v50 = vld [vmem:[%s7698_s3 + $0x320] ss:$16 sps:$4 sm:$0xff]  }
 0x19f   :  { %3892 = vmatpush1.bf16.msra.mxu0 %v5608_v39 }
 0x1a0   :  { %3893 = vmatprep.subr.bf16.mxu0 %v5613_v40  ;;  %3933 = vmatpush1.bf16.msra.mxu1 %v5704_v35  ;;  %v5736_v35 = vld [vmem:[%s7698_s3 + $0x304] ss:$16 sps:$4 sm:$0xff]  }
 0x1a1   :  { %3934 = vmatprep.subr.bf16.mxu1 %v5709_v26 }
 0x1a3   :  { %3894 = vmatpush1.bf16.msra.mxu0 %v5611_v18  ;;  %v5733_v18 = vld [vmem:[%s7698_s3 + $0x324] ss:$16 sps:$4 sm:$0xff]  }
 0x1a4   :  { %3895 = vmatprep.subr.bf16.mxu0 %v5616_v46  ;;  %3935 = vmatpush1.bf16.msra.mxu1 %v5707_v55  ;;  %v5650_v55 = vld [vmem:[%s7698_s3 + $0x88] ss:$16 sps:$4 sm:$0xff]  }
 0x1a5   :  { %3936 = vmatprep.subr.bf16.mxu1 %v5712_v32  ;;  %v5739_v32 = vld [vmem:[%s7698_s3 + $0x2ec] ss:$16 sps:$4 sm:$0xff]  }
 0x1a7   :  { %3896 = vmatpush1.bf16.msra.mxu0 %v5614_v23 }
 0x1a8   :  { %3897 = vmatprep.subr.bf16.mxu0 %v5619_v51  ;;  %3937 = vmatpush1.bf16.msra.mxu1 %v5710_v59  ;;  %v5647_v51 = vld [vmem:[%s7698_s3 + $0xa8] ss:$16 sps:$4 sm:$0xff]   ;;  %v5658_v59 = vld [vmem:[%s7698_s3 + $0x4c] ss:$16 sps:$4 sm:$0xff]  }
 0x1a9   :  { %3938 = vmatprep.subr.bf16.mxu1 %v5715_v61  ;;  %v5656_v61 = vld [vmem:[%s7698_s3 + $0x48] ss:$16 sps:$4 sm:$0xff]  }
 0x1ab   :  { %3898 = vmatpush2.bf16.msra.mxu0 %v5617_v25  ;;  %v5652_v25 = vld [vmem:[%s7698_s3 + $0x8c] ss:$16 sps:$4 sm:$0xff]  }
 0x1ac   :  { %3899 = vmatprep.subr.bf16.mxu0 %v5622_v54  ;;  %3939 = vmatpush2.bf16.msra.mxu1 %v5713_v1  ;;  %v5734_v54 = vld [vmem:[%s7698_s3 + $0x300] ss:$16 sps:$4 sm:$0xff]   ;;  %v5664_v1 = vld [vmem:[%s7698_s3 + $0xc] ss:$16 sps:$4 sm:$0xff]  }
 0x1ad   :  { %3940 = vmatprep.subr.bf16.mxu1 %v5718_v6  ;;  %v5662_v6 = vld [vmem:[%s7698_s3 + $0x8] ss:$16 sps:$4 sm:$0xff]  }
 0x1af   :  { %3900 = vmatpush2.bf16.msra.mxu0 %v5620_v57  ;;  %v5655_v57 = vld [vmem:[%s7698_s3 + $0x6c] ss:$16 sps:$4 sm:$0xff]  }
 0x1b0   :  { %3901 = vmatprep.subr.bf16.mxu0 %v5625_v58  ;;  %3941 = vmatpush2.bf16.msra.mxu1 %v5716_v5  ;;  %v5653_v58 = vld [vmem:[%s7698_s3 + $0x68] ss:$16 sps:$4 sm:$0xff]   ;;  %v5670_v5 = vld [vmem:[%s7698_s3 + $0x1cc] ss:$16 sps:$4 sm:$0xff]  }
 0x1b1   :  { %3942 = vmatprep.subr.bf16.mxu1 %v5721_v43  ;;  %v5668_v43 = vld [vmem:[%s7698_s3 + $0x1c8] ss:$16 sps:$4 sm:$0xff]  }
 0x1b3   :  { %3902 = vmatpush2.bf16.msra.mxu0 %v5623_v41  ;;  %v5661_v41 = vld [vmem:[%s7698_s3 + $0x2c] ss:$16 sps:$4 sm:$0xff]  }
 0x1b4   :  { %3903 = vmatprep.subr.bf16.mxu0 %v5628_v30  ;;  %3943 = vmatpush2.bf16.msra.mxu1 %v5719_v9  ;;  %v5659_v30 = vld [vmem:[%s7698_s3 + $0x28] ss:$16 sps:$4 sm:$0xff]   ;;  %v5676_v9 = vld [vmem:[%s7698_s3 + $0x18c] ss:$16 sps:$4 sm:$0xff]  }
 0x1b5   :  { %3944 = vmatprep.subr.bf16.mxu1 %v5724_v10  ;;  %v5674_v10 = vld [vmem:[%s7698_s3 + $0x188] ss:$16 sps:$4 sm:$0xff]  }
 0x1b7   :  { %3904 = vmatpush2.bf16.msra.mxu0 %v5626_v49  ;;  %v5667_v49 = vld [vmem:[%s7698_s3 + $0x1ec] ss:$16 sps:$4 sm:$0xff]  }
 0x1b8   :  { %3905 = vmatprep.subr.bf16.mxu0 %v5631_v4  ;;  %3945 = vmatpush2.bf16.msra.mxu1 %v5722_v62  ;;  %v5665_v4 = vld [vmem:[%s7698_s3 + $0x1e8] ss:$16 sps:$4 sm:$0xff]  }
 0x1b9   :  { %3946 = vmatprep.subr.bf16.mxu1 %v5727_v14  ;;  %v5680_v62 = vld [vmem:[%s7698_s3 + $0x148] ss:$16 sps:$4 sm:$0xff]  }
 0x1bb   :  { %3906 = vmatpush2.bf16.msra.mxu0 %v5629_v47  ;;  %v5673_v47 = vld [vmem:[%s7698_s3 + $0x1ac] ss:$16 sps:$4 sm:$0xff]  }
 0x1bc   :  { %3907 = vmatprep.subr.bf16.mxu0 %v5634_v8  ;;  %3947 = vmatpush2.bf16.msra.mxu1 %v5725_v22  ;;  %v5671_v8 = vld [vmem:[%s7698_s3 + $0x1a8] ss:$16 sps:$4 sm:$0xff]  }
 0x1bd   :  { %3948 = vmatprep.subr.bf16.mxu1 %v5730_v33 }
 0x1bf   :  { %3908 = vmatpush2.bf16.msra.mxu0 %v5632_v11  ;;  %v5677_v11 = vld [vmem:[%s7698_s3 + $0x168] ss:$16 sps:$4 sm:$0xff]  }
 0x1c0   :  { %3909 = vmatprep.subr.bf16.mxu0 %v5637_v12  ;;  %3949 = vmatpush2.bf16.msra.mxu1 %v5728_v37  ;;  %v5682_v12 = vld [vmem:[%s7698_s3 + $0x14c] ss:$16 sps:$4 sm:$0xff]  }
 0x1c1   :  { %3950 = vmatprep.subr.bf16.mxu1 %v5733_v18 }
 0x1c3   :  { %v2830_v19 = vpop.f32.mrf.mxu1  ;;  %3910 = vmatpush2.bf16.msra.mxu0 %v5635_v53  ;;  %v5683_v53 = vld [vmem:[%s7698_s3 + $0x128] ss:$16 sps:$4 sm:$0xff]  }
 0x1c4   :  { %3911 = vmatprep.subr.bf16.mxu0 %v5640_v15  ;;  %v2831_v38 = vadd.f32 %v2830_v19, %v434_v13  ;;  %3951 = vmatpush2.bf16.msra.mxu1 %v5731_v50 }
 0x1c5   :  { %v2832_v52 = vpop.f32.mrf.mxu1  ;;  %3952 = vmatprep.subr.bf16.mxu1 %v5736_v35 }
 0x1c6   :  { %v2833_v40 = vadd.f32 %v2832_v52, %v438_v29 }
 0x1c7   :  { %v2834_v28 = vpop.f32.mrf.mxu1  ;;  %3912 = vmatpush2.bf16.msra.mxu0 %v5638_v3  ;;  %v5686_v3 = vld [vmem:[%s7698_s3 + $0x108] ss:$16 sps:$4 sm:$0xff]  }
 0x1c8   :  { %3963 = vmatprep.subr.bf16.mxu0 %v5643_v63  ;;  %3953 = vmatpush2.bf16.msra.mxu1 %v5734_v54  ;;  %v5737_v54 = vld [vmem:[%s7698_s3 + $0x2e8] ss:$16 sps:$4 sm:$0xff]  }
 0x1c9   :  { %v2835_v36 = vpop.f32.mrf.mxu1  ;;  %4004 = vmatprep.subr.bf16.mxu1 %v5739_v32  ;;  %v5742_v32 = vld [vmem:[%s7698_s3 + $0x2cc] ss:$16 sps:$4 sm:$0xff]  }
 0x1ca   :  { %v2871_v39 = vpop.f32.mrf.mxu0  ;;  %3914 = vmatmul.mubr.bf16.vlgmr.msra.gmra.mxu0 %v7366_v34 }
 0x1cb   :  { %v7375_v44 = vadd.f32 %v2871_v39, %v2831_v38  ;;  %3964 = vmatpush1.bf16.msra.mxu0 %v5641_v31  ;;  %3995 = vmatprep.mubr.bf16.mxu0 %v7194_v27 }
 0x1cc   :  { %v2873_v46 = vpop.f32.mrf.mxu0  ;;  %3965 = vmatprep.subr.bf16.mxu0 %v5646_v17 }
 0x1cd   :  { %v7390_v23 = vadd.f32 %v2873_v46, %v2833_v40 }
 0x1ce   :  { %v2875_v27 = vpop.f32.mrf.mxu0 }
 0x1cf   :  { %3966 = vmatpush1.bf16.msra.mxu0 %v5644_v45 }
 0x1d0   :  { %v2876_v26 = vpop.f32.mrf.mxu0  ;;  %3967 = vmatprep.subr.bf16.mxu0 %v5649_v48 }
 0x1d3   :  { %3968 = vmatpush1.bf16.msra.mxu0 %v5647_v51 }
 0x1d4   :  { %3969 = vmatprep.subr.bf16.mxu0 %v5652_v25 }
 0x1d7   :  { %3970 = vmatpush1.bf16.msra.mxu0 %v5650_v55  ;;  %v5785_v55 = vld [vmem:[%s7699_s5 + $0x78] sm:$0xff]  }
 0x1d8   :  { %3971 = vmatprep.subr.bf16.mxu0 %v5655_v57  ;;  %v5786_v57 = vld [vmem:[%s7699_s5 + $0x38] sm:$0xff]  }
 0x1db   :  { %3972 = vmatpush1.bf16.msra.mxu0 %v5653_v58 }
 0x1dc   :  { %3973 = vmatprep.subr.bf16.mxu0 %v5658_v59  ;;  %v5787_v59 = vld [vmem:[%s7699_s5 + $0x70] sm:$0xff]  }
 0x1df   :  { %3974 = vmatpush1.bf16.msra.mxu0 %v5656_v61 }
 0x1e0   :  { %3975 = vmatprep.subr.bf16.mxu0 %v5661_v41  ;;  %v5788_v41 = vld [vmem:[%s7699_s5 + $0x30] sm:$0xff]  }
 0x1e3   :  { %3976 = vmatpush1.bf16.msra.mxu0 %v5659_v30  ;;  %v5789_v30 = vld [vmem:[%s7699_s5 + $0x68] sm:$0xff]  }
 0x1e4   :  { %3977 = vmatprep.subr.bf16.mxu0 %v5664_v1  ;;  %v5740_v1 = vld [vmem:[%s7698_s3 + $0x2c8] ss:$16 sps:$4 sm:$0xff]  }
 0x1e7   :  { %3978 = vmatpush1.bf16.msra.mxu0 %v5662_v6  ;;  %v5745_v6 = vld [vmem:[%s7698_s3 + $0x2ac] ss:$16 sps:$4 sm:$0xff]  }
 0x1e8   :  { %3979 = vmatprep.subr.bf16.mxu0 %v5667_v49  ;;  %v5790_v49 = vld [vmem:[%s7699_s5 + $0x28] sm:$0xff]  }
 0x1eb   :  { %3980 = vmatpush2.bf16.msra.mxu0 %v5665_v4  ;;  %v5743_v4 = vld [vmem:[%s7698_s3 + $0x2a8] ss:$16 sps:$4 sm:$0xff]  }
 0x1ec   :  { %3981 = vmatprep.subr.bf16.mxu0 %v5670_v5  ;;  %v5791_v5 = vld [vmem:[%s7699_s5 + $0x60] sm:$0xff]  }
 0x1ef   :  { %3982 = vmatpush2.bf16.msra.mxu0 %v5668_v43  ;;  %v5748_v43 = vld [vmem:[%s7698_s3 + $0x28c] ss:$16 sps:$4 sm:$0xff]  }
 0x1f0   :  { %3983 = vmatprep.subr.bf16.mxu0 %v5673_v47  ;;  %v5792_v47 = vld [vmem:[%s7699_s5 + $0x20] sm:$0xff]  }
 0x1f3   :  { %3984 = vmatpush2.bf16.msra.mxu0 %v5671_v8  ;;  %v5793_v8 = vld [vmem:[%s7699_s5 + $0x58] sm:$0xff]  }
 0x1f4   :  { %3985 = vmatprep.subr.bf16.mxu0 %v5676_v9  ;;  %v5746_v9 = vld [vmem:[%s7698_s3 + $0x288] ss:$16 sps:$4 sm:$0xff]  }
 0x1f7   :  { %3986 = vmatpush2.bf16.msra.mxu0 %v5674_v10  ;;  %v5751_v10 = vld [vmem:[%s7698_s3 + $0x26c] ss:$16 sps:$4 sm:$0xff]  }
 0x1f8   :  { %3987 = vmatprep.subr.bf16.mxu0 %v5679_v0  ;;  %v5794_v0 = vld [vmem:[%s7699_s5 + $0x18] sm:$0xff]  }
 0x1fb   :  { %3988 = vmatpush2.bf16.msra.mxu0 %v5677_v11  ;;  %v5795_v11 = vld [vmem:[%s7699_s5 + $0x50] sm:$0xff]  }
 0x1fc   :  { %3989 = vmatprep.subr.bf16.mxu0 %v5682_v12  ;;  %v5749_v12 = vld [vmem:[%s7698_s3 + $0x268] ss:$16 sps:$4 sm:$0xff]  }
 0x1ff   :  { %3990 = vmatpush2.bf16.msra.mxu0 %v5680_v62  ;;  %v5754_v62 = vld [vmem:[%s7698_s3 + $0x24c] ss:$16 sps:$4 sm:$0xff]  }
 0x200   :  { %3991 = vmatprep.subr.bf16.mxu0 %v5685_v56  ;;  %v5796_v56 = vld [vmem:[%s7699_s5 + $0x10] sm:$0xff]  }
 0x203   :  { %v2912_v15 = vpop.f32.mrf.mxu1  ;;  %3992 = vmatpush2.bf16.msra.mxu0 %v5683_v53  ;;  %v5752_v53 = vld [vmem:[%s7698_s3 + $0x248] ss:$16 sps:$4 sm:$0xff]  }
 0x204   :  { %v2913_v19 = vadd.f32 %v2912_v15, %v7375_v44  ;;  %3993 = vmatprep.subr.bf16.mxu0 %v5688_v2  ;;  %v5757_v2 = vld [vmem:[%s7698_s3 + $0x22c] ss:$16 sps:$4 sm:$0xff]   ;;  %v5755_v15 = vld [vmem:[%s7698_s3 + $0x228] ss:$16 sps:$4 sm:$0xff]  }
 0x205   :  { %v2914_v14 = vpop.f32.mrf.mxu1 }
 0x206   :  { %v2915_v21 = vadd.f32 %v2914_v14, %v7390_v23  ;;  %v5763_v14 = vld [vmem:[%s7698_s3 + $0x3ec] ss:$16 sps:$4 sm:$0xff]  }
 0x207   :  { %v2916_v52 = vpop.f32.mrf.mxu1  ;;  %3994 = vmatpush2.bf16.msra.mxu0 %v5686_v3  ;;  %v5758_v3 = vld [vmem:[%s7698_s3 + $0x208] ss:$16 sps:$4 sm:$0xff]  }
 0x208   :  { %4957 = vmatprep.subr.bf16.mxu0 %v5785_v55  ;;  %v5766_v52 = vld [vmem:[%s7698_s3 + $0x3cc] ss:$16 sps:$4 sm:$0xff]   ;;  %v5808_v55 = vld [vmem:[%s7699_s5 + $0xa0] sm:$0xff]  }
 0x209   :  { %v2917_v63 = vpop.f32.mrf.mxu1 }
 0x20a   :  { %v2953_v22 = vpop.f32.mrf.mxu0  ;;  %3996 = vmatmul.mubr.bf16.vlgmr.msra.gmra.mxu0 %v7366_v34  ;;  %v5764_v63 = vld [vmem:[%s7698_s3 + $0x3c8] ss:$16 sps:$4 sm:$0xff]  }
 0x20b   :  { %v2954_v36 = vadd.f32 %v2953_v22, %v2913_v19  ;;  %4958 = vmatpush3.bf16.msra.mxu0 %v5786_v57  ;;  %v5760_v19 = vld [vmem:[%s7698_s3 + $0x20c] ss:$16 sps:$4 sm:$0xff]  }
 0x20c   :  { %v2955_v24 = vpop.f32.mrf.mxu0  ;;  %4959 = vmatprep.subr.bf16.mxu0 %v5787_v59  ;;  %v5769_v22 = vld [vmem:[%s7698_s3 + $0x3ac] ss:$16 sps:$4 sm:$0xff]   ;;  %v5812_v59 = vld [vmem:[%s7699_s5 + $0x90] sm:$0xff]  }
 0x20d   :  { %v2956_v37 = vadd.f32 %v2955_v24, %v2915_v21  ;;  %v5761_v21 = vld [vmem:[%s7698_s3 + $0x3e8] ss:$16 sps:$4 sm:$0xff]  }
 0x20e   :  { %v2957_v13 = vpop.f32.mrf.mxu0  ;;  %v5767_v24 = vld [vmem:[%s7698_s3 + $0x3a8] ss:$16 sps:$4 sm:$0xff]  }
 0x20f   :  { %4960 = vmatpush3.bf16.msra.mxu0 %v5788_v41  ;;  %v5772_v13 = vld [vmem:[%s7698_s3 + $0x38c] ss:$16 sps:$4 sm:$0xff]  }
 0x210   :  { %v2958_v28 = vpop.f32.mrf.mxu0  ;;  %4961 = vmatprep.subr.bf16.mxu0 %v5789_v30  ;;  %v5810_v57 = vld [vmem:[%s7699_s5 + $0x98] sm:$0xff]  }
 0x211   :  { %v5770_v28 = vld [vmem:[%s7698_s3 + $0x388] ss:$16 sps:$4 sm:$0xff]  }
 0x213   :  { %4962 = vmatpush3.bf16.msra.mxu0 %v5790_v49  ;;  %v5814_v49 = vld [vmem:[%s7699_s5 + $0x88] sm:$0xff]  }
 0x214   :  { %4963 = vmatprep.subr.bf16.mxu0 %v5791_v5  ;;  %v5816_v5 = vld [vmem:[%s7699_s5 + $0x80] sm:$0xff]  }
 0x217   :  { %4964 = vmatpush3.bf16.msra.mxu0 %v5792_v47 }
 0x218   :  { %4965 = vmatprep.subr.bf16.mxu0 %v5793_v8 }
 0x21b   :  { %4966 = vmatpush3.bf16.msra.mxu0 %v5794_v0 }
 0x21c   :  { %4967 = vmatprep.subr.bf16.mxu0 %v5795_v11 }
 0x21f   :  { %4968 = vmatpush3.bf16.msra.mxu0 %v5796_v56 }
 0x243   :  { %v2994_v29 = vpop.f32.mrf.mxu1 }
 0x244   :  { %v2995_v38 = vadd.f32 %v2994_v29, %v2954_v36  ;;  %v5775_v29 = vld [vmem:[%s7698_s3 + $0x36c] ss:$16 sps:$4 sm:$0xff]   ;;  %v5776_v36 = vld [vmem:[%s7698_s3 + $0x348] ss:$16 sps:$4 sm:$0xff]  }
 0x245   :  { %v2996_v31 = vpop.f32.mrf.mxu1 }
 0x246   :  { %v2997_v44 = vadd.f32 %v2996_v31, %v2956_v37  ;;  %v5773_v31 = vld [vmem:[%s7698_s3 + $0x368] ss:$16 sps:$4 sm:$0xff]  }
 0x247   :  { %v2998_v33 = vpop.f32.mrf.mxu1 }
 0x248   :  { %v5778_v33 = vld [vmem:[%s7698_s3 + $0x34c] ss:$16 sps:$4 sm:$0xff]  }
 0x249   :  { %v2999_v17 = vpop.f32.mrf.mxu1 }
 0x24a   :  { %v3035_v39 = vpop.f32.mrf.mxu0  ;;  %v5781_v17 = vld [vmem:[%s7698_s3 + $0x32c] ss:$16 sps:$4 sm:$0xff]  }
 0x24b   :  { %v3076_v40 = vpop.f32.mrf.mxu1  ;;  %v3036_v45 = vadd.f32 %v3035_v39, %v2995_v38  ;;  %v5779_v38 = vld [vmem:[%s7698_s3 + $0x328] ss:$16 sps:$4 sm:$0xff]  }
 0x24c   :  { %v3037_v18 = vpop.f32.mrf.mxu0 }
 0x24d   :  { %v3078_v46 = vpop.f32.mrf.mxu1  ;;  %v3077_v48 = vadd.f32 %v3076_v40, %v3036_v45  ;;  %v3038_v50 = vadd.f32 %v3037_v18, %v2997_v44  ;;  %v5784_v40 = vld [vmem:[%s7698_s3 + $0x30c] ss:$16 sps:$4 sm:$0xff]   ;;  %v5782_v45 = vld [vmem:[%s7698_s3 + $0x308] ss:$16 sps:$4 sm:$0xff]  }
 0x24e   :  { %v3039_v23 = vpop.f32.mrf.mxu0 }
 0x24f   :  { %v3080_v34 = vpop.f32.mrf.mxu1  ;;  %v3079_v27 = vadd.f32 %v3078_v46, %v3038_v50  ;;  %v3085_v51 = vmax.f32 %v3077_v48, 0.0  ;;  %v5797_v46 = vld [vmem:[%s7699_s5 + $0x48] sm:$0xff]   ;;  %v5799_v50 = vld [vmem:[%s7699_s5 + $0x40] sm:$0xff]  }
 0x250   :  { %v3040_v35 = vpop.f32.mrf.mxu0  ;;  %v5798_v48 = vld [vmem:[%s7699_s5 + $0x8] sm:$0xff]   ;;  %4969 = vmatprep.subr.bf16.mxu0 %v5797_v46  ;;  %v5800_v23 = vld [vmem:[%s7699_s5] sm:$0xff]   ;;  %v5801_v34 = vld [vmem:[%s7699_s5 + $0xf8] sm:$0xff]  }
 0x251   :  { %v3081_v26 = vpop.f32.mrf.mxu1  ;;  %v3086_v25 = vmax.f32 %v3079_v27, 0.0  ;;  %v7500_v61 = vpack.c.bf16 %v3085_v51, %v3085_v51  ;;  %4970 = vmatpush3.bf16.msra.mxu0 %v5798_v48  ;;  %v5802_v27 = vld [vmem:[%s7699_s5 + $0xb8] sm:$0xff]   ;;  %v5803_v51 = vld [vmem:[%s7699_s5 + $0xf0] sm:$0xff]  }
 0x252   :  { %4971 = vmatprep.subr.bf16.mxu0 %v5799_v50  ;;  %v5804_v35 = vld [vmem:[%s7699_s5 + $0xb0] sm:$0xff]   ;;  %v5805_v26 = vld [vmem:[%s7699_s5 + $0xe8] sm:$0xff]  }
 0x253   :  { %v3090_v58 = vpack.c.bf16 %v3086_v25, %v3086_v25  ;;  %v5806_v25 = vld [vmem:[%s7699_s5 + $0xa8] sm:$0xff]  }
 0x255   :  { %3954 = vmatprep.mubr.bf16.mxu1 %v3090_v58  ;;  %4972 = vmatpush3.bf16.msra.mxu0 %v5800_v23 }
 0x256   :  { %3955 = vmatmul.mubr.bf16.vlgmr.msra.gmra.mxu1 %v7500_v61 }
 0x257   :  { %4005 = vmatpush1.bf16.msra.mxu1 %v5737_v54  ;;  %4036 = vmatprep.mubr.bf16.mxu1 %v3090_v58  ;;  %v5807_v54 = vld [vmem:[%s7699_s5 + $0xe0] sm:$0xff]   ;;  %v5811_v58 = vld [vmem:[%s7699_s5 + $0xd0] sm:$0xff]  }
 0x258   :  { %4006 = vmatprep.subr.bf16.mxu1 %v5742_v32  ;;  %v5809_v32 = vld [vmem:[%s7699_s5 + $0xd8] sm:$0xff]  }
 0x25b   :  { %4007 = vmatpush1.bf16.msra.mxu1 %v5740_v1 }
 0x25c   :  { %4008 = vmatprep.subr.bf16.mxu1 %v5745_v6  ;;  %v5813_v6 = vld [vmem:[%s7699_s5 + $0xc8] sm:$0xff]  }
 0x25f   :  { %4009 = vmatpush1.bf16.msra.mxu1 %v5743_v4  ;;  %v5815_v4 = vld [vmem:[%s7699_s5 + $0xc0] sm:$0xff]  }
 0x260   :  { %4010 = vmatprep.subr.bf16.mxu1 %v5748_v43  ;;  %v3219_v43 = vld [vmem:[%s7700_s4] sm:$0xf] }
 0x261   :  { %v3224_v47 = vrot.slane %v3219_v43, %v425_v60  ;;  %v3228_v8 = vrot.slane %v3219_v43, %v429_v7  ;;  %v3232_v60 = vrot.slane %v3219_v43, %v433_v16  ;;  %v3236_v7 = vrot.slane %v3219_v43, %v437_v20  ;;  %v4924_v20 = vld [vmem:[%s7701_s6] ss:$0 sm:$0xff] }
 0x263   :  { %4011 = vmatpush1.bf16.msra.mxu1 %v5746_v9 }
 0x264   :  { %4012 = vmatprep.subr.bf16.mxu1 %v5751_v10 }
 0x267   :  { %4013 = vmatpush1.bf16.msra.mxu1 %v5749_v12 }
 0x268   :  { %4014 = vmatprep.subr.bf16.mxu1 %v5754_v62 }
 0x26b   :  { %4015 = vmatpush1.bf16.msra.mxu1 %v5752_v53 }
 0x26c   :  { %4016 = vmatprep.subr.bf16.mxu1 %v5757_v2 }
 0x26f   :  { %4017 = vmatpush1.bf16.msra.mxu1 %v5755_v15 }
 0x270   :  { %4018 = vmatprep.subr.bf16.mxu1 %v5760_v19 }
 0x273   :  { %4019 = vmatpush1.bf16.msra.mxu1 %v5758_v3 }
 0x274   :  { %4020 = vmatprep.subr.bf16.mxu1 %v5763_v14 }
 0x277   :  { %4021 = vmatpush2.bf16.msra.mxu1 %v5761_v21 }
 0x278   :  { %4022 = vmatprep.subr.bf16.mxu1 %v5766_v52 }
 0x27b   :  { %4023 = vmatpush2.bf16.msra.mxu1 %v5764_v63 }
 0x27c   :  { %4024 = vmatprep.subr.bf16.mxu1 %v5769_v22 }
 0x27f   :  { %4025 = vmatpush2.bf16.msra.mxu1 %v5767_v24 }
 0x280   :  { %4026 = vmatprep.subr.bf16.mxu1 %v5772_v13 }
 0x283   :  { %4027 = vmatpush2.bf16.msra.mxu1 %v5770_v28 }
 0x284   :  { %4028 = vmatprep.subr.bf16.mxu1 %v5775_v29 }
 0x287   :  { %4029 = vmatpush2.bf16.msra.mxu1 %v5773_v31 }
 0x288   :  { %4030 = vmatprep.subr.bf16.mxu1 %v5778_v33 }
 0x28a   :  { %v3915_v37 = vpop.f32.mrf.mxu0 }
 0x28b   :  { %4031 = vmatpush2.bf16.msra.mxu1 %v5776_v36  ;;  %v3916_v9 = vadd.f32 %v3915_v37, %v3224_v47 }
 0x28c   :  { %v3917_v39 = vpop.f32.mrf.mxu0  ;;  %4032 = vmatprep.subr.bf16.mxu1 %v5781_v17 }
 0x28d   :  { %v3918_v0 = vadd.f32 %v3917_v39, %v3228_v8 }
 0x28e   :  { %v3919_v44 = vpop.f32.mrf.mxu0 }
 0x28f   :  { %4033 = vmatpush2.bf16.msra.mxu1 %v5779_v38 }
 0x290   :  { %v3920_v18 = vpop.f32.mrf.mxu0  ;;  %4034 = vmatprep.subr.bf16.mxu1 %v5784_v40 }
 0x293   :  { %4035 = vmatpush2.bf16.msra.mxu1 %v5782_v45 }
 0x294   :  { %4979 = vmatprep.subr.bf16.mxu1 %v5801_v34 }
 0x296   :  { %4037 = vmatmul.mubr.bf16.vlgmr.msra.gmra.mxu1 %v7500_v61 }
 0x297   :  { %4980 = vmatpush3.bf16.msra.mxu1 %v5802_v27 }
 0x298   :  { %4981 = vmatprep.subr.bf16.mxu1 %v5803_v51 }
 0x29b   :  { %4982 = vmatpush3.bf16.msra.mxu1 %v5804_v35 }
 0x29c   :  { %4983 = vmatprep.subr.bf16.mxu1 %v5805_v26 }
 0x29f   :  { %4984 = vmatpush3.bf16.msra.mxu1 %v5806_v25 }
 0x2a0   :  { %4985 = vmatprep.subr.bf16.mxu1 %v5807_v54 }
 0x2a3   :  { %4986 = vmatpush3.bf16.msra.mxu1 %v5808_v55 }
 0x2a4   :  { %4987 = vmatprep.subr.bf16.mxu1 %v5809_v32 }
 0x2a7   :  { %4988 = vmatpush3.bf16.msra.mxu1 %v5810_v57 }
 0x2a8   :  { %4989 = vmatprep.subr.bf16.mxu1 %v5811_v58 }
 0x2ab   :  { %4990 = vmatpush3.bf16.msra.mxu1 %v5812_v59 }
 0x2ac   :  { %4991 = vmatprep.subr.bf16.mxu1 %v5813_v6 }
 0x2af   :  { %4992 = vmatpush3.bf16.msra.mxu1 %v5814_v49 }
 0x2b0   :  { %4993 = vmatprep.subr.bf16.mxu1 %v5815_v4 }
 0x2b3   :  { %4994 = vmatpush3.bf16.msra.mxu1 %v5816_v5 }
 0x2ca   :  { %v3997_v61 = vpop.f32.mrf.mxu0 }
 0x2cb   :  { %v3998_v14 = vadd.f32 %v3997_v61, %v3232_v60 }
 0x2cc   :  { %v3999_v41 = vpop.f32.mrf.mxu0 }
 0x2cd   :  { %v4000_v52 = vadd.f32 %v3999_v41, %v3236_v7 }
 0x2ce   :  { %v4001_v30 = vpop.f32.mrf.mxu0 }
 0x2d0   :  { %v4002_v1 = vpop.f32.mrf.mxu0 }
 0x316   :  { %v3956_v10 = vpop.f32.mrf.mxu1 }
 0x317   :  { %v3957_v11 = vadd.f32 %v3956_v10, %v3916_v9 }
 0x318   :  { %v3958_v12 = vpop.f32.mrf.mxu1 }
 0x319   :  { %v3959_v62 = vadd.f32 %v3958_v12, %v3918_v0  ;;  %v4045_v56 = vmax.f32 %v3957_v11, 0.0 }
 0x31a   :  { %v3960_v53 = vpop.f32.mrf.mxu1 }
 0x31b   :  { %v4046_v2 = vmax.f32 %v3959_v62, 0.0  ;;  %v4049_v3 = vpack.c.bf16 %v4045_v56, %v4045_v56 }
 0x31c   :  { %v3961_v15 = vpop.f32.mrf.mxu1 }
 0x31d   :  { %v4050_v19 = vpack.c.bf16 %v4046_v2, %v4046_v2 }
 0x31f   :  { %4348 = vmatprep.mubr.bf16.mxu0 %v4050_v19 }
 0x320   :  { %4349 = vmatmul.mubr.bf16.vlgmr.msra.gmra.mxu0 %v4049_v3 }
 0x356   :  { %v4038_v21 = vpop.f32.mrf.mxu1 }
 0x357   :  { %v4039_v63 = vadd.f32 %v4038_v21, %v3998_v14 }
 0x358   :  { %v4040_v22 = vpop.f32.mrf.mxu1 }
 0x359   :  { %v4041_v24 = vadd.f32 %v4040_v22, %v4000_v52  ;;  %v4047_v13 = vmax.f32 %v4039_v63, 0.0 }
 0x35a   :  { %v4042_v28 = vpop.f32.mrf.mxu1 }
 0x35b   :  { %v4048_v29 = vmax.f32 %v4041_v24, 0.0  ;;  %v4051_v36 = vpack.c.bf16 %v4047_v13, %v4047_v13 }
 0x35c   :  { %v4043_v31 = vpop.f32.mrf.mxu1 }
 0x35d   :  { %v4052_v33 = vpack.c.bf16 %v4048_v29, %v4048_v29 }
 0x35f   :  { %4388 = vmatprep.mubr.bf16.mxu1 %v4052_v33 }
 0x360   :  { %4389 = vmatmul.mubr.bf16.vlgmr.msra.gmra.mxu1 %v4051_v36 }
 0x3e0   :  { %v4973_v17 = vpop.f32.mrf.mxu0 }
 0x3e2   :  { %v4974_v37 = vpop.f32.mrf.mxu0 }
 0x3e3   :  { %v4975_v42 = vadd.f32 %v4974_v37, %v4973_v17 }
 0x3e4   :  { %v4976_v16 = vpop.f32.mrf.mxu0 }
 0x3e5   :  { %v4351_v44 = vadd.f32 %v4975_v42, %v4924_v20 }
 0x3e6   :  { %v4977_v38 = vpop.f32.mrf.mxu0 }
 0x420   :  { %v4995_v39 = vpop.f32.mrf.mxu1 }
 0x422   :  { %v4996_v40 = vpop.f32.mrf.mxu1 }
 0x423   :  { %v4997_v45 = vadd.f32 %v4996_v40, %v4995_v39 }
 0x424   :  { %v4998_v18 = vpop.f32.mrf.mxu1 }
 0x425   :  { %v4391_v46 = vadd.f32 %v4997_v45, %v4351_v44 }
 0x426   :  { %v4999_v48 = vpop.f32.mrf.mxu1 }
 0x427   :  { %4397 = vst.msk [vmem:[%s7702_s7] sm:$0x3] %vm4396_vm1, %v4391_v46 }

</bundles_post_ra>
